<compile_context>
chip_gen: v7x
topology: tpu7x:2x2x1
jax: 0.10.0
libtpu: 0.0.40
codegen_flags: <defaults>
</compile_context>

<pallas_src>
import functools

import jax
import jax.numpy as jnp
from jax import lax
from jax.experimental import pallas as pl
from jax.experimental.pallas import tpu as pltpu


def _round_up(x, m):
    return (x + m - 1) // m * m


def _alpha_gnn_fused_kernel(
    feats_ref, adj_hbm_ref, bias_hbm_ref, out_norm_ref, in_norm_ref,
    mask_col_ref, mask_row_ref,
    gat_w_ref, attn_vl_ref, attn_r_ref,
    gcn_w_ref, gcn_b_ref, res_w_ref, res_b_ref,
    bn_g_ref, bn_b_ref,
    out_ref,
    adj_vmem, bias_vmem, copy_sem,
    *, num_heads, neg_slope, alpha, bn_eps, inv_n,
):
    layer = pl.program_id(0)

    # Layer 0: DMA the layer-invariant (NP,NP) graph arrays ONCE into
    # single-buffered VMEM scratch, and seed the working features in out_ref
    # (constant-index output block => VMEM-resident across the layer axis).
    @pl.when(layer == 0)
    def _init():
        cp_a = pltpu.make_async_copy(adj_hbm_ref, adj_vmem, copy_sem.at[0])
        cp_b = pltpu.make_async_copy(bias_hbm_ref, bias_vmem, copy_sem.at[1])
        cp_a.start()
        cp_b.start()
        out_ref[...] = feats_ref[...]
        cp_a.wait()
        cp_b.wait()

    feats = out_ref[...]                          # (NP, FP) f32, working feats
    feats_bf = feats.astype(jnp.bfloat16)
    adj = adj_vmem[...]                           # (NP, NP) bf16, adj[dst, src]
    bias = bias_vmem[...]                         # (NP, NP) f32: 0 edge / -1e30
    out_norm = out_norm_ref[...]                  # (NP, 1) D_out^-1/2 (src)
    in_norm = in_norm_ref[...]                    # (NP, 1) D_in^-1/2  (dst)
    mask_col = mask_col_ref[...]                  # (NP, 1) 1.0 for real rows
    mask_row = mask_row_ref[...]                  # (1, NP) 1.0 for real rows
    attn_r = attn_r_ref[...]                      # (H, FP) f32

    npad = adj.shape[0]
    fpad = feats.shape[1]

    # Merged GAT projection for all heads: (NP, H*FP), bf16 x bf16 -> f32.
    zh_all = jnp.dot(feats_bf, gat_w_ref[...],
                     preferred_element_type=jnp.float32)

    # el (src-side) logits for all heads in ONE small dot: attn_l is folded
    # into the GAT weight host-side (v_h = W_h @ attn_l_h), so el = feats @ v.
    el_rows = lax.dot_general(attn_vl_ref[...], feats_bf,
                              (((1,), (1,)), ((), ())),
                              preferred_element_type=jnp.float32)   # (H, NP)

    heads = []
    for h in range(num_heads):                    # static unroll (H == 2)
        zh = zh_all[:, h * fpad:(h + 1) * fpad]                     # (NP, FP)
        # er (dst-side) logit: row reduction (off the MXU).
        er_col = jnp.sum(zh * attn_r[h:h + 1, :], axis=1, keepdims=True)
        e = er_col + el_rows[h:h + 1, :]                            # (dst, src)
        e = jnp.where(e >= 0.0, e, neg_slope * e)                   # leaky relu
        e = e + bias                                                # mask non-edges
        m = jnp.max(e, axis=1, keepdims=True)
        p = jnp.exp(e - m)            # non-edges underflow to exactly 0
        inv_den = pl.reciprocal(jnp.sum(p, axis=1, keepdims=True), approx=True)
        head = jnp.dot(p.astype(jnp.bfloat16), zh.astype(jnp.bfloat16),
                       preferred_element_type=jnp.float32) * inv_den
        heads.append(jnp.maximum(head, 0.0))                        # GAT ReLU

    head_cat = jnp.concatenate(heads, axis=1)                       # (NP, H*FP)

    # ---------------- GCN (norm='both') + residual Linear --------------------
    h_src = (head_cat * out_norm).astype(jnp.bfloat16)              # src norm
    agg = jnp.dot(adj, h_src, preferred_element_type=jnp.float32)   # (NP, H*FP)
    rst = jnp.dot(agg.astype(jnp.bfloat16), gcn_w_ref[...],
                  preferred_element_type=jnp.float32)               # K = H*FP
    res = jnp.dot(head_cat.astype(jnp.bfloat16), res_w_ref[...],
                  preferred_element_type=jnp.float32)
    rst = jnp.maximum(rst * in_norm + gcn_b_ref[...], 0.0)          # GraphConv+ReLU
    res = jnp.maximum(res + res_b_ref[...], 0.0)                    # residual+ReLU
    new = rst + res                                                 # dropout(0)=id

    # BatchNorm1d (training-mode, biased variance) over REAL node rows only;
    # the masked column sums run on the MXU ((1,NP)@(NP,FP)) instead of XLU.
    sum1 = jnp.dot(mask_row, new, preferred_element_type=jnp.float32)
    sum2 = jnp.dot(mask_row, new * new, preferred_element_type=jnp.float32)
    mean = sum1 * inv_n
    var = jnp.maximum(sum2 * inv_n - mean * mean, 0.0)
    y = (new - mean) * lax.rsqrt(var + bn_eps) * bn_g_ref[...] + bn_b_ref[...]

    # Recycle alpha-mixing; keep padded node rows exactly zero for next layer.
    out_ref[...] = (alpha * y + (1.0 - alpha) * feats) * mask_col


def alpha_gnn_recycle(feats, adj, layer_params, *, alpha=0.5, num_heads=2,
                      neg_slope=0.2, bn_eps=1e-5):
    """Fused AlphaGNNRecycle forward: all layers in a single pallas_call."""
    N, F = feats.shape
    H = num_heads
    L = len(layer_params)
    NP = _round_up(N, 128)        # lane-dense node padding (adj / attention path)
    FP = _round_up(F, 128)        # lane-dense feature padding
    HFP = H * FP

    # ---- graph preprocessing (norm='both' degree scalings, clamped at 1) ----
    adj_f = adj.astype(jnp.float32)
    out_deg = jnp.clip(jnp.sum(adj_f, axis=0), 1.0, None)   # out-degree of src
    in_deg = jnp.clip(jnp.sum(adj_f, axis=1), 1.0, None)    # in-degree of dst
    out_norm = jnp.pad(out_deg ** -0.5, (0, NP - N), constant_values=1.0)
    in_norm = jnp.pad(in_deg ** -0.5, (0, NP - N), constant_values=1.0)
    out_norm = out_norm.reshape(NP, 1).astype(jnp.float32)
    in_norm = in_norm.reshape(NP, 1).astype(jnp.float32)

    feats_p = jnp.pad(feats.astype(jnp.float32), ((0, NP - N), (0, FP - F)))
    adj_pad = jnp.pad(adj_f, ((0, NP - N), (0, NP - N)))
    adj_p = adj_pad.astype(jnp.bfloat16)
    # Additive edge-mask bias (precomputed once; non-edges / padding -> -1e30).
    bias_p = jnp.where(adj_pad > 0, 0.0, -1e30).astype(jnp.float32)

    row_ids = jnp.arange(NP)
    mask_vec = (row_ids < N).astype(jnp.float32)
    mask_col = mask_vec.reshape(NP, 1)
    mask_row = mask_vec.reshape(1, NP)

    # ---- stack + zero-pad per-layer weights (bf16 for matmul operands) ------
    def pad_vec(v):               # (1, F) -> (1, FP)
        return jnp.pad(v.astype(jnp.float32), ((0, 0), (0, FP - F)))

    gat_w_all, attn_vl_all, attn_r_all, gcn_w_all, res_w_all = [], [], [], [], []
    for p in layer_params:
        gw = jnp.zeros((FP, HFP), jnp.float32)
        gcw = jnp.zeros((HFP, FP), jnp.float32)
        rsw = jnp.zeros((HFP, FP), jnp.float32)
        vl = jnp.zeros((H, FP), jnp.float32)
        for h in range(H):
            W_h = p["gat_w"][:, h * F:(h + 1) * F].astype(jnp.float32)   # (F, F)
            gw = gw.at[:F, h * FP:h * FP + F].set(W_h)
            # Fold attn_l into the GAT weight: el = feats @ (W_h @ attn_l_h).
            vl = vl.at[h, :F].set(W_h @ p["attn_l"][h].astype(jnp.float32))
            gcw = gcw.at[h * FP:h * FP + F, :F].set(
                p["gcn_w"][h * F:(h + 1) * F, :].astype(jnp.float32))
            rsw = rsw.at[h * FP:h * FP + F, :F].set(
                p["res_w"][h * F:(h + 1) * F, :].astype(jnp.float32))
        gat_w_all.append(gw)
        attn_vl_all.append(vl)
        gcn_w_all.append(gcw)
        res_w_all.append(rsw)
        attn_r_all.append(jnp.pad(p["attn_r"].astype(jnp.float32),
                                  ((0, 0), (0, FP - F))))

    gat_w_all = jnp.stack(gat_w_all).astype(jnp.bfloat16)      # (L, FP, HFP)
    attn_vl_all = jnp.stack(attn_vl_all).astype(jnp.bfloat16)  # (L, H, FP)
    attn_r_all = jnp.stack(attn_r_all)                         # (L, H, FP) f32
    gcn_w_all = jnp.stack(gcn_w_all).astype(jnp.bfloat16)      # (L, HFP, FP)
    res_w_all = jnp.stack(res_w_all).astype(jnp.bfloat16)      # (L, HFP, FP)
    gcn_b = jnp.stack([pad_vec(p["gcn_b"]) for p in layer_params])
    res_b = jnp.stack([pad_vec(p["res_b"]) for p in layer_params])
    bn_g = jnp.stack([pad_vec(p["bn_g"]) for p in layer_params])
    bn_b = jnp.stack([pad_vec(p["bn_b"]) for p in layer_params])

    kernel = functools.partial(
        _alpha_gnn_fused_kernel,
        num_heads=H, neg_slope=neg_slope, alpha=alpha, bn_eps=bn_eps,
        inv_n=1.0 / N)

    def const2(bs):
        return pl.BlockSpec(bs, lambda l: (0, 0))

    def per_layer(bs):
        return pl.BlockSpec(bs, lambda l: (l, 0, 0))

    grid_spec = pltpu.PrefetchScalarGridSpec(
        num_scalar_prefetch=0,
        grid=(L,),
        in_specs=[
            const2((NP, FP)),                       # feats (read only at layer 0)
            pl.BlockSpec(memory_space=pl.ANY),      # adj  (bf16, DMA'd once)
            pl.BlockSpec(memory_space=pl.ANY),      # edge bias (DMA'd once)
            const2((NP, 1)),                        # out_norm
            const2((NP, 1)),                        # in_norm
            const2((NP, 1)),                        # row mask (column)
            const2((1, NP)),                        # row mask (row, for BN MXU sums)
            per_layer((None, FP, HFP)),             # gat_w (merged heads, bf16)
            per_layer((None, H, FP)),               # folded attn_l vectors (bf16)
            per_layer((None, H, FP)),               # attn_r
            per_layer((None, HFP, FP)),             # gcn_w (bf16)
            per_layer((None, 1, FP)),               # gcn_b
            per_layer((None, HFP, FP)),             # res_w (bf16)
            per_layer((None, 1, FP)),               # res_b
            per_layer((None, 1, FP)),               # bn_g
            per_layer((None, 1, FP)),               # bn_b
        ],
        out_specs=pl.BlockSpec((NP, FP), lambda l: (0, 0)),
        scratch_shapes=[
            pltpu.VMEM((NP, NP), jnp.bfloat16),     # resident adjacency
            pltpu.VMEM((NP, NP), jnp.float32),      # resident additive edge bias
            pltpu.SemaphoreType.DMA((2,)),
        ],
    )

    # ---- generation-aware VMEM budget ---------------------------------------
    try:
        phys_vmem = int(pltpu.get_tpu_info().vmem_capacity_bytes)
    except Exception:                                # pragma: no cover
        phys_vmem = 64 << 20                         # conservative (v7x per-TC)

    per_layer_w_bytes = (2 * (FP * HFP + 2 * HFP * FP + 2 * H * FP)   # bf16
                         + 4 * (H * FP + 4 * FP))                     # f32 rows
    need = (2 * NP * NP + 4 * NP * NP            # resident adj (bf16) + bias (f32)
            + 4 * 4 * NP * FP                    # feats in (2x) + resident out
            + 2 * per_layer_w_bytes              # double-buffered layer weights
            + 2 * 4 * NP * NP                    # e / p attention temporaries
            + 3 * 4 * NP * HFP                   # zh_all / head_cat / agg
            + (4 << 20))                         # headroom
    vmem_limit = min(max(need, 32 << 20), int(phys_vmem * 0.9))
    if need > int(phys_vmem * 0.9):
        raise ValueError(
            f"resident-graph design needs ~{need >> 20} MiB VMEM but only "
            f"{phys_vmem >> 20} MiB physical; use the tiled path (see TODO).")

    flops = L * (2 * NP * FP * HFP + 2 * H * NP * FP + 2 * H * NP * NP * FP
                 + 2 * NP * NP * HFP + 4 * NP * HFP * FP
                 + 10 * H * NP * NP + 24 * NP * FP)
    transcendentals = L * (H * NP * NP + NP + FP)
    bytes_accessed = (NP * NP * (2 + 4) + 2 * NP * FP * 4 + 3 * NP * 4
                      + L * per_layer_w_bytes)

    out_p = pl.pallas_call(
        kernel,
        grid_spec=grid_spec,
        out_shape=jax.ShapeDtypeStruct((NP, FP), jnp.float32),
        compiler_params=pltpu.CompilerParams(
            dimension_semantics=("arbitrary",),   # layers are strictly sequential
            vmem_limit_bytes=vmem_limit),
        cost_estimate=pl.CostEstimate(
            flops=flops, transcendentals=transcendentals,
            bytes_accessed=bytes_accessed),
    )(feats_p, adj_p, bias_p, out_norm, in_norm, mask_col, mask_row,
      gat_w_all, attn_vl_all, attn_r_all, gcn_w_all, gcn_b, res_w_all, res_b,
      bn_g, bn_b)

    return out_p[:N, :F]


def init_layer_params(key, in_feats, num_heads):
    F, H = in_feats, num_heads
    ks = jax.random.split(key, 6)
    s = 0.2
    return dict(
        # GATConv fc weight, stored as (in, H*out) for row-major matmul.
        gat_w=s * jax.random.normal(ks[0], (F, H * F), jnp.float32),
        attn_l=s * jax.random.normal(ks[1], (H, F), jnp.float32),
        attn_r=s * jax.random.normal(ks[2], (H, F), jnp.float32),
        # GraphConv weight (in, out) and bias.
        gcn_w=s * jax.random.normal(ks[3], (H * F, F), jnp.float32),
        gcn_b=jnp.zeros((1, F), jnp.float32),
        # GCNLayer residual Linear, stored transposed as (in, out).
        res_w=s * jax.random.normal(ks[4], (H * F, F), jnp.float32),
        res_b=s * jax.random.normal(ks[5], (1, F), jnp.float32),
        # BatchNorm1d affine params.
        bn_g=jnp.ones((1, F), jnp.float32),
        bn_b=jnp.zeros((1, F), jnp.float32),
    )


if __name__ == "__main__":
    N = 16          # number of graph nodes
    F = 32          # in_feats (== out_feats of every layer)
    H = 2           # gat_num_heads
    NUM_LAYERS = 2
    ALPHA = 0.5

    key = jax.random.PRNGKey(0)
    k_feat, k_params = jax.random.split(key)

    feats = jax.random.normal(k_feat, (N, F), jnp.float32)

    # Deterministic small graph: self loops + ring edges i->i+1 and i->i+3.
    idx = jnp.arange(N)
    adj = jnp.zeros((N, N), jnp.float32)
    adj = adj.at[idx, idx].set(1.0)                 # self loops (no zero in-degree)
    adj = adj.at[(idx + 1) % N, idx].set(1.0)       # dst=(i+1), src=i
    adj = adj.at[(idx + 3) % N, idx].set(1.0)       # dst=(i+3), src=i

    layer_params = [init_layer_params(k, F, H)
                    for k in jax.random.split(k_params, NUM_LAYERS)]

    out = alpha_gnn_recycle(feats, adj, layer_params, alpha=ALPHA, num_heads=H)
    out = jax.block_until_ready(out)
    assert out.shape == (N, F) and out.dtype == jnp.float32
    assert bool(jnp.all(jnp.isfinite(out)))
    print("KERNEL_OK")
</pallas_src>

<mosaic_0001>
module attributes {stable_mosaic.version = 11 : i64} {
  func.func @_alpha_gnn_fused_kernel(%arg0: i32, %arg1: memref<128x128xf32, #tpu.memory_space<vmem>>, %arg2: memref<128x128xbf16, #tpu.memory_space<any>>, %arg3: memref<128x128xf32, #tpu.memory_space<any>>, %arg4: memref<128x1xf32, #tpu.memory_space<vmem>>, %arg5: memref<128x1xf32, #tpu.memory_space<vmem>>, %arg6: memref<128x1xf32, #tpu.memory_space<vmem>>, %arg7: memref<1x128xf32, #tpu.memory_space<vmem>>, %arg8: memref<1x128x256xbf16, #tpu.memory_space<vmem>>, %arg9: memref<1x2x128xbf16, #tpu.memory_space<vmem>>, %arg10: memref<1x2x128xf32, #tpu.memory_space<vmem>>, %arg11: memref<1x256x128xbf16, #tpu.memory_space<vmem>>, %arg12: memref<1x1x128xf32, #tpu.memory_space<vmem>>, %arg13: memref<1x256x128xbf16, #tpu.memory_space<vmem>>, %arg14: memref<1x1x128xf32, #tpu.memory_space<vmem>>, %arg15: memref<1x1x128xf32, #tpu.memory_space<vmem>>, %arg16: memref<1x1x128xf32, #tpu.memory_space<vmem>>, %arg17: memref<128x128xf32, #tpu.memory_space<vmem>>, %arg18: memref<128x128xbf16, #tpu.memory_space<vmem>>, %arg19: memref<128x128xf32, #tpu.memory_space<vmem>>, %arg20: memref<2x!tpu.dma_semaphore, #tpu.memory_space<semaphore_mem>>) attributes {dimension_semantics = [#tpu.dimension_semantics<arbitrary>], iteration_bounds = array<i64: 2>, scalar_prefetch = 0 : i64, scratch_operands = 3 : i64, tpu.core_type = #tpu.core_type<tc>, window_params = [{pipeline_mode = #tpu.pipeline_mode<synchronous>, transform_indices = @transform_0, window_bounds = array<i64: 128, 128>}, {}, {}, {pipeline_mode = #tpu.pipeline_mode<synchronous>, transform_indices = @transform_3, window_bounds = array<i64: 128, 1>}, {pipeline_mode = #tpu.pipeline_mode<synchronous>, transform_indices = @transform_4, window_bounds = array<i64: 128, 1>}, {pipeline_mode = #tpu.pipeline_mode<synchronous>, transform_indices = @transform_5, window_bounds = array<i64: 128, 1>}, {pipeline_mode = #tpu.pipeline_mode<synchronous>, transform_indices = @transform_6, window_bounds = array<i64: 1, 128>}, {transform_indices = @transform_7, window_bounds = array<i64: 1, 128, 256>}, {transform_indices = @transform_8, window_bounds = array<i64: 1, 2, 128>}, {transform_indices = @transform_9, window_bounds = array<i64: 1, 2, 128>}, {transform_indices = @transform_10, window_bounds = array<i64: 1, 256, 128>}, {transform_indices = @transform_11, window_bounds = array<i64: 1, 1, 128>}, {transform_indices = @transform_12, window_bounds = array<i64: 1, 256, 128>}, {transform_indices = @transform_13, window_bounds = array<i64: 1, 1, 128>}, {transform_indices = @transform_14, window_bounds = array<i64: 1, 1, 128>}, {transform_indices = @transform_15, window_bounds = array<i64: 1, 1, 128>}, {pipeline_mode = #tpu.pipeline_mode<synchronous>, transform_indices = @transform_16, window_bounds = array<i64: 128, 128>}]} {
    %c0_i32 = arith.constant 0 : i32
    %0 = arith.cmpi eq, %arg0, %c0_i32 : i32
    %1 = arith.extui %0 : i1 to i32
    %c0_i32_0 = arith.constant 0 : i32
    %2 = arith.cmpi ne, %1, %c0_i32_0 : i32
    scf.if %2 {
      %c0_i32_71 = arith.constant 0 : i32
      %143 = tpu.memref_slice %arg20[%c0_i32_71] : memref<2x!tpu.dma_semaphore, #tpu.memory_space<semaphore_mem>> -> memref<1x!tpu.dma_semaphore, #tpu.memory_space<semaphore_mem>>
      %144 = tpu.memref_squeeze %143 : memref<1x!tpu.dma_semaphore, #tpu.memory_space<semaphore_mem>> -> memref<!tpu.dma_semaphore, #tpu.memory_space<semaphore_mem>>
      tpu.enqueue_dma source(%arg2 : memref<128x128xbf16, #tpu.memory_space<any>>) target(%arg18 : memref<128x128xbf16, #tpu.memory_space<vmem>>) target_semaphore(%144 : memref<!tpu.dma_semaphore, #tpu.memory_space<semaphore_mem>>)
      %c1_i32 = arith.constant 1 : i32
      %145 = tpu.memref_slice %arg20[%c1_i32] : memref<2x!tpu.dma_semaphore, #tpu.memory_space<semaphore_mem>> -> memref<1x!tpu.dma_semaphore, #tpu.memory_space<semaphore_mem>>
      %146 = tpu.memref_squeeze %145 : memref<1x!tpu.dma_semaphore, #tpu.memory_space<semaphore_mem>> -> memref<!tpu.dma_semaphore, #tpu.memory_space<semaphore_mem>>
      tpu.enqueue_dma source(%arg3 : memref<128x128xf32, #tpu.memory_space<any>>) target(%arg19 : memref<128x128xf32, #tpu.memory_space<vmem>>) target_semaphore(%146 : memref<!tpu.dma_semaphore, #tpu.memory_space<semaphore_mem>>)
      %c0_72 = arith.constant 0 : index
      %c0_73 = arith.constant 0 : index
      %147 = vector.load %arg1[%c0_72, %c0_73] : memref<128x128xf32, #tpu.memory_space<vmem>>, vector<128x128xf32>
      %c0_74 = arith.constant 0 : index
      %c0_75 = arith.constant 0 : index
      %148 = vector.load %arg17[%c0_74, %c0_75] : memref<128x128xf32, #tpu.memory_space<vmem>>, vector<128x128xf32>
      tpu.vector_store %arg17[%c0_74, %c0_75], %147 {strides = array<i32>} : memref<128x128xf32, #tpu.memory_space<vmem>>, vector<128x128xf32>,
      %c0_i32_76 = arith.constant 0 : i32
      %149 = tpu.memref_slice %arg20[%c0_i32_76] : memref<2x!tpu.dma_semaphore, #tpu.memory_space<semaphore_mem>> -> memref<1x!tpu.dma_semaphore, #tpu.memory_space<semaphore_mem>>
      %150 = tpu.memref_squeeze %149 : memref<1x!tpu.dma_semaphore, #tpu.memory_space<semaphore_mem>> -> memref<!tpu.dma_semaphore, #tpu.memory_space<semaphore_mem>>
      tpu.wait_dma2 semaphore(%150 : memref<!tpu.dma_semaphore, #tpu.memory_space<semaphore_mem>>) src(%arg2 : memref<128x128xbf16, #tpu.memory_space<any>>) dst(%arg18 : memref<128x128xbf16, #tpu.memory_space<vmem>>)
      %c1_i32_77 = arith.constant 1 : i32
      %151 = tpu.memref_slice %arg20[%c1_i32_77] : memref<2x!tpu.dma_semaphore, #tpu.memory_space<semaphore_mem>> -> memref<1x!tpu.dma_semaphore, #tpu.memory_space<semaphore_mem>>
      %152 = tpu.memref_squeeze %151 : memref<1x!tpu.dma_semaphore, #tpu.memory_space<semaphore_mem>> -> memref<!tpu.dma_semaphore, #tpu.memory_space<semaphore_mem>>
      tpu.wait_dma2 semaphore(%152 : memref<!tpu.dma_semaphore, #tpu.memory_space<semaphore_mem>>) src(%arg3 : memref<128x128xf32, #tpu.memory_space<any>>) dst(%arg19 : memref<128x128xf32, #tpu.memory_space<vmem>>)
    } else {
    }
    %c0 = arith.constant 0 : index
    %c0_1 = arith.constant 0 : index
    %3 = vector.load %arg17[%c0, %c0_1] : memref<128x128xf32, #tpu.memory_space<vmem>>, vector<128x128xf32>
    %4 = arith.truncf %3 : vector<128x128xf32> to vector<128x128xbf16>
    %c0_2 = arith.constant 0 : index
    %c0_3 = arith.constant 0 : index
    %5 = vector.load %arg18[%c0_2, %c0_3] : memref<128x128xbf16, #tpu.memory_space<vmem>>, vector<128x128xbf16>
    %c0_4 = arith.constant 0 : index
    %c0_5 = arith.constant 0 : index
    %6 = vector.load %arg19[%c0_4, %c0_5] : memref<128x128xf32, #tpu.memory_space<vmem>>, vector<128x128xf32>
    %c0_6 = arith.constant 0 : index
    %c0_7 = arith.constant 0 : index
    %7 = vector.load %arg4[%c0_6, %c0_7] : memref<128x1xf32, #tpu.memory_space<vmem>>, vector<128x1xf32>
    %c0_8 = arith.constant 0 : index
    %c0_9 = arith.constant 0 : index
    %8 = vector.load %arg5[%c0_8, %c0_9] : memref<128x1xf32, #tpu.memory_space<vmem>>, vector<128x1xf32>
    %c0_10 = arith.constant 0 : index
    %c0_11 = arith.constant 0 : index
    %9 = vector.load %arg6[%c0_10, %c0_11] : memref<128x1xf32, #tpu.memory_space<vmem>>, vector<128x1xf32>
    %c0_12 = arith.constant 0 : index
    %c0_13 = arith.constant 0 : index
    %10 = vector.load %arg7[%c0_12, %c0_13] : memref<1x128xf32, #tpu.memory_space<vmem>>, vector<1x128xf32>
    %c0_14 = arith.constant 0 : index
    %c0_15 = arith.constant 0 : index
    %c0_16 = arith.constant 0 : index
    %11 = vector.load %arg10[%c0_14, %c0_15, %c0_16] : memref<1x2x128xf32, #tpu.memory_space<vmem>>, vector<1x2x128xf32>
    %12 = vector.shape_cast %11 : vector<1x2x128xf32> to vector<2x128xf32>
    %c0_17 = arith.constant 0 : index
    %c0_18 = arith.constant 0 : index
    %c0_19 = arith.constant 0 : index
    %13 = vector.load %arg8[%c0_17, %c0_18, %c0_19] : memref<1x128x256xbf16, #tpu.memory_space<vmem>>, vector<1x128x256xbf16>
    %14 = vector.shape_cast %13 : vector<1x128x256xbf16> to vector<128x256xbf16>
    %cst = arith.constant dense<0.000000e+00> : vector<128x256xf32>
    %15 = tpu.matmul %4, %14, %cst {dimension_numbers = #tpu.dot_dimension_numbers<[1], [0], [0], [1], [0, 0, 1, 1], [], []>} : vector<128x128xbf16>, vector<128x256xbf16>, vector<128x256xf32> -> vector<128x256xf32>
    %c0_20 = arith.constant 0 : index
    %c0_21 = arith.constant 0 : index
    %c0_22 = arith.constant 0 : index
    %16 = vector.load %arg9[%c0_20, %c0_21, %c0_22] : memref<1x2x128xbf16, #tpu.memory_space<vmem>>, vector<1x2x128xbf16>
    %17 = vector.shape_cast %16 : vector<1x2x128xbf16> to vector<2x128xbf16>
    %cst_23 = arith.constant dense<0.000000e+00> : vector<2x128xf32>
    %18 = tpu.matmul %17, %4, %cst_23 {dimension_numbers = #tpu.dot_dimension_numbers<[1], [1], [0], [0], [0, 0, 1, 0], [], []>} : vector<2x128xbf16>, vector<128x128xbf16>, vector<2x128xf32> -> vector<2x128xf32>
    %19 = vector.extract_strided_slice %15 {offsets = [0, 0], sizes = [128, 128], strides = [1, 1]} : vector<128x256xf32> to vector<128x128xf32>
    %20 = vector.extract_strided_slice %12 {offsets = [0, 0], sizes = [1, 128], strides = [1, 1]} : vector<2x128xf32> to vector<1x128xf32>
    %21 = vector.broadcast %20 : vector<1x128xf32> to vector<128x128xf32>
    %22 = arith.mulf %19, %21 : vector<128x128xf32>
    %cst_24 = arith.constant dense<0.000000e+00> : vector<128xf32>
    %23 = vector.multi_reduction <add>, %22, %cst_24 [1] : vector<128x128xf32> to vector<128xf32>
    %24 = vector.shape_cast %23 : vector<128xf32> to vector<128x1xf32>
    %25 = vector.extract_strided_slice %18 {offsets = [0, 0], sizes = [1, 128], strides = [1, 1]} : vector<2x128xf32> to vector<1x128xf32>
    %26 = vector.broadcast %24 : vector<128x1xf32> to vector<128x128xf32>
    %27 = vector.broadcast %25 : vector<1x128xf32> to vector<128x128xf32>
    %28 = arith.addf %26, %27 : vector<128x128xf32>
    %cst_25 = arith.constant 0.000000e+00 : f32
    %29 = vector.broadcast %cst_25 : f32 to vector<128x128xf32>
    %30 = arith.cmpf oge, %28, %29 : vector<128x128xf32>
    %cst_26 = arith.constant 2.000000e-01 : f32
    %31 = vector.broadcast %cst_26 : f32 to vector<128x128xf32>
    %32 = arith.mulf %31, %28 : vector<128x128xf32>
    %33 = arith.select %30, %28, %32 : vector<128x128xi1>, vector<128x128xf32>
    %34 = arith.addf %33, %6 : vector<128x128xf32>
    %cst_27 = arith.constant dense<0xFF800000> : vector<128xf32>
    %35 = vector.multi_reduction <maximumf>, %34, %cst_27 [1] : vector<128x128xf32> to vector<128xf32>
    %36 = vector.shape_cast %35 : vector<128xf32> to vector<128x1xf32>
    %37 = vector.broadcast %36 : vector<128x1xf32> to vector<128x128xf32>
    %38 = arith.subf %34, %37 : vector<128x128xf32>
    %39 = math.exp %38 : vector<128x128xf32>
    %cst_28 = arith.constant dense<0.000000e+00> : vector<128xf32>
    %40 = vector.multi_reduction <add>, %39, %cst_28 [1] : vector<128x128xf32> to vector<128xf32>
    %41 = vector.shape_cast %40 : vector<128xf32> to vector<128x1xf32>
    %42 = tpu.reciprocal %41 {approx = true} : vector<128x1xf32> -> vector<128x1xf32>
    %43 = arith.truncf %39 : vector<128x128xf32> to vector<128x128xbf16>
    %44 = arith.truncf %19 : vector<128x128xf32> to vector<128x128xbf16>
    %cst_29 = arith.constant dense<0.000000e+00> : vector<128x128xf32>
    %45 = tpu.matmul %43, %44, %cst_29 {dimension_numbers = #tpu.dot_dimension_numbers<[1], [0], [0], [1], [0, 0, 1, 1], [], []>} : vector<128x128xbf16>, vector<128x128xbf16>, vector<128x128xf32> -> vector<128x128xf32>
    %46 = vector.broadcast %42 : vector<128x1xf32> to vector<128x128xf32>
    %47 = arith.mulf %45, %46 : vector<128x128xf32>
    %cst_30 = arith.constant 0.000000e+00 : f32
    %48 = vector.broadcast %cst_30 : f32 to vector<128x128xf32>
    %49 = arith.maximumf %47, %48 : vector<128x128xf32>
    %50 = vector.extract_strided_slice %15 {offsets = [0, 128], sizes = [128, 128], strides = [1, 1]} : vector<128x256xf32> to vector<128x128xf32>
    %51 = vector.extract_strided_slice %12 {offsets = [1, 0], sizes = [1, 128], strides = [1, 1]} : vector<2x128xf32> to vector<1x128xf32>
    %52 = vector.broadcast %51 : vector<1x128xf32> to vector<128x128xf32>
    %53 = arith.mulf %50, %52 : vector<128x128xf32>
    %cst_31 = arith.constant dense<0.000000e+00> : vector<128xf32>
    %54 = vector.multi_reduction <add>, %53, %cst_31 [1] : vector<128x128xf32> to vector<128xf32>
    %55 = vector.shape_cast %54 : vector<128xf32> to vector<128x1xf32>
    %56 = vector.extract_strided_slice %18 {offsets = [1, 0], sizes = [1, 128], strides = [1, 1]} : vector<2x128xf32> to vector<1x128xf32>
    %57 = vector.broadcast %55 : vector<128x1xf32> to vector<128x128xf32>
    %58 = vector.broadcast %56 : vector<1x128xf32> to vector<128x128xf32>
    %59 = arith.addf %57, %58 : vector<128x128xf32>
    %cst_32 = arith.constant 0.000000e+00 : f32
    %60 = vector.broadcast %cst_32 : f32 to vector<128x128xf32>
    %61 = arith.cmpf oge, %59, %60 : vector<128x128xf32>
    %cst_33 = arith.constant 2.000000e-01 : f32
    %62 = vector.broadcast %cst_33 : f32 to vector<128x128xf32>
    %63 = arith.mulf %62, %59 : vector<128x128xf32>
    %64 = arith.select %61, %59, %63 : vector<128x128xi1>, vector<128x128xf32>
    %65 = arith.addf %64, %6 : vector<128x128xf32>
    %cst_34 = arith.constant dense<0xFF800000> : vector<128xf32>
    %66 = vector.multi_reduction <maximumf>, %65, %cst_34 [1] : vector<128x128xf32> to vector<128xf32>
    %67 = vector.shape_cast %66 : vector<128xf32> to vector<128x1xf32>
    %68 = vector.broadcast %67 : vector<128x1xf32> to vector<128x128xf32>
    %69 = arith.subf %65, %68 : vector<128x128xf32>
    %70 = math.exp %69 : vector<128x128xf32>
    %cst_35 = arith.constant dense<0.000000e+00> : vector<128xf32>
    %71 = vector.multi_reduction <add>, %70, %cst_35 [1] : vector<128x128xf32> to vector<128xf32>
    %72 = vector.shape_cast %71 : vector<128xf32> to vector<128x1xf32>
    %73 = tpu.reciprocal %72 {approx = true} : vector<128x1xf32> -> vector<128x1xf32>
    %74 = arith.truncf %70 : vector<128x128xf32> to vector<128x128xbf16>
    %75 = arith.truncf %50 : vector<128x128xf32> to vector<128x128xbf16>
    %cst_36 = arith.constant dense<0.000000e+00> : vector<128x128xf32>
    %76 = tpu.matmul %74, %75, %cst_36 {dimension_numbers = #tpu.dot_dimension_numbers<[1], [0], [0], [1], [0, 0, 1, 1], [], []>} : vector<128x128xbf16>, vector<128x128xbf16>, vector<128x128xf32> -> vector<128x128xf32>
    %77 = vector.broadcast %73 : vector<128x1xf32> to vector<128x128xf32>
    %78 = arith.mulf %76, %77 : vector<128x128xf32>
    %cst_37 = arith.constant 0.000000e+00 : f32
    %79 = vector.broadcast %cst_37 : f32 to vector<128x128xf32>
    %80 = arith.maximumf %78, %79 : vector<128x128xf32>
    %81 = tpu.concatenate %49, %80 in 1 : vector<128x128xf32>, vector<128x128xf32> -> vector<128x256xf32>
    %82 = vector.broadcast %7 : vector<128x1xf32> to vector<128x256xf32>
    %83 = arith.mulf %81, %82 : vector<128x256xf32>
    %84 = arith.truncf %83 : vector<128x256xf32> to vector<128x256xbf16>
    %cst_38 = arith.constant dense<0.000000e+00> : vector<128x256xf32>
    %85 = tpu.matmul %5, %84, %cst_38 {dimension_numbers = #tpu.dot_dimension_numbers<[1], [0], [0], [1], [0, 0, 1, 1], [], []>} : vector<128x128xbf16>, vector<128x256xbf16>, vector<128x256xf32> -> vector<128x256xf32>
    %86 = arith.truncf %85 : vector<128x256xf32> to vector<128x256xbf16>
    %c0_39 = arith.constant 0 : index
    %c0_40 = arith.constant 0 : index
    %c0_41 = arith.constant 0 : index
    %87 = vector.load %arg11[%c0_39, %c0_40, %c0_41] : memref<1x256x128xbf16, #tpu.memory_space<vmem>>, vector<1x256x128xbf16>
    %88 = vector.shape_cast %87 : vector<1x256x128xbf16> to vector<256x128xbf16>
    %cst_42 = arith.constant dense<0.000000e+00> : vector<128x128xf32>
    %89 = tpu.matmul %86, %88, %cst_42 {dimension_numbers = #tpu.dot_dimension_numbers<[1], [0], [0], [1], [0, 0, 1, 1], [], []>} : vector<128x256xbf16>, vector<256x128xbf16>, vector<128x128xf32> -> vector<128x128xf32>
    %90 = arith.truncf %81 : vector<128x256xf32> to vector<128x256xbf16>
    %c0_43 = arith.constant 0 : index
    %c0_44 = arith.constant 0 : index
    %c0_45 = arith.constant 0 : index
    %91 = vector.load %arg13[%c0_43, %c0_44, %c0_45] : memref<1x256x128xbf16, #tpu.memory_space<vmem>>, vector<1x256x128xbf16>
    %92 = vector.shape_cast %91 : vector<1x256x128xbf16> to vector<256x128xbf16>
    %cst_46 = arith.constant dense<0.000000e+00> : vector<128x128xf32>
    %93 = tpu.matmul %90, %92, %cst_46 {dimension_numbers = #tpu.dot_dimension_numbers<[1], [0], [0], [1], [0, 0, 1, 1], [], []>} : vector<128x256xbf16>, vector<256x128xbf16>, vector<128x128xf32> -> vector<128x128xf32>
    %94 = vector.broadcast %8 : vector<128x1xf32> to vector<128x128xf32>
    %95 = arith.mulf %89, %94 : vector<128x128xf32>
    %c0_47 = arith.constant 0 : index
    %c0_48 = arith.constant 0 : index
    %c0_49 = arith.constant 0 : index
    %96 = vector.load %arg12[%c0_47, %c0_48, %c0_49] : memref<1x1x128xf32, #tpu.memory_space<vmem>>, vector<1x1x128xf32>
    %97 = vector.shape_cast %96 : vector<1x1x128xf32> to vector<1x128xf32>
    %98 = vector.broadcast %97 : vector<1x128xf32> to vector<128x128xf32>
    %99 = arith.addf %95, %98 : vector<128x128xf32>
    %cst_50 = arith.constant 0.000000e+00 : f32
    %100 = vector.broadcast %cst_50 : f32 to vector<128x128xf32>
    %101 = arith.maximumf %99, %100 : vector<128x128xf32>
    %c0_51 = arith.constant 0 : index
    %c0_52 = arith.constant 0 : index
    %c0_53 = arith.constant 0 : index
    %102 = vector.load %arg14[%c0_51, %c0_52, %c0_53] : memref<1x1x128xf32, #tpu.memory_space<vmem>>, vector<1x1x128xf32>
    %103 = vector.shape_cast %102 : vector<1x1x128xf32> to vector<1x128xf32>
    %104 = vector.broadcast %103 : vector<1x128xf32> to vector<128x128xf32>
    %105 = arith.addf %93, %104 : vector<128x128xf32>
    %cst_54 = arith.constant 0.000000e+00 : f32
    %106 = vector.broadcast %cst_54 : f32 to vector<128x128xf32>
    %107 = arith.maximumf %105, %106 : vector<128x128xf32>
    %108 = arith.addf %101, %107 : vector<128x128xf32>
    %cst_55 = arith.constant dense<0.000000e+00> : vector<1x128xf32>
    %109 = tpu.matmul %10, %108, %cst_55 {dimension_numbers = #tpu.dot_dimension_numbers<[1], [0], [0], [1], [0, 0, 1, 1], [], []>} : vector<1x128xf32>, vector<128x128xf32>, vector<1x128xf32> -> vector<1x128xf32>
    %110 = arith.mulf %108, %108 : vector<128x128xf32>
    %cst_56 = arith.constant dense<0.000000e+00> : vector<1x128xf32>
    %111 = tpu.matmul %10, %110, %cst_56 {dimension_numbers = #tpu.dot_dimension_numbers<[1], [0], [0], [1], [0, 0, 1, 1], [], []>} : vector<1x128xf32>, vector<128x128xf32>, vector<1x128xf32> -> vector<1x128xf32>
    %cst_57 = arith.constant 6.250000e-02 : f32
    %112 = vector.broadcast %cst_57 : f32 to vector<1x128xf32>
    %113 = arith.mulf %109, %112 : vector<1x128xf32>
    %cst_58 = arith.constant 6.250000e-02 : f32
    %114 = vector.broadcast %cst_58 : f32 to vector<1x128xf32>
    %115 = arith.mulf %111, %114 : vector<1x128xf32>
    %116 = arith.mulf %113, %113 : vector<1x128xf32>
    %117 = arith.subf %115, %116 : vector<1x128xf32>
    %cst_59 = arith.constant 0.000000e+00 : f32
    %118 = vector.broadcast %cst_59 : f32 to vector<1x128xf32>
    %119 = arith.maximumf %117, %118 : vector<1x128xf32>
    %120 = vector.broadcast %113 : vector<1x128xf32> to vector<128x128xf32>
    %121 = arith.subf %108, %120 : vector<128x128xf32>
    %cst_60 = arith.constant 9.99999974E-6 : f32
    %122 = vector.broadcast %cst_60 : f32 to vector<1x128xf32>
    %123 = arith.addf %119, %122 : vector<1x128xf32>
    %124 = math.rsqrt %123 : vector<1x128xf32>
    %125 = vector.broadcast %124 : vector<1x128xf32> to vector<128x128xf32>
    %126 = arith.mulf %121, %125 : vector<128x128xf32>
    %c0_61 = arith.constant 0 : index
    %c0_62 = arith.constant 0 : index
    %c0_63 = arith.constant 0 : index
    %127 = vector.load %arg15[%c0_61, %c0_62, %c0_63] : memref<1x1x128xf32, #tpu.memory_space<vmem>>, vector<1x1x128xf32>
    %128 = vector.shape_cast %127 : vector<1x1x128xf32> to vector<1x128xf32>
    %129 = vector.broadcast %128 : vector<1x128xf32> to vector<128x128xf32>
    %130 = arith.mulf %126, %129 : vector<128x128xf32>
    %c0_64 = arith.constant 0 : index
    %c0_65 = arith.constant 0 : index
    %c0_66 = arith.constant 0 : index
    %131 = vector.load %arg16[%c0_64, %c0_65, %c0_66] : memref<1x1x128xf32, #tpu.memory_space<vmem>>, vector<1x1x128xf32>
    %132 = vector.shape_cast %131 : vector<1x1x128xf32> to vector<1x128xf32>
    %133 = vector.broadcast %132 : vector<1x128xf32> to vector<128x128xf32>
    %134 = arith.addf %130, %133 : vector<128x128xf32>
    %cst_67 = arith.constant 5.000000e-01 : f32
    %135 = vector.broadcast %cst_67 : f32 to vector<128x128xf32>
    %136 = arith.mulf %135, %134 : vector<128x128xf32>
    %cst_68 = arith.constant 5.000000e-01 : f32
    %137 = vector.broadcast %cst_68 : f32 to vector<128x128xf32>
    %138 = arith.mulf %137, %3 : vector<128x128xf32>
    %139 = arith.addf %136, %138 : vector<128x128xf32>
    %140 = vector.broadcast %9 : vector<128x1xf32> to vector<128x128xf32>
    %141 = arith.mulf %139, %140 : vector<128x128xf32>
    %c0_69 = arith.constant 0 : index
    %c0_70 = arith.constant 0 : index
    %142 = vector.load %arg17[%c0_69, %c0_70] : memref<128x128xf32, #tpu.memory_space<vmem>>, vector<128x128xf32>
    tpu.vector_store %arg17[%c0_69, %c0_70], %141 {strides = array<i32>} : memref<128x128xf32, #tpu.memory_space<vmem>>, vector<128x128xf32>,
    return
  }
  func.func @transform_0(%arg0: i32) -> (i32, i32) {
    %c0_i32 = arith.constant 0 : i32
    %c0_i32_0 = arith.constant 0 : i32
    %c0_i32_1 = arith.constant 0 : i32
    return %c0_i32, %c0_i32_0 : i32, i32
  }
  func.func @transform_3(%arg0: i32) -> (i32, i32) {
    %c0_i32 = arith.constant 0 : i32
    %c0_i32_0 = arith.constant 0 : i32
    %c0_i32_1 = arith.constant 0 : i32
    return %c0_i32, %c0_i32_0 : i32, i32
  }
  func.func @transform_4(%arg0: i32) -> (i32, i32) {
    %c0_i32 = arith.constant 0 : i32
    %c0_i32_0 = arith.constant 0 : i32
    %c0_i32_1 = arith.constant 0 : i32
    return %c0_i32, %c0_i32_0 : i32, i32
  }
  func.func @transform_5(%arg0: i32) -> (i32, i32) {
    %c0_i32 = arith.constant 0 : i32
    %c0_i32_0 = arith.constant 0 : i32
    %c0_i32_1 = arith.constant 0 : i32
    return %c0_i32, %c0_i32_0 : i32, i32
  }
  func.func @transform_6(%arg0: i32) -> (i32, i32) {
    %c0_i32 = arith.constant 0 : i32
    %c0_i32_0 = arith.constant 0 : i32
    %c0_i32_1 = arith.constant 0 : i32
    return %c0_i32, %c0_i32_0 : i32, i32
  }
  func.func @transform_7(%arg0: i32) -> (i32, i32, i32) {
    %c0_i32 = arith.constant 0 : i32
    %c0_i32_0 = arith.constant 0 : i32
    %c0_i32_1 = arith.constant 0 : i32
    return %arg0, %c0_i32, %c0_i32_0 : i32, i32, i32
  }
  func.func @transform_8(%arg0: i32) -> (i32, i32, i32) {
    %c0_i32 = arith.constant 0 : i32
    %c0_i32_0 = arith.constant 0 : i32
    %c0_i32_1 = arith.constant 0 : i32
    return %arg0, %c0_i32, %c0_i32_0 : i32, i32, i32
  }
  func.func @transform_9(%arg0: i32) -> (i32, i32, i32) {
    %c0_i32 = arith.constant 0 : i32
    %c0_i32_0 = arith.constant 0 : i32
    %c0_i32_1 = arith.constant 0 : i32
    return %arg0, %c0_i32, %c0_i32_0 : i32, i32, i32
  }
  func.func @transform_10(%arg0: i32) -> (i32, i32, i32) {
    %c0_i32 = arith.constant 0 : i32
    %c0_i32_0 = arith.constant 0 : i32
    %c0_i32_1 = arith.constant 0 : i32
    return %arg0, %c0_i32, %c0_i32_0 : i32, i32, i32
  }
  func.func @transform_11(%arg0: i32) -> (i32, i32, i32) {
    %c0_i32 = arith.constant 0 : i32
    %c0_i32_0 = arith.constant 0 : i32
    %c0_i32_1 = arith.constant 0 : i32
    return %arg0, %c0_i32, %c0_i32_0 : i32, i32, i32
  }
  func.func @transform_12(%arg0: i32) -> (i32, i32, i32) {
    %c0_i32 = arith.constant 0 : i32
    %c0_i32_0 = arith.constant 0 : i32
    %c0_i32_1 = arith.constant 0 : i32
    return %arg0, %c0_i32, %c0_i32_0 : i32, i32, i32
  }
  func.func @transform_13(%arg0: i32) -> (i32, i32, i32) {
    %c0_i32 = arith.constant 0 : i32
    %c0_i32_0 = arith.constant 0 : i32
    %c0_i32_1 = arith.constant 0 : i32
    return %arg0, %c0_i32, %c0_i32_0 : i32, i32, i32
  }
  func.func @transform_14(%arg0: i32) -> (i32, i32, i32) {
    %c0_i32 = arith.constant 0 : i32
    %c0_i32_0 = arith.constant 0 : i32
    %c0_i32_1 = arith.constant 0 : i32
    return %arg0, %c0_i32, %c0_i32_0 : i32, i32, i32
  }
  func.func @transform_15(%arg0: i32) -> (i32, i32, i32) {
    %c0_i32 = arith.constant 0 : i32
    %c0_i32_0 = arith.constant 0 : i32
    %c0_i32_1 = arith.constant 0 : i32
    return %arg0, %c0_i32, %c0_i32_0 : i32, i32, i32
  }
  func.func @transform_16(%arg0: i32) -> (i32, i32) {
    %c0_i32 = arith.constant 0 : i32
    %c0_i32_0 = arith.constant 0 : i32
    %c0_i32_1 = arith.constant 0 : i32
    return %c0_i32, %c0_i32_0 : i32, i32
  }
}

</mosaic_0001>

<bundles_post_ra>
// kernel: tpu_custom_call.1
= control target key start
LH: loop header
LB: loop body
LE: loop exit
PB: predicated region body
PF: predicated region fallthrough
CT: control target
= control target key end

     0   :  { %s5558_s0 = inlined_call_operand.vmem [shape: f32[128,128], index: 0, kind: input, shape index: {}]   ;;  %s5559_s1 = inlined_call_operand.hbm [shape: bf16[128,128], index: 1, kind: input, shape index: {}]   ;;  %s5560_s2 = inlined_call_operand.hbm [shape: f32[128,128], index: 2, kind: input, shape index: {}]   ;;  %s5561_s3 = inlined_call_operand.vmem [shape: f32[128,1], index: 3, kind: input, shape index: {}]   ;;  %s5562_s4 = inlined_call_operand.vmem [shape: f32[128,1], index: 4, kind: input, shape index: {}]   ;;  %s5563_s5 = inlined_call_operand.vmem [shape: f32[128,1], index: 5, kind: input, shape index: {}]   ;;  %s5564_s6 = inlined_call_operand.vmem [shape: f32[1,128], index: 6, kind: input, shape index: {}]   ;;  %s5565_s7 = inlined_call_operand.vmem [shape: bf16[2,128,256], index: 7, kind: input, shape index: {}]   ;;  %s5566_s8 = inlined_call_operand.vmem [shape: bf16[2,2,128], index: 8, kind: input, shape index: {}]   ;;  %s5567_s9 = inlined_call_operand.vmem [shape: f32[2,2,128], index: 9, kind: input, shape index: {}]   ;;  %s5568_s10 = inlined_call_operand.hbm [shape: bf16[2,256,128], index: 10, kind: input, shape index: {}]   ;;  %s5569_s11 = inlined_call_operand.vmem [shape: f32[2,1,128], index: 11, kind: input, shape index: {}]   ;;  %s5570_s12 = inlined_call_operand.hbm [shape: bf16[2,256,128], index: 12, kind: input, shape index: {}]   ;;  %s5571_s13 = inlined_call_operand.vmem [shape: f32[2,1,128], index: 13, kind: input, shape index: {}]   ;;  %s5572_s14 = inlined_call_operand.vmem [shape: f32[2,1,128], index: 14, kind: input, shape index: {}]   ;;  %s5573_s15 = inlined_call_operand.vmem [shape: f32[2,1,128], index: 15, kind: input, shape index: {}]   ;;  %s5574_s16 = inlined_call_operand.hbm [shape: f32[128,128], index: 16, kind: output, shape index: {}]  }
   0x1   :  { %5585 = sst [smem:[#allocation27_spill]] %s5558_s0 }
   0x2   :  { %5586 = sst [smem:[#allocation28_spill]] %s5563_s5 }
   0x3   :  { %5587 = sst [smem:[#allocation29_spill]] %s5564_s6 }
   0x4   :  { %5588 = sst [smem:[#allocation30_spill]] %s5565_s7 }
   0x5   :  { %5589 = sst [smem:[#allocation31_spill]] %s5567_s9 }
   0x6   :  { %5590 = sst [smem:[#allocation32_spill]] %s5568_s10 }
   0x7   :  { %5591 = sst [smem:[#allocation33_spill]] %s5570_s12 }
   0x8   :  { %5592 = sst [smem:[#allocation34_spill]] %s5574_s16 }
   0x9   :  { %21 = vsyncpa [#allocation6], 0 }
   0xa   :  { %23 = vsyncpa [#allocation6 + $0x1], 0 }
   0xb   :  { %24 = vsyncpa [#allocation9], 0 }
   0xc   :  { %26 = vsyncpa [#allocation9 + $0x1], 0 }
   0xd   :  { %27 = vsyncpa [#allocation7], 0  ;;  %s4349_s21 = smov 0   ;;  %s4351_s22 = smov 0  }
   0xe   :  { %s4353_s23 = smov 0   ;;  %s4355_s24 = smov 0  }
   0xf LB: > { %5593 = sst [smem:[#allocation22_spill]] %s4241_s22  ;;  %s4368_s25 = sadd.s32 4294967295, %s4249_s24   ;;  %s4249_s24 = sphi %s4355_s24, %s5621_s24   ;;  %s4245_s23 = sphi %s4353_s23, %s5624_s23   ;;  %s4241_s22 = sphi %s4351_s22, %s5623_s22   ;;  %s4237_s21 = sphi %s4349_s21, %s5622_s21  }
  0x10   : > { %5594 = sst [smem:[#allocation23_spill]] %s4245_s23  ;;  %s4371_s26 = sadd.s32 1, %s4249_s24  }
  0x11   : > { %5595 = sst [smem:[#allocation24_spill]] %s4371_s26  ;;  %s220_s27 = ssub.s32 %s4249_s24, %s4371_s26 }
  0x12   : > { %s223_s28 = sadd.s32 1, %s4245_s23  ;;  %p221_p0 = scmp.eq.s32.totalorder %s220_s27, 0 }
  0x13   : > { %p230_p1 = scmp.ne.s32.totalorder %s4245_s23, %s4241_s22  ;;  %p231_p2 = scmp.eq.s32.totalorder %s4249_s24, 0 }
  0x14   : > { %p236_p3 = scmp.ne.s32.totalorder %s4241_s22, %s4237_s21  ;;  %p237_p5 = scmp.eq.s32.totalorder %s4368_s25, 0 }
  0x15   : > { %s4381_s29 = scalar_select %p221_p0, %s4245_s23, %s223_s28  }
  0x16   : > { %p232_p4 = por %p231_p2, %p230_p1  ;;  %p3823_p6 = scmp.lt.s32.totalorder %s4249_s24, 2 }
  0x17   : > { %5596 = sst [smem:[#allocation25_spill]] %s4381_s29  ;;  %p4385_p7 = por %p237_p5, %p236_p3 }
  0x18   : > { %s4390_s0 = sand.u32 1, %s4245_s23   ;;  %s5578_s18 = sshll.u32 %s4249_s24, 11 }
  0x19   : > { %s5597_s30 = scalar_select %p4385_p7, 1, 0 }
  0x1a   : > { %s5577_s17 = sshll.u32 %s4390_s0, 7  ;;  %s5598_s10 = sld [smem:[#allocation32_spill]] }
  0x1b   : > { %s451_s27 = scalar_lea.vmem [#allocation5], %s5577_s17  ;;  %p4405_p8 = pnand %p3823_p6, %p232_p4 }
  0x1c   : > { %s458_s28 = sshll.u32 %s451_s27, 4  ;;  %s4403_s28 = int_to_ptr.vmem [resolvable:$true] %s458_s28 }
  0x1d   : > { %p4075_p11 = pneg %p4405_p8 }
  0x20   : > { %s4399_s21 = scalar_lea.hbm %s5598_s10, %s5578_s18  ;;  %s4078_s17 = scalar_lea.hbm %s5598_s10, 4096 }
  0x21   : > { %s4073_s19 = scalar_lea.hbm %s4399_s21, 2048  ;;  %p4079_p0 = scmp.lt.u32.totalorder %s4399_s21, %s5598_s10 }
  0x22   : > { %p4074_p10 = scmp.ne.s32.totalorder %s4399_s21, %s4073_s19  ;;  %p4080_p1 = scmp.lt.u32.totalorder %s4078_s17, %s4073_s19 }
  0x23   : > { %p4082_p3 = scmp.lt.u32.totalorder %s4073_s19, %s4399_s21 }
  0x24   : > { %p4076_p12 = pnand %p4075_p11, %p4074_p10  ;;  %p4081_p2 = por %p4080_p1, %p4079_p0 }
  0x26   : > { %p4077_p13 = pneg %p4076_p12  ;;  %p4083_p4 = por %p4082_p3, %p4081_p2 }
  0x28   : > { %p4084_p5 = pnand %p4083_p4, %p4077_p13 }
  0x2a   : > { %4087 = shalt.err (!%p4084_p5)
}
  0x2b   : > { %s4088_s23 = scalar_lea.vmem %s4403_s28, 2048  ;;  %s4251_s20 = smov [#allocation5]  }
  0x2c   : > { %p4089_p6 = scmp.ne.s32.totalorder %s4403_s28, %s4088_s23  ;;  %s4093_s27 = sshll.u32 %s4251_s20, 4  ;;  %s4094_s27 = int_to_ptr.vmem [resolvable:$false] %s4093_s27 }
  0x2d   : > { %s4095_s26 = scalar_lea.vmem %s4094_s27, 4096  ;;  %p4096_p9 = scmp.lt.s32.totalorder %s4403_s28, %s4094_s27 }
  0x2e   : > { %p4091_p10 = pnand %p4089_p6, %p4075_p11  ;;  %p4097_p0 = scmp.lt.s32.totalorder %s4095_s26, %s4088_s23 }
  0x30   : > { %p4092_p12 = pneg %p4091_p10  ;;  %p4098_p1 = por %p4097_p0, %p4096_p9 }
  0x32   : > { %p4099_p2 = pnand %p4098_p1, %p4092_p12 }
  0x34   : > { %4102 = shalt.err (!%p4099_p2)
}
  0x35   : > { %s4252_s17 = smov 64   ;;  %s4253_s18 = smov 4  }
  0x36   : > { %s5600_s23 = scalar_lea.sflag [#allocation6], %s4390_s0  ;;  %p511_p9 = scmp.lt.s32.totalorder %s4249_s24, 3 }
  0x37   : > { %3819 = dma.hbm_to_vmem [thread:$0]  (!%p4405_p8), %s4399_s21, 2048, %s4403_s28, %s5600_s23, %s4252_s17, %s4252_s17, %s4253_s18  }
  0x38   : > { %s5601_s19 = sshll.u32 %s4249_s24, 11  ;;  %s5602_s12 = sld [smem:[#allocation33_spill]] }
  0x39   : > { %p5603_p13 = scmp.ge.s32.totalorder %s4249_s24, 1  ;;  %s5605_s16 = sshll.u32 %s4390_s0, 7 }
  0x3a   : > { %s478_s6 = scalar_lea.vmem [#allocation8], %s5605_s16  ;;  %s475_s21 = scalar_lea.sflag [#allocation9], %s4390_s0 }
  0x3b   : > { %p4451_p3 = pnand %p5603_p13, %p511_p9  ;;  %s485_s5 = sshll.u32 %s478_s6, 4  ;;  %s4457_s5 = int_to_ptr.vmem [resolvable:$true] %s485_s5 }
  0x3e   : > { %s4447_s26 = scalar_lea.hbm %s5602_s12, %s5601_s19  ;;  %s4108_s19 = scalar_lea.hbm %s5602_s12, 4096 }
  0x3f   : > { %s4103_s28 = scalar_lea.hbm %s4447_s26, 2048  ;;  %p4109_p10 = scmp.lt.u32.totalorder %s4447_s26, %s5602_s12 }
  0x40   : > { %p4104_p4 = scmp.ne.s32.totalorder %s4447_s26, %s4103_s28  ;;  %p4110_p12 = scmp.lt.u32.totalorder %s4108_s19, %s4103_s28 }
  0x41   : > { %p4112_p1 = scmp.lt.u32.totalorder %s4103_s28, %s4447_s26 }
  0x42   : > { %p4106_p5 = pnand %p4104_p4, %p4075_p11  ;;  %p4111_p0 = por %p4110_p12, %p4109_p10 }
  0x44   : > { %p4107_p6 = pneg %p4106_p5  ;;  %p4113_p2 = por %p4112_p1, %p4111_p0 }
  0x46   : > { %p4114_p9 = pnand %p4113_p2, %p4107_p6 }
  0x48   : > { %4117 = shalt.err (!%p4114_p9)
}
  0x49   : > { %s4118_s6 = scalar_lea.vmem %s4457_s5, 2048  ;;  %s4254_s16 = smov [#allocation8]  }
  0x4a   : > { %p4119_p13 = scmp.ne.s32.totalorder %s4457_s5, %s4118_s6  ;;  %s4123_s24 = sshll.u32 %s4254_s16, 4  ;;  %s4124_s24 = int_to_ptr.vmem [resolvable:$false] %s4123_s24 }
  0x4b   : > { %s4125_s23 = scalar_lea.vmem %s4124_s24, 4096  ;;  %p4126_p7 = scmp.lt.s32.totalorder %s4457_s5, %s4124_s24 }
  0x4c   : > { %p4121_p4 = pnand %p4119_p13, %p4075_p11  ;;  %p4127_p10 = scmp.lt.s32.totalorder %s4125_s23, %s4118_s6 }
  0x4e   : > { %p4122_p5 = pneg %p4121_p4  ;;  %p4128_p12 = por %p4127_p10, %p4126_p7 }
  0x50   : > { %p4129_p0 = pnand %p4128_p12, %p4122_p5 }
  0x52   : > { %4132 = shalt.err (!%p4129_p0)
}
  0x53   : > { %3822 = dma.hbm_to_vmem [thread:$0]  (!%p4405_p8), %s4447_s26, 2048, %s4457_s5, %s475_s21, %s4252_s17, %s4252_s17, %s4253_s18  }
  0x54   : > { %515 = sbr.rel (%p4451_p3) target bundleno = 1814 (0x716), region = 76 }
  0x5b   : > { %s517_s28 = sand.u32 1, %s4241_s22   ;;  %p5606_p7 = scmp.ne.s32.totalorder %s5597_s30, 0 }
  0x5c   : > { %s3336_s19 = sshll.u32 %s517_s28, 7  ;;  %s518_s20 = scalar_lea.sflag [#allocation6], %s517_s28 }
  0x5d   : > { %s4491_s27 = scalar_lea.vmem [#allocation5], %s3336_s19 }
  0x5e   : > { %4220 = dma.done.wait (%p5606_p7), %s518_s20, 2048  }
  0x5f   : > { %4222 = vsyncadd (%p5606_p7), %s518_s20, 4294965248  ;;  %s527_s29 = scalar_lea.sflag [#allocation9], %s517_s28  ;;  %s4497_s0 = scalar_lea.vmem [#allocation8], %s3336_s19 }
  0x60   : > { %4224 = dma.done.wait (%p5606_p7), %s527_s29, 2048  }
  0x61   : > { %4226 = vsyncadd (%p5606_p7), %s527_s29, 4294965248  ;;  %p599_p8 = scmp.lt.s32.totalorder %s4368_s25, 1  ;;  %s5607_s7 = sld [smem:[#allocation30_spill]] }
  0x62   : > { %s5608_s9 = sld [smem:[#allocation31_spill]]  ;;  %p3341_p11 = scmp.ne.s32.totalorder %s4368_s25, 0 }
  0x63   : > { %s4505_s5 = scalar_select %p599_p8, %s4368_s25, 1 }
  0x64   : > { %627 = sbr.rel (%p3341_p11) target bundleno = 143 (0x8f), region = 88  ;;  %s5609_s23 = sld [smem:[#allocation27_spill]] (!%p3341_p11) }
  0x65   : > { %s3402_s10 = sshll.u32 %s4505_s5, 7  ;;  %s3340_s16 = sshll.u32 %s4505_s5, 1 }
  0x66   : > { %s4255_s26 = smov (!%p3341_p11), [#allocation2]   ;;  %s4256_s21 = smov (!%p3341_p11), [#allocation3]  }
  0x67   : > { %s4515_s6 = scalar_lea.vmem %s5607_s7, %s3402_s10  ;;  %s635_s18 = sshll.u32 (!%p3341_p11), %s4255_s26, 4  ;;  %s636_s18 = int_to_ptr.vmem [resolvable:$true] %s635_s18 }
  0x68   : > { %s4521_s28 = scalar_lea.vmem %s5608_s9, %s3340_s16  ;;  %s647_s10 = sshll.u32 (!%p3341_p11), %s4256_s21, 4  ;;  %s4558_s10 = int_to_ptr.vmem [resolvable:$true] %s647_s10 }
  0x69   : > { %s4133_s24 = scalar_lea.hbm (!%p3341_p11), %s5559_s1, 1024 }
  0x6a   : > { %s5610_s9 = smov (!%p3341_p11), %s5609_s23  ;;  %v651_v0 = vld [vmem:[%s5609_s23] sm:$0xff] (!%p3341_p11)  ;;  %p4134_p3 = scmp.ne.s32.totalorder (!%p3341_p11), %s5559_s1, %s4133_s24 }
  0x6b   : > { %v652_v1 = vld [vmem:[%s5610_s9 + $0x8] sm:$0xff]  ;;  %v653_v2 = vld [vmem:[%s5610_s9 + $0x10] sm:$0xff]  ;;  %667 = vst [vmem:[#allocation10] sm:$0xff] %v651_v0  ;;  %v654_v3 = vld [vmem:[%s5610_s9 + $0x18] sm:$0xff]  ;;  %p4137_p6 = scmp.lt.u32.totalorder %s4133_s24, %s5559_s1 }
  0x6c   : > { %668 = vst [vmem:[#allocation10 + $0x8] sm:$0xff] %v652_v1  ;;  %669 = vst [vmem:[#allocation10 + $0x10] sm:$0xff] %v653_v2  ;;  %v655_v4 = vld [vmem:[%s5610_s9 + $0x20] sm:$0xff]  ;;  %v656_v5 = vld [vmem:[%s5610_s9 + $0x28] sm:$0xff] }
  0x6d   : > { %670 = vst [vmem:[#allocation10 + $0x18] sm:$0xff] %v654_v3  ;;  %671 = vst [vmem:[#allocation10 + $0x20] sm:$0xff] %v655_v4  ;;  %v657_v6 = vld [vmem:[%s5610_s9 + $0x30] sm:$0xff]  ;;  %v658_v7 = vld [vmem:[%s5610_s9 + $0x38] sm:$0xff]  ;;  %p4139_p1 = pnand %p4137_p6, %p4134_p3 }
  0x6e   : > { %672 = vst [vmem:[#allocation10 + $0x28] sm:$0xff] %v656_v5  ;;  %v659_v8 = vld [vmem:[%s5610_s9 + $0x40] sm:$0xff] }
  0x6f   : > { %4142 = shalt.err (!%p4139_p1)  }
  0x70   : > { %s4143_s21 = scalar_lea.vmem %s636_s18, 1024  ;;  %p4148_p9 = scmp.lt.s32.totalorder %s636_s18, %s636_s18 }
  0x71   : > { %p4144_p2 = scmp.ne.s32.totalorder %s636_s18, %s4143_s21  ;;  %p4149_p13 = scmp.lt.s32.totalorder %s4143_s21, %s4143_s21 }
  0x73   : > { %p4150_p4 = por %p4149_p13, %p4148_p9 }
  0x75   : > { %p4151_p5 = pnand %p4150_p4, %p4144_p2 }
  0x77   : > { %4154 = shalt.err (!%p4151_p5)  }
  0x78   : > { %638 = dma.hbm_to_vmem [thread:$0]  %s5559_s1, 1024, %s636_s18, [#allocation4]  ;;  %673 = vst [vmem:[#allocation10 + $0x30] sm:$0xff] %v657_v6  ;;  %674 = vst [vmem:[#allocation10 + $0x38] sm:$0xff] %v658_v7  ;;  %v660_v9 = vld [vmem:[%s5610_s9 + $0x48] sm:$0xff]  ;;  %v661_v10 = vld [vmem:[%s5610_s9 + $0x50] sm:$0xff] }
  0x79   : > { %675 = vst [vmem:[#allocation10 + $0x40] sm:$0xff] %v659_v8  ;;  %v662_v11 = vld [vmem:[%s5610_s9 + $0x58] sm:$0xff]  ;;  %s4155_s23 = scalar_lea.hbm %s5560_s2, 2048 }
  0x7a   : > { %p4156_p10 = scmp.ne.s32.totalorder %s5560_s2, %s4155_s23  ;;  %p4159_p12 = scmp.lt.u32.totalorder %s4155_s23, %s5560_s2 }
  0x7c   : > { %p4161_p0 = pnand %p4159_p12, %p4156_p10 }
  0x7e   : > { %4164 = shalt.err (!%p4161_p0)  }
  0x7f   : > { %s4165_s7 = scalar_lea.vmem %s4558_s10, 2048  ;;  %p4170_p8 = scmp.lt.s32.totalorder %s4558_s10, %s4558_s10 }
  0x80   : > { %p4166_p7 = scmp.ne.s32.totalorder %s4558_s10, %s4165_s7  ;;  %p4171_p11 = scmp.lt.s32.totalorder %s4165_s7, %s4165_s7 }
  0x82   : > { %p4172_p3 = por %p4171_p11, %p4170_p8 }
  0x84   : > { %p4173_p6 = pnand %p4172_p3, %p4166_p7 }
  0x86   : > { %4176 = shalt.err (!%p4173_p6)  }
  0x87   : > { %650 = dma.hbm_to_vmem [thread:$0]  %s5560_s2, 2048, %s4558_s10, [#allocation4 + $0x1]  ;;  %676 = vst [vmem:[#allocation10 + $0x48] sm:$0xff] %v660_v9  ;;  %677 = vst [vmem:[#allocation10 + $0x50] sm:$0xff] %v661_v10  ;;  %v663_v12 = vld [vmem:[%s5610_s9 + $0x60] sm:$0xff]  ;;  %v664_v13 = vld [vmem:[%s5610_s9 + $0x68] sm:$0xff] }
  0x88   : > { %678 = vst [vmem:[#allocation10 + $0x58] sm:$0xff] %v662_v11  ;;  %v665_v14 = vld [vmem:[%s5610_s9 + $0x70] sm:$0xff]  ;;  %679 = vst [vmem:[#allocation10 + $0x60] sm:$0xff] %v663_v12  ;;  %v666_v15 = vld [vmem:[%s5610_s9 + $0x78] sm:$0xff] }
  0x89   : > { %680 = vst [vmem:[#allocation10 + $0x68] sm:$0xff] %v664_v13  ;;  %681 = vst [vmem:[#allocation10 + $0x70] sm:$0xff] %v665_v14 }
  0x8a   : > { %682 = vst [vmem:[#allocation10 + $0x78] sm:$0xff] %v666_v15 }
  0x8b   : > { %4227 = dma.done.wait [#allocation4], 1024 }
  0x8c   : > { %4228 = vsyncadd [#allocation4], 4294966272 }
  0x8d   : > { %4229 = dma.done.wait [#allocation4 + $0x1], 2048 }
  0x8e   : > { %4230 = vsyncadd [#allocation4 + $0x1], 4294965248 }
  0x8f PF: > { %v3871_v16 = vld [vmem:[%s4515_s6 + $0x4] ss:$8 sps:$4 sm:$0xff]   ;;  %v3873_v17 = vld [vmem:[%s4515_s6] ss:$8 sps:$4 sm:$0xff]   ;;  %v4257_v18 = vmov 0   ;;  %v4258_v19 = vmov 0.0   ;;  %s5611_s19 = scalar_lea.vmem %s5566_s8, %s4505_s5  ;;  %v1038_v59 = vlaneseq  ;;  %s5616_s29 = scalar_lea.vmem %s5572_s14, %s4505_s5 }
  0x90   : > { %916 = vmatprep.mubr.bf16.mxu0 %v4257_v18  ;;  %3606 = vmatprep.subr.bf16.mxu1 %v4258_v19  ;;  %v3874_v20 = vld [vmem:[%s4515_s6 + $0x14] ss:$8 sps:$4 sm:$0xff]   ;;  %vm4259_vm0 = vmmov 0   ;;  %v3876_v21 = vld [vmem:[%s4515_s6 + $0x10] ss:$8 sps:$4 sm:$0xff]   ;;  %v691_v27 = vld [vmem:[#allocation10 + $0x8] sm:$0xff]  ;;  %s5618_s30 = scalar_lea.vmem %s5573_s15, %s4505_s5 }
  0x91   : > { %884 = vmatprep.subr.bf16.mxu0 %v3871_v16  ;;  %3622 = vmatprep.mubr.msk.bf16.mxu1 %vm4259_vm0, %v4258_v19  ;;  %v3877_v22 = vld [vmem:[%s4515_s6 + $0x24] ss:$8 sps:$4 sm:$0xff]   ;;  %v3879_v23 = vld [vmem:[%s4515_s6 + $0x20] ss:$8 sps:$4 sm:$0xff]   ;;  %v3880_v24 = vld [vmem:[%s4515_s6 + $0x34] ss:$8 sps:$4 sm:$0xff]  }
  0x92   : > { %885 = vmatpush1.bf16.msra.mxu0 %v3873_v17  ;;  %3870 = vset.pattern.permute.xlu1 %v4257_v18  ;;  %v3882_v26 = vld [vmem:[%s4515_s6 + $0x30] ss:$8 sps:$4 sm:$0xff]   ;;  %v3883_v28 = vld [vmem:[%s4515_s6 + $0x44] ss:$8 sps:$4 sm:$0xff]   ;;  %v3885_v30 = vld [vmem:[%s4515_s6 + $0x40] ss:$8 sps:$4 sm:$0xff]  }
  0x93   : > { %886 = vmatprep.subr.bf16.mxu0 %v3874_v20  ;;  %3869 = vset.pattern.permute.xlu0 %v4257_v18  ;;  %v3886_v31 = vld [vmem:[%s4515_s6 + $0x54] ss:$8 sps:$4 sm:$0xff]   ;;  %v3888_v33 = vld [vmem:[%s4515_s6 + $0x50] ss:$8 sps:$4 sm:$0xff]   ;;  %v3889_v35 = vld [vmem:[%s4515_s6 + $0x64] ss:$8 sps:$4 sm:$0xff]  }
  0x94   : > { %v692_v32 = vld [vmem:[#allocation10 + $0x10] sm:$0xff]  ;;  %v693_v34 = vld [vmem:[#allocation10 + $0x18] sm:$0xff]  ;;  %v3891_v37 = vld [vmem:[%s4515_s6 + $0x60] ss:$8 sps:$4 sm:$0xff]   ;;  %v4660_v60 = vshrl.u32 %v1038_v59, 7  ;;  %s5612_s10 = sld [smem:[#allocation28_spill]] }
  0x95   : > { %v707_v36 = vpack.c.bf16 %v693_v34, %v692_v32  ;;  %v3892_v38 = vld [vmem:[%s4515_s6 + $0x74] ss:$8 sps:$4 sm:$0xff]   ;;  %v694_v39 = vld [vmem:[#allocation10 + $0x20] sm:$0xff]  ;;  %v695_v40 = vld [vmem:[#allocation10 + $0x28] sm:$0xff]  ;;  %s5615_s7 = sld [smem:[#allocation29_spill]]  ;;  %p3824_p1 = scmp.eq.s32.totalorder %s4368_s25, 1 }
  0x96   : > { %887 = vmatpush1.bf16.msra.mxu0 %v3876_v21  ;;  %v690_v25 = vld [vmem:[#allocation10] sm:$0xff]  ;;  %v3894_v41 = vld [vmem:[%s4515_s6 + $0x70] ss:$8 sps:$4 sm:$0xff]   ;;  %v708_v42 = vpack.c.bf16 %v695_v40, %v694_v39  ;;  %v699_v47 = vld [vmem:[#allocation10 + $0x48] sm:$0xff]  ;;  %v4663_v61 = vsub.s32 0, %v4660_v60  ;;  %v1449_v63 = vsub.s32 1, %v4660_v60  ;;  %s5613_s6 = scalar_lea.vmem %s5571_s13, %s4505_s5 }
  0x97   : > { %888 = vmatprep.subr.bf16.mxu0 %v3877_v22  ;;  %v706_v29 = vpack.c.bf16 %v691_v27, %v690_v25  ;;  %v696_v43 = vld [vmem:[#allocation10 + $0x30] sm:$0xff]  ;;  %v697_v44 = vld [vmem:[#allocation10 + $0x38] sm:$0xff]  ;;  %v698_v46 = vld [vmem:[#allocation10 + $0x40] sm:$0xff] }
  0x98   : > { %v709_v45 = vpack.c.bf16 %v697_v44, %v696_v43  ;;  %v710_v48 = vpack.c.bf16 %v699_v47, %v698_v46  ;;  %v700_v49 = vld [vmem:[#allocation10 + $0x50] sm:$0xff]  ;;  %v701_v50 = vld [vmem:[#allocation10 + $0x58] sm:$0xff]  ;;  %v702_v52 = vld [vmem:[#allocation10 + $0x60] sm:$0xff] }
  0x99   : > { %3607 = vmatpush3.bf16.xpose.msra.mxu1 %v706_v29  ;;  %v711_v51 = vpack.c.bf16 %v701_v50, %v700_v49  ;;  %v703_v53 = vld [vmem:[#allocation10 + $0x68] sm:$0xff]  ;;  %v704_v55 = vld [vmem:[#allocation10 + $0x70] sm:$0xff]  ;;  %v705_v56 = vld [vmem:[#allocation10 + $0x78] sm:$0xff] }
  0x9a   : > { %889 = vmatpush1.bf16.msra.mxu0 %v3879_v23  ;;  %3608 = vmatprep.subr.bf16.mxu1 %v4258_v19  ;;  %v712_v54 = vpack.c.bf16 %v703_v53, %v702_v52  ;;  %v713_v57 = vpack.c.bf16 %v705_v56, %v704_v55  ;;  %v997_v58 = vld [vmem:[%s5611_s19] sm:$0x1] }
  0x9b   : > { %890 = vmatprep.subr.bf16.mxu0 %v3880_v24  ;;  %v787_v62 = vld [vmem:[%s4521_s28] sm:$0x3]  ;;  %s5614_s28 = scalar_lea.vmem %s5569_s11, %s4505_s5  ;;  %s4261_s5 = smov [#allocation10]  }
  0x9c   : > { %v4668_v0 = vrot.slane %v787_v62, %v4663_v61  ;;  %v4672_v1 = vrot.slane %v787_v62, %v1449_v63  ;;  %s3168_s16 = sshll.u32 %s4261_s5, 4  ;;  %s5516_s16 = int_to_ptr.vmem [resolvable:$true] %s3168_s16 }
  0x9d   : > { %s4177_s24 = scalar_lea.vmem %s5516_s16, 2048  ;;  %p4184_p4 = scmp.lt.s32.totalorder %s5516_s16, %s5516_s16 }
  0x9e   : > { %891 = vmatpush1.bf16.msra.mxu0 %v3882_v26  ;;  %p4178_p2 = scmp.ne.s32.totalorder %s5516_s16, %s4177_s24  ;;  %p4185_p5 = scmp.lt.s32.totalorder %s4177_s24, %s4177_s24 }
  0x9f   : > { %892 = vmatprep.subr.bf16.mxu0 %v3883_v28 }
  0xa0   : > { %p4179_p9 = pnand %p4178_p2, %p3824_p1  ;;  %p4186_p10 = por %p4185_p5, %p4184_p4 }
  0xa1   : > { %3609 = vmatpush3.bf16.xpose.msra.mxu1 %v707_v36 }
  0xa2   : > { %893 = vmatpush1.bf16.msra.mxu0 %v3885_v30  ;;  %3610 = vmatprep.subr.bf16.mxu1 %v4258_v19  ;;  %p4180_p13 = pneg %p4179_p9 }
  0xa3   : > { %894 = vmatprep.subr.bf16.mxu0 %v3886_v31 }
  0xa4   : > { %p4187_p12 = pnand %p4186_p10, %p4180_p13 }
  0xa6   : > { %895 = vmatpush1.bf16.msra.mxu0 %v3888_v33 }
  0xa7   : > { %896 = vmatprep.subr.bf16.mxu0 %v3889_v35 }
  0xa9   : > { %3611 = vmatpush3.bf16.xpose.msra.mxu1 %v708_v42 }
  0xaa   : > { %897 = vmatpush1.bf16.msra.mxu0 %v3891_v37  ;;  %3612 = vmatprep.subr.bf16.mxu1 %v4258_v19 }
  0xab   : > { %898 = vmatprep.subr.bf16.mxu0 %v3892_v38 }
  0xae   : > { %899 = vmatpush1.bf16.msra.mxu0 %v3894_v41 }
  0xb1   : > { %917 = vmatmul.mubr.bf16.vlgmr.msra.gmra.mrb[0].mxu0 %v706_v29  ;;  %3613 = vmatpush3.bf16.xpose.msra.mxu1 %v709_v45 }
  0xb2   : > { %926 = vmatprep.mubr.bf16.mxu0 %v4257_v18  ;;  %3614 = vmatprep.subr.bf16.mxu1 %v4258_v19 }
  0xb9   : > { %927 = vmatmul.mubr.bf16.gmra.mrb[4].mxu0 %v707_v36  ;;  %3615 = vmatpush3.bf16.xpose.msra.mxu1 %v710_v48 }
  0xba   : > { %936 = vmatprep.mubr.bf16.mxu0 %v4257_v18  ;;  %3616 = vmatprep.subr.bf16.mxu1 %v4258_v19 }
  0xc1   : > { %937 = vmatmul.mubr.bf16.gmra.mrb[8].mxu0 %v708_v42  ;;  %3617 = vmatpush3.bf16.xpose.msra.mxu1 %v711_v51 }
  0xc2   : > { %946 = vmatprep.mubr.bf16.mxu0 %v4257_v18  ;;  %3618 = vmatprep.subr.bf16.mxu1 %v4258_v19 }
  0xc9   : > { %947 = vmatmul.mubr.bf16.gmra.mrb[12].mxu0 %v709_v45  ;;  %3619 = vmatpush3.bf16.xpose.msra.mxu1 %v712_v54 }
  0xca   : > { %956 = vmatprep.mubr.bf16.mxu0 %v4257_v18  ;;  %3620 = vmatprep.subr.bf16.mxu1 %v4258_v19 }
  0xd1   : > { %957 = vmatmul.mubr.bf16.gmra.mrb[16].mxu0 %v710_v48  ;;  %3621 = vmatpush3.bf16.xpose.msra.mxu1 %v713_v57 }
  0xd2   : > { %966 = vmatprep.mubr.bf16.mxu0 %v4257_v18 }
  0xd8   : > { %3623 = vmatmul.mubr.bf16.vlgmr.msra.gmra.mrb[0].mxu1 %v997_v58 }
  0xd9   : > { %967 = vmatmul.mubr.bf16.gmra.mrb[20].mxu0 %v711_v51 }
  0xda   : > { %976 = vmatprep.mubr.bf16.mxu0 %v4257_v18 }
  0xe1   : > { %977 = vmatmul.mubr.bf16.gmra.mrb[24].mxu0 %v712_v54 }
  0xe2   : > { %986 = vmatprep.mubr.bf16.mxu0 %v4257_v18 }
  0xe9   : > { %987 = vmatmul.mubr.bf16.gmra.mrb[28].mxu0 %v713_v57 }
 0x184   : > { %v918_v2 = vpop.f32.mrb[0].mxu0 }
 0x185   : > { %v920_v3 = vpop.f32.mrb[1].mxu0  ;;  %v1042_v4 = vmul.f32 %v4668_v0, %v918_v2 }
 0x186   : > { %v922_v5 = vpop.f32.mrb[2].mxu0  ;;  %v1451_v6 = vmul.f32 %v4672_v1, %v920_v3 }
 0x187   : > { %v1310_v7 = vpack.c.bf16 %v922_v5, %v918_v2  ;;  %1058 = vadd.xlane.f32.xlu1 %v1042_v4  ;;  %v924_v8 = vpop.f32.mrb[3].mxu0  ;;  %v1043_v10 = vmul.f32 %v4668_v0, %v922_v5 }
 0x188   : > { %v1719_v9 = vpack.c.bf16 %v924_v8, %v920_v3  ;;  %1467 = vadd.xlane.f32.xlu0 %v1451_v6  ;;  %v1452_v11 = vmul.f32 %v4672_v1, %v924_v8 }
 0x189   : > { %3626 = vmatprep.subr.bf16.mxu0 %v1310_v7 }
 0x18a   : > { %3627 = vmatpush3.bf16.msra.mxu0 %v1310_v7  ;;  %3658 = vmatprep.subr.bf16.mxu1 %v1719_v9 }
 0x18b   : > { %1060 = vadd.xlane.f32.xlu1 %v1043_v10  ;;  %3659 = vmatpush3.bf16.msra.mxu1 %v1719_v9 }
 0x18c   : > { %1469 = vadd.xlane.f32.xlu0 %v1452_v11  ;;  %v928_v12 = vpop.f32.mrb[4].mxu0 }
 0x18d   : > { %v930_v13 = vpop.f32.mrb[5].mxu0  ;;  %v1044_v14 = vmul.f32 %v4668_v0, %v928_v12 }
 0x18e   : > { %v932_v15 = vpop.f32.mrb[6].mxu0  ;;  %v1453_v22 = vmul.f32 %v4672_v1, %v930_v13 }
 0x18f   : > { %v1311_v16 = vpack.c.bf16 %v932_v15, %v928_v12  ;;  %v934_v17 = vpop.f32.mrb[7].mxu0  ;;  %v1045_v20 = vmul.f32 %v4668_v0, %v932_v15 }
 0x190   : > { %v1720_v21 = vpack.c.bf16 %v934_v17, %v930_v13  ;;  %1062 = vadd.xlane.f32.xlu0 %v1044_v14  ;;  %v1454_v23 = vmul.f32 %v4672_v1, %v934_v17 }
 0x191   : > { %3628 = vmatprep.subr.bf16.mxu0 %v1311_v16  ;;  %1064 = vadd.xlane.f32.xlu1 %v1045_v20 }
 0x192   : > { %3629 = vmatpush3.bf16.msra.mxu0 %v1311_v16  ;;  %3660 = vmatprep.subr.bf16.mxu1 %v1720_v21 }
 0x193   : > { %3661 = vmatpush3.bf16.msra.mxu1 %v1720_v21 }
 0x194   : > { %1471 = vadd.xlane.f32.xlu0 %v1453_v22  ;;  %v938_v24 = vpop.f32.mrb[8].mxu0 }
 0x195   : > { %1473 = vadd.xlane.f32.xlu1 %v1454_v23  ;;  %v940_v25 = vpop.f32.mrb[9].mxu0  ;;  %v1046_v26 = vmul.f32 %v4668_v0, %v938_v24 }
 0x196   : > { %v942_v27 = vpop.f32.mrb[10].mxu0  ;;  %v1455_v32 = vmul.f32 %v4672_v1, %v940_v25 }
 0x197   : > { %v1312_v28 = vpack.c.bf16 %v942_v27, %v938_v24  ;;  %v944_v29 = vpop.f32.mrb[11].mxu0  ;;  %v1047_v30 = vmul.f32 %v4668_v0, %v942_v27 }
 0x198   : > { %v1721_v31 = vpack.c.bf16 %v944_v29, %v940_v25  ;;  %1066 = vadd.xlane.f32.xlu0 %v1046_v26  ;;  %v1456_v33 = vmul.f32 %v4672_v1, %v944_v29 }
 0x199   : > { %3630 = vmatprep.subr.bf16.mxu0 %v1312_v28  ;;  %1068 = vadd.xlane.f32.xlu1 %v1047_v30 }
 0x19a   : > { %3631 = vmatpush3.bf16.msra.mxu0 %v1312_v28  ;;  %3662 = vmatprep.subr.bf16.mxu1 %v1721_v31 }
 0x19b   : > { %3663 = vmatpush3.bf16.msra.mxu1 %v1721_v31 }
 0x19c   : > { %1475 = vadd.xlane.f32.xlu0 %v1455_v32  ;;  %v948_v34 = vpop.f32.mrb[12].mxu0 }
 0x19d   : > { %1477 = vadd.xlane.f32.xlu1 %v1456_v33  ;;  %v950_v35 = vpop.f32.mrb[13].mxu0  ;;  %v1048_v36 = vmul.f32 %v4668_v0, %v948_v34 }
 0x19e   : > { %v952_v37 = vpop.f32.mrb[14].mxu0  ;;  %v1457_v42 = vmul.f32 %v4672_v1, %v950_v35 }
 0x19f   : > { %v1313_v38 = vpack.c.bf16 %v952_v37, %v948_v34  ;;  %v954_v39 = vpop.f32.mrb[15].mxu0  ;;  %v1049_v40 = vmul.f32 %v4668_v0, %v952_v37  ;;  %v722_v37 = vld [vmem:[#allocation3] sm:$0xff] }
 0x1a0   : > { %v1722_v41 = vpack.c.bf16 %v954_v39, %v950_v35  ;;  %1070 = vadd.xlane.f32.xlu0 %v1048_v36  ;;  %v1458_v43 = vmul.f32 %v4672_v1, %v954_v39 }
 0x1a1   : > { %3632 = vmatprep.subr.bf16.mxu0 %v1313_v38  ;;  %1072 = vadd.xlane.f32.xlu1 %v1049_v40 }
 0x1a2   : > { %3633 = vmatpush3.bf16.msra.mxu0 %v1313_v38  ;;  %3664 = vmatprep.subr.bf16.mxu1 %v1722_v41 }
 0x1a3   : > { %3665 = vmatpush3.bf16.msra.mxu1 %v1722_v41 }
 0x1a4   : > { %1479 = vadd.xlane.f32.xlu0 %v1457_v42  ;;  %v958_v44 = vpop.f32.mrb[16].mxu0 }
 0x1a5   : > { %1481 = vadd.xlane.f32.xlu1 %v1458_v43  ;;  %v960_v45 = vpop.f32.mrb[17].mxu0  ;;  %v1050_v46 = vmul.f32 %v4668_v0, %v958_v44 }
 0x1a6   : > { %v962_v47 = vpop.f32.mrb[18].mxu0  ;;  %v1459_v52 = vmul.f32 %v4672_v1, %v960_v45 }
 0x1a7   : > { %v1314_v48 = vpack.c.bf16 %v962_v47, %v958_v44  ;;  %v964_v49 = vpop.f32.mrb[19].mxu0  ;;  %v1051_v50 = vmul.f32 %v4668_v0, %v962_v47  ;;  %v723_v44 = vld [vmem:[#allocation3 + $0x8] sm:$0xff] }
 0x1a8   : > { %v1723_v51 = vpack.c.bf16 %v964_v49, %v960_v45  ;;  %1074 = vadd.xlane.f32.xlu0 %v1050_v46  ;;  %v1460_v53 = vmul.f32 %v4672_v1, %v964_v49 }
 0x1a9   : > { %3634 = vmatprep.subr.bf16.mxu0 %v1314_v48  ;;  %1076 = vadd.xlane.f32.xlu1 %v1051_v50 }
 0x1aa   : > { %3635 = vmatpush3.bf16.msra.mxu0 %v1314_v48  ;;  %3666 = vmatprep.subr.bf16.mxu1 %v1723_v51 }
 0x1ab   : > { %3667 = vmatpush3.bf16.msra.mxu1 %v1723_v51  ;;  %v1032_v2 = vpop.f32.mrb[0].mxu1 }
 0x1ac   : > { %1483 = vadd.xlane.f32.xlu0 %v1459_v52  ;;  %v968_v54 = vpop.f32.mrb[20].mxu0  ;;  %v3624_v4 = vpop.f32.mrb[1].mxu1  ;;  %v4707_v31 = vrot.slane %v1032_v2, %v4663_v61  ;;  %v4711_v32 = vrot.slane %v1032_v2, %v1449_v63 }
 0x1ad   : > { %1485 = vadd.xlane.f32.xlu1 %v1460_v53  ;;  %v970_v55 = vpop.f32.mrb[21].mxu0  ;;  %v1052_v56 = vmul.f32 %v4668_v0, %v968_v54  ;;  %v1035_v5 = vpop.f32.mrb[2].mxu1 }
 0x1ae   : > { %v972_v57 = vpop.f32.mrb[22].mxu0  ;;  %v1461_v6 = vmul.f32 %v4672_v1, %v970_v55  ;;  %v3625_v7 = vpop.f32.mrb[3].mxu1  ;;  %v725_v5 = vld [vmem:[#allocation3 + $0x18] sm:$0xff] }
 0x1af   : > { %v1315_v58 = vpack.c.bf16 %v972_v57, %v968_v54  ;;  %v974_v59 = vpop.f32.mrb[23].mxu0  ;;  %v1053_v62 = vmul.f32 %v4668_v0, %v972_v57 }
 0x1b0   : > { %v1724_v3 = vpack.c.bf16 %v974_v59, %v970_v55  ;;  %1078 = vadd.xlane.f32.xlu0 %v1052_v56  ;;  %v1462_v8 = vmul.f32 %v4672_v1, %v974_v59  ;;  %v724_v55 = vld [vmem:[#allocation3 + $0x10] sm:$0xff] }
 0x1b1   : > { %3636 = vmatprep.subr.bf16.mxu0 %v1315_v58  ;;  %1080 = vadd.xlane.f32.xlu1 %v1053_v62 }
 0x1b2   : > { %3637 = vmatpush3.bf16.msra.mxu0 %v1315_v58  ;;  %3668 = vmatprep.subr.bf16.mxu1 %v1724_v3 }
 0x1b3   : > { %3669 = vmatpush3.bf16.msra.mxu1 %v1724_v3 }
 0x1b4   : > { %1487 = vadd.xlane.f32.xlu0 %v1461_v6  ;;  %v978_v9 = vpop.f32.mrb[24].mxu0 }
 0x1b5   : > { %1489 = vadd.xlane.f32.xlu1 %v1462_v8  ;;  %v980_v10 = vpop.f32.mrb[25].mxu0  ;;  %v1054_v11 = vmul.f32 %v4668_v0, %v978_v9 }
 0x1b6   : > { %v982_v12 = vpop.f32.mrb[26].mxu0  ;;  %v1463_v17 = vmul.f32 %v4672_v1, %v980_v10 }
 0x1b7   : > { %v1316_v13 = vpack.c.bf16 %v982_v12, %v978_v9  ;;  %v984_v14 = vpop.f32.mrb[27].mxu0  ;;  %v1055_v15 = vmul.f32 %v4668_v0, %v982_v12 }
 0x1b8   : > { %v1725_v16 = vpack.c.bf16 %v984_v14, %v980_v10  ;;  %1082 = vadd.xlane.f32.xlu0 %v1054_v11  ;;  %v1464_v20 = vmul.f32 %v4672_v1, %v984_v14 }
 0x1b9   : > { %3638 = vmatprep.subr.bf16.mxu0 %v1316_v13  ;;  %1084 = vadd.xlane.f32.xlu1 %v1055_v15 }
 0x1ba   : > { %3639 = vmatpush3.bf16.msra.mxu0 %v1316_v13  ;;  %3670 = vmatprep.subr.bf16.mxu1 %v1725_v16 }
 0x1bb   : > { %3671 = vmatpush3.bf16.msra.mxu1 %v1725_v16 }
 0x1bc   : > { %1491 = vadd.xlane.f32.xlu0 %v1463_v17  ;;  %v988_v21 = vpop.f32.mrb[28].mxu0 }
 0x1bd   : > { %1493 = vadd.xlane.f32.xlu1 %v1464_v20  ;;  %v990_v22 = vpop.f32.mrb[29].mxu0  ;;  %v1056_v30 = vmul.f32 %v4668_v0, %v988_v21  ;;  %v726_v20 = vld [vmem:[#allocation3 + $0x20] sm:$0xff] }
 0x1be   : > { %v992_v23 = vpop.f32.mrb[30].mxu0  ;;  %v1465_v24 = vmul.f32 %v4672_v1, %v990_v22 }
 0x1bf   : > { %v1317_v25 = vpack.c.bf16 %v992_v23, %v988_v21  ;;  %v994_v26 = vpop.f32.mrb[31].mxu0  ;;  %v1057_v27 = vmul.f32 %v4668_v0, %v992_v23 }
 0x1c0   : > { %v1726_v28 = vpack.c.bf16 %v994_v26, %v990_v22  ;;  %1495 = vadd.xlane.f32.xlu0 %v1465_v24  ;;  %v1466_v29 = vmul.f32 %v4672_v1, %v994_v26 }
 0x1c1   : > { %3640 = vmatprep.subr.bf16.mxu0 %v1317_v25 }
 0x1c2   : > { %3641 = vmatpush3.bf16.msra.mxu0 %v1317_v25  ;;  %3672 = vmatprep.subr.bf16.mxu1 %v1726_v28 }
 0x1c3   : > { %1497 = vadd.xlane.f32.xlu1 %v1466_v29  ;;  %3673 = vmatpush3.bf16.msra.mxu1 %v1726_v28  ;;  %v727_v29 = vld [vmem:[#allocation3 + $0x28] sm:$0xff] }
 0x1c4   : > { %1086 = vadd.xlane.f32.xlu0 %v1056_v30 }
 0x1c7   : > { %1088 = vadd.xlane.f32.xlu1 %v1057_v27 }
 0x214   : > { %v1059_v33 = vpop.xlane.xlu1 %1058 }
 0x215   : > { %v1094_v34 = vadd.f32 %v4707_v31, %v1059_v33  ;;  %v1468_v1 = vpop.xlane.xlu0 %1467 }
 0x216   : > { %v1503_v35 = vadd.f32 %v4711_v32, %v1468_v1 }
 0x217   : > { %v1126_v36 = vmul.f32 0.2, %v1094_v34  ;;  %vm1110_vm1 = vcmp.ge.f32.partialorder %v1094_v34, 0.0 }
 0x218   : > { %v1535_v0 = vmul.f32 0.2, %v1503_v35  ;;  %v1061_v38 = vpop.xlane.xlu1 %1060  ;;  %vm1519_vm2 = vcmp.ge.f32.partialorder %v1503_v35, 0.0 }
 0x219   : > { %v1095_v39 = vadd.f32 %v4707_v31, %v1061_v38  ;;  %v1470_v40 = vpop.xlane.xlu0 %1469  ;;  %v1142_v41 = vsel %vm1110_vm1, %v1094_v34, %v1126_v36 }
 0x21a   : > { %v1504_v60 = vadd.f32 %v4711_v32, %v1470_v40  ;;  %v4717_v63 = vadd.f32 %v1142_v41, %v722_v37  ;;  %v1551_v43 = vsel %vm1519_vm2, %v1503_v35, %v1535_v0 }
 0x21b   : > { %v1127_v42 = vmul.f32 0.2, %v1095_v39  ;;  %vm1111_vm3 = vcmp.ge.f32.partialorder %v1095_v39, 0.0  ;;  %v4721_v50 = vadd.f32 %v1551_v43, %v722_v37 }
 0x21c   : > { %v1536_v45 = vmul.f32 0.2, %v1504_v60  ;;  %1174 = vmax.xlane.f32.xlu0 %v4717_v63  ;;  %vm1520_vm4 = vcmp.ge.f32.partialorder %v1504_v60, 0.0 }
 0x21d   : > { %v1063_v46 = vpop.xlane.xlu0 %1062  ;;  %v1143_v47 = vsel %vm1111_vm3, %v1095_v39, %v1127_v42 }
 0x21e   : > { %v1096_v48 = vadd.f32 %v4707_v31, %v1063_v46  ;;  %v1065_v49 = vpop.xlane.xlu1 %1064  ;;  %v4723_v51 = vadd.f32 %v1143_v47, %v723_v44  ;;  %v1552_v53 = vsel %vm1520_vm4, %v1504_v60, %v1536_v45  ;;  %v728_v60 = vld [vmem:[#allocation3 + $0x30] sm:$0xff] }
 0x21f   : > { %v1097_v52 = vadd.f32 %v4707_v31, %v1065_v49  ;;  %v4729_v62 = vadd.f32 %v1552_v53, %v723_v44 }
 0x220   : > { %v1128_v54 = vmul.f32 0.2, %v1096_v48  ;;  %1583 = vmax.xlane.f32.xlu0 %v4721_v50  ;;  %1176 = vmax.xlane.f32.xlu1 %v4723_v51  ;;  %vm1112_vm5 = vcmp.ge.f32.partialorder %v1096_v48, 0.0 }
 0x221   : > { %v1129_v56 = vmul.f32 0.2, %v1097_v52  ;;  %v1472_v57 = vpop.xlane.xlu0 %1471  ;;  %vm1113_vm6 = vcmp.ge.f32.partialorder %v1097_v52, 0.0 }
 0x222   : > { %v1505_v58 = vadd.f32 %v4711_v32, %v1472_v57  ;;  %v1474_v59 = vpop.xlane.xlu1 %1473  ;;  %v1144_v2 = vsel %vm1112_vm5, %v1096_v48, %v1128_v54 }
 0x223   : > { %v1506_v3 = vadd.f32 %v4711_v32, %v1474_v59  ;;  %v4732_v4 = vadd.f32 %v1144_v2, %v724_v55  ;;  %v1145_v6 = vsel %vm1113_vm6, %v1097_v52, %v1129_v56  ;;  %v729_v52 = vld [vmem:[#allocation3 + $0x38] sm:$0xff] }
 0x224   : > { %v1537_v7 = vmul.f32 0.2, %v1505_v58  ;;  %1585 = vmax.xlane.f32.xlu1 %v4729_v62  ;;  %vm1521_vm7 = vcmp.ge.f32.partialorder %v1505_v58, 0.0  ;;  %v4737_v12 = vadd.f32 %v1145_v6, %v725_v5 }
 0x225   : > { %v1538_v8 = vmul.f32 0.2, %v1506_v3  ;;  %v1067_v9 = vpop.xlane.xlu0 %1066  ;;  %1178 = vmax.xlane.f32.xlu0 %v4732_v4  ;;  %vm1522_vm8 = vcmp.ge.f32.partialorder %v1506_v3, 0.0 }
 0x226   : > { %v1098_v10 = vadd.f32 %v4707_v31, %v1067_v9  ;;  %v1069_v11 = vpop.xlane.xlu1 %1068  ;;  %v1553_v13 = vsel %vm1521_vm7, %v1505_v58, %v1537_v7 }
 0x227   : > { %v1099_v14 = vadd.f32 %v4707_v31, %v1069_v11  ;;  %v4740_v15 = vadd.f32 %v1553_v13, %v724_v55  ;;  %v1554_v16 = vsel %vm1522_vm8, %v1506_v3, %v1538_v8  ;;  %v730_v8 = vld [vmem:[#allocation3 + $0x40] sm:$0xff] }
 0x228   : > { %v1130_v17 = vmul.f32 0.2, %v1098_v10  ;;  %1180 = vmax.xlane.f32.xlu1 %v4737_v12  ;;  %vm1114_vm9 = vcmp.ge.f32.partialorder %v1098_v10, 0.0  ;;  %v4745_v25 = vadd.f32 %v1554_v16, %v725_v5 }
 0x229   : > { %v1131_v21 = vmul.f32 0.2, %v1099_v14  ;;  %v1476_v22 = vpop.xlane.xlu0 %1475  ;;  %1587 = vmax.xlane.f32.xlu0 %v4740_v15  ;;  %vm1115_vm10 = vcmp.ge.f32.partialorder %v1099_v14, 0.0 }
 0x22a   : > { %v1507_v23 = vadd.f32 %v4711_v32, %v1476_v22  ;;  %v1478_v24 = vpop.xlane.xlu1 %1477  ;;  %v1146_v26 = vsel %vm1114_vm9, %v1098_v10, %v1130_v17 }
 0x22b   : > { %v1508_v27 = vadd.f32 %v4711_v32, %v1478_v24  ;;  %v4748_v28 = vadd.f32 %v1146_v26, %v726_v20  ;;  %v1147_v30 = vsel %vm1115_vm10, %v1099_v14, %v1131_v21  ;;  %v731_v21 = vld [vmem:[#allocation3 + $0x48] sm:$0xff] }
 0x22c   : > { %v1539_v33 = vmul.f32 0.2, %v1507_v23  ;;  %1589 = vmax.xlane.f32.xlu1 %v4745_v25  ;;  %vm1523_vm11 = vcmp.ge.f32.partialorder %v1507_v23, 0.0  ;;  %v4753_v37 = vadd.f32 %v1147_v30, %v727_v29 }
 0x22d   : > { %v1540_v34 = vmul.f32 0.2, %v1508_v27  ;;  %v1071_v1 = vpop.xlane.xlu0 %1070  ;;  %1182 = vmax.xlane.f32.xlu0 %v4748_v28  ;;  %vm1524_vm12 = vcmp.ge.f32.partialorder %v1508_v27, 0.0 }
 0x22e   : > { %v1100_v35 = vadd.f32 %v4707_v31, %v1071_v1  ;;  %v1073_v36 = vpop.xlane.xlu1 %1072  ;;  %v1555_v0 = vsel %vm1523_vm11, %v1507_v23, %v1539_v33 }
 0x22f   : > { %v1101_v38 = vadd.f32 %v4707_v31, %v1073_v36  ;;  %v4756_v39 = vadd.f32 %v1555_v0, %v726_v20  ;;  %v1556_v40 = vsel %vm1524_vm12, %v1508_v27, %v1540_v34  ;;  %v732_v0 = vld [vmem:[#allocation3 + $0x50] sm:$0xff] }
 0x230   : > { %v1132_v41 = vmul.f32 0.2, %v1100_v35  ;;  %1184 = vmax.xlane.f32.xlu1 %v4753_v37  ;;  %vm1116_vm13 = vcmp.ge.f32.partialorder %v1100_v35, 0.0  ;;  %v4761_v46 = vadd.f32 %v1556_v40, %v727_v29 }
 0x231   : > { %v1133_v42 = vmul.f32 0.2, %v1101_v38  ;;  %v1480_v43 = vpop.xlane.xlu0 %1479  ;;  %1591 = vmax.xlane.f32.xlu0 %v4756_v39  ;;  %vm1117_vm14 = vcmp.ge.f32.partialorder %v1101_v38, 0.0 }
 0x232   : > { %v1509_v44 = vadd.f32 %v4711_v32, %v1480_v43  ;;  %v1482_v45 = vpop.xlane.xlu1 %1481  ;;  %v1148_v47 = vsel %vm1116_vm13, %v1100_v35, %v1132_v41 }
 0x233   : > { %v1510_v48 = vadd.f32 %v4711_v32, %v1482_v45  ;;  %v4764_v49 = vadd.f32 %v1148_v47, %v728_v60  ;;  %v1149_v53 = vsel %vm1117_vm14, %v1101_v38, %v1133_v42  ;;  %v733_v47 = vld [vmem:[#allocation3 + $0x58] sm:$0xff] }
 0x234   : > { %v1541_v54 = vmul.f32 0.2, %v1509_v44  ;;  %1593 = vmax.xlane.f32.xlu1 %v4761_v46  ;;  %vm1525_vm15 = vcmp.ge.f32.partialorder %v1509_v44, 0.0  ;;  %v4769_v59 = vadd.f32 %v1149_v53, %v729_v52 }
 0x235   : > { %v1542_v55 = vmul.f32 0.2, %v1510_v48  ;;  %v1075_v56 = vpop.xlane.xlu0 %1074  ;;  %1186 = vmax.xlane.f32.xlu0 %v4764_v49  ;;  %vm1526_vm1 = vcmp.ge.f32.partialorder %v1510_v48, 0.0 }
 0x236   : > { %v1102_v57 = vadd.f32 %v4707_v31, %v1075_v56  ;;  %v1077_v58 = vpop.xlane.xlu1 %1076  ;;  %v1557_v2 = vsel %vm1525_vm15, %v1509_v44, %v1541_v54 }
 0x237   : > { %v1103_v3 = vadd.f32 %v4707_v31, %v1077_v58  ;;  %v4772_v5 = vadd.f32 %v1557_v2, %v728_v60  ;;  %v1558_v6 = vsel %vm1526_vm1, %v1510_v48, %v1542_v55 }
 0x238   : > { %v1134_v7 = vmul.f32 0.2, %v1102_v57  ;;  %1188 = vmax.xlane.f32.xlu1 %v4769_v59  ;;  %vm1118_vm2 = vcmp.ge.f32.partialorder %v1102_v57, 0.0  ;;  %v4777_v14 = vadd.f32 %v1558_v6, %v729_v52 }
 0x239   : > { %v1135_v9 = vmul.f32 0.2, %v1103_v3  ;;  %v1484_v10 = vpop.xlane.xlu0 %1483  ;;  %1595 = vmax.xlane.f32.xlu0 %v4772_v5  ;;  %vm1119_vm3 = vcmp.ge.f32.partialorder %v1103_v3, 0.0 }
 0x23a   : > { %v1511_v11 = vadd.f32 %v4711_v32, %v1484_v10  ;;  %v1486_v13 = vpop.xlane.xlu1 %1485  ;;  %v1150_v16 = vsel %vm1118_vm2, %v1102_v57, %v1134_v7 }
 0x23b   : > { %v1512_v17 = vadd.f32 %v4711_v32, %v1486_v13  ;;  %v4780_v20 = vadd.f32 %v1150_v16, %v730_v8  ;;  %v1151_v22 = vsel %vm1119_vm3, %v1103_v3, %v1135_v9 }
 0x23c   : > { %v1543_v23 = vmul.f32 0.2, %v1511_v11  ;;  %1597 = vmax.xlane.f32.xlu1 %v4777_v14  ;;  %vm1527_vm4 = vcmp.ge.f32.partialorder %v1511_v11, 0.0  ;;  %v4785_v30 = vadd.f32 %v1151_v22, %v731_v21 }
 0x23d   : > { %v1544_v24 = vmul.f32 0.2, %v1512_v17  ;;  %v1079_v26 = vpop.xlane.xlu0 %1078  ;;  %1190 = vmax.xlane.f32.xlu0 %v4780_v20  ;;  %vm1528_vm5 = vcmp.ge.f32.partialorder %v1512_v17, 0.0 }
 0x23e   : > { %v1104_v27 = vadd.f32 %v4707_v31, %v1079_v26  ;;  %v1081_v29 = vpop.xlane.xlu1 %1080  ;;  %v1559_v33 = vsel %vm1527_vm4, %v1511_v11, %v1543_v23  ;;  %v735_v23 = vld [vmem:[#allocation3 + $0x68] sm:$0xff] }
 0x23f   : > { %v1105_v34 = vadd.f32 %v4707_v31, %v1081_v29  ;;  %v4788_v1 = vadd.f32 %v1559_v33, %v730_v8  ;;  %v1560_v35 = vsel %vm1528_vm5, %v1512_v17, %v1544_v24  ;;  %v734_v8 = vld [vmem:[#allocation3 + $0x60] sm:$0xff] }
 0x240   : > { %v1136_v36 = vmul.f32 0.2, %v1104_v27  ;;  %1192 = vmax.xlane.f32.xlu1 %v4785_v30  ;;  %vm1120_vm6 = vcmp.ge.f32.partialorder %v1104_v27, 0.0  ;;  %v4793_v42 = vadd.f32 %v1560_v35, %v731_v21 }
 0x241   : > { %v1137_v38 = vmul.f32 0.2, %v1105_v34  ;;  %v1488_v40 = vpop.xlane.xlu0 %1487  ;;  %1599 = vmax.xlane.f32.xlu0 %v4788_v1  ;;  %vm1121_vm7 = vcmp.ge.f32.partialorder %v1105_v34, 0.0 }
 0x242   : > { %v1513_v41 = vadd.f32 %v4711_v32, %v1488_v40  ;;  %v1490_v60 = vpop.xlane.xlu1 %1489  ;;  %v1152_v43 = vsel %vm1120_vm6, %v1104_v27, %v1136_v36 }
 0x243   : > { %v1514_v44 = vadd.f32 %v4711_v32, %v1490_v60  ;;  %v4796_v45 = vadd.f32 %v1152_v43, %v732_v0  ;;  %v1153_v48 = vsel %vm1121_vm7, %v1105_v34, %v1137_v38 }
 0x244   : > { %v1545_v52 = vmul.f32 0.2, %v1513_v41  ;;  %1601 = vmax.xlane.f32.xlu1 %v4793_v42  ;;  %vm1529_vm8 = vcmp.ge.f32.partialorder %v1513_v41, 0.0  ;;  %v4801_v57 = vadd.f32 %v1153_v48, %v733_v47 }
 0x245   : > { %v1546_v53 = vmul.f32 0.2, %v1514_v44  ;;  %v1083_v54 = vpop.xlane.xlu0 %1082  ;;  %1194 = vmax.xlane.f32.xlu0 %v4796_v45  ;;  %vm1530_vm9 = vcmp.ge.f32.partialorder %v1514_v44, 0.0 }
 0x246   : > { %v1106_v55 = vadd.f32 %v4707_v31, %v1083_v54  ;;  %v1085_v56 = vpop.xlane.xlu1 %1084  ;;  %v1561_v58 = vsel %vm1529_vm8, %v1513_v41, %v1545_v52  ;;  %v736_v41 = vld [vmem:[#allocation3 + $0x70] sm:$0xff]  ;;  %v737_v54 = vld [vmem:[#allocation3 + $0x78] sm:$0xff] }
 0x247   : > { %v1107_v2 = vadd.f32 %v4707_v31, %v1085_v56  ;;  %v4804_v3 = vadd.f32 %v1561_v58, %v732_v0  ;;  %v1562_v6 = vsel %vm1530_vm9, %v1514_v44, %v1546_v53 }
 0x248   : > { %v1138_v7 = vmul.f32 0.2, %v1106_v55  ;;  %1196 = vmax.xlane.f32.xlu1 %v4801_v57  ;;  %vm1122_vm10 = vcmp.ge.f32.partialorder %v1106_v55, 0.0  ;;  %v4809_v16 = vadd.f32 %v1562_v6, %v733_v47 }
 0x249   : > { %v1139_v9 = vmul.f32 0.2, %v1107_v2  ;;  %v1492_v10 = vpop.xlane.xlu0 %1491  ;;  %1603 = vmax.xlane.f32.xlu0 %v4804_v3  ;;  %vm1123_vm11 = vcmp.ge.f32.partialorder %v1107_v2, 0.0 }
 0x24a   : > { %v1515_v11 = vadd.f32 %v4711_v32, %v1492_v10  ;;  %v1494_v13 = vpop.xlane.xlu1 %1493  ;;  %v1154_v17 = vsel %vm1122_vm10, %v1106_v55, %v1138_v7 }
 0x24b   : > { %v1516_v21 = vadd.f32 %v4711_v32, %v1494_v13  ;;  %v4812_v22 = vadd.f32 %v1154_v17, %v734_v8  ;;  %v1155_v24 = vsel %vm1123_vm11, %v1107_v2, %v1139_v9  ;;  %v740_v13 = vld [vmem:[%s5561_s3 + $0x10] sm:$0xff]  ;;  %v741_v17 = vld [vmem:[%s5561_s3 + $0x18] sm:$0xff] }
 0x24c   : > { %v1547_v26 = vmul.f32 0.2, %v1515_v11  ;;  %1605 = vmax.xlane.f32.xlu1 %v4809_v16  ;;  %vm1531_vm12 = vcmp.ge.f32.partialorder %v1515_v11, 0.0  ;;  %v4817_v34 = vadd.f32 %v1155_v24, %v735_v23  ;;  %v744_v24 = vld [vmem:[%s5561_s3 + $0x30] sm:$0xff] }
 0x24d   : > { %v1548_v27 = vmul.f32 0.2, %v1516_v21  ;;  %1198 = vmax.xlane.f32.xlu0 %v4812_v22  ;;  %v1496_v29 = vpop.xlane.xlu0 %1495  ;;  %vm1532_vm13 = vcmp.ge.f32.partialorder %v1516_v21, 0.0 }
 0x24e   : > { %v1517_v33 = vadd.f32 %v4711_v32, %v1496_v29  ;;  %v1563_v35 = vsel %vm1531_vm12, %v1515_v11, %v1547_v26  ;;  %v738_v11 = vld [vmem:[%s5561_s3] sm:$0xff]  ;;  %v747_v26 = vld [vmem:[%s5561_s3 + $0x48] sm:$0xff]  ;;  %v749_v29 = vld [vmem:[%s5561_s3 + $0x58] sm:$0xff] }
 0x24f   : > { %v4819_v36 = vadd.f32 %v1563_v35, %v734_v8  ;;  %v1564_v0 = vsel %vm1532_vm13, %v1516_v21, %v1548_v27  ;;  %v742_v21 = vld [vmem:[%s5561_s3 + $0x20] sm:$0xff]  ;;  %v745_v27 = vld [vmem:[%s5561_s3 + $0x38] sm:$0xff]  ;;  %v751_v35 = vld [vmem:[%s5561_s3 + $0x68] sm:$0xff] }
 0x250   : > { %v1549_v38 = vmul.f32 0.2, %v1517_v33  ;;  %v1498_v40 = vpop.xlane.xlu1 %1497  ;;  %1200 = vmax.xlane.f32.xlu1 %v4817_v34  ;;  %vm1533_vm14 = vcmp.ge.f32.partialorder %v1517_v33, 0.0  ;;  %v4825_v47 = vadd.f32 %v1564_v0, %v735_v23  ;;  %v743_v23 = vld [vmem:[%s5561_s3 + $0x28] sm:$0xff]  ;;  %v748_v0 = vld [vmem:[%s5561_s3 + $0x50] sm:$0xff] }
 0x251   : > { %v1518_v60 = vadd.f32 %v4711_v32, %v1498_v40  ;;  %1607 = vmax.xlane.f32.xlu0 %v4819_v36  ;;  %v1087_v43 = vpop.xlane.xlu0 %1086 }
 0x252   : > { %v1108_v44 = vadd.f32 %v4707_v31, %v1087_v43  ;;  %v1565_v48 = vsel %vm1533_vm14, %v1517_v33, %v1549_v38  ;;  %v746_v33 = vld [vmem:[%s5561_s3 + $0x40] sm:$0xff] }
 0x253   : > { %v1550_v52 = vmul.f32 0.2, %v1518_v60  ;;  %v4827_v53 = vadd.f32 %v1565_v48, %v736_v41  ;;  %vm1534_vm15 = vcmp.ge.f32.partialorder %v1518_v60, 0.0  ;;  %v750_v38 = vld [vmem:[%s5561_s3 + $0x60] sm:$0xff] }
 0x254   : > { %v1140_v55 = vmul.f32 0.2, %v1108_v44  ;;  %v1089_v56 = vpop.xlane.xlu1 %1088  ;;  %1609 = vmax.xlane.f32.xlu1 %v4825_v47  ;;  %vm1124_vm1 = vcmp.ge.f32.partialorder %v1108_v44, 0.0 }
 0x255   : > { %v1109_v32 = vadd.f32 %v4707_v31, %v1089_v56  ;;  %1611 = vmax.xlane.f32.xlu0 %v4827_v53  ;;  %v1566_v58 = vsel %vm1534_vm15, %v1518_v60, %v1550_v52  ;;  %v739_v31 = vld [vmem:[%s5561_s3 + $0x8] sm:$0xff] }
 0x256   : > { %v4832_v2 = vadd.f32 %v1566_v58, %v737_v54  ;;  %v1156_v6 = vsel %vm1124_vm1, %v1108_v44, %v1140_v55 }
 0x257   : > { %v1141_v7 = vmul.f32 0.2, %v1109_v32  ;;  %v4834_v8 = vadd.f32 %v1156_v6, %v736_v41  ;;  %vm1125_vm2 = vcmp.ge.f32.partialorder %v1109_v32, 0.0 }
 0x258   : > { %1613 = vmax.xlane.f32.xlu1 %v4832_v2 }
 0x259   : > { %1202 = vmax.xlane.f32.xlu0 %v4834_v8  ;;  %v1157_v9 = vsel %vm1125_vm2, %v1109_v32, %v1141_v7 }
 0x25a   : > { %v4838_v10 = vadd.f32 %v1157_v9, %v737_v54 }
 0x25c   : > { %1204 = vmax.xlane.f32.xlu1 %v4838_v10 }
 0x26d   : > { %1863 = vperm.xlu1 %3870, %v739_v31  }
 0x26f   : > { %1858 = vperm.xlu0 %3869, %v738_v11  }
 0x271   : > { %1868 = vperm.xlu1 %3870, %v740_v13  }
 0x273   : > { %1873 = vperm.xlu0 %3869, %v741_v17  }
 0x275   : > { %1878 = vperm.xlu1 %3870, %v742_v21  }
 0x277   : > { %1883 = vperm.xlu0 %3869, %v743_v23  }
 0x279   : > { %1888 = vperm.xlu1 %3870, %v744_v24  }
 0x27b   : > { %1903 = vperm.xlu0 %3869, %v747_v26  }
 0x27d   : > { %1893 = vperm.xlu1 %3870, %v745_v27  }
 0x27f   : > { %1913 = vperm.xlu0 %3869, %v749_v29  }
 0x281   : > { %1898 = vperm.xlu1 %3870, %v746_v33  }
 0x283   : > { %1923 = vperm.xlu0 %3869, %v751_v35  }
 0x285   : > { %1908 = vperm.xlu1 %3870, %v748_v0  }
 0x289   : > { %1918 = vperm.xlu1 %3870, %v750_v38  }
 0x2a9   : > { %v1175_v40 = vpop.xlane.xlu0 %1174 }
 0x2aa   : > { %v1206_v41 = vsub.f32 %v4717_v63, %v1175_v40 }
 0x2ac   : > { %v1222_v60 = vmul.f32 1.442695, %v1206_v41 }
 0x2ad   : > { %v1584_v43 = vpop.xlane.xlu0 %1583  ;;  %v1177_v44 = vpop.xlane.xlu1 %1176 }
 0x2ae   : > { %3927 = vpow2.f32 %v1222_v60  ;;  %v1615_v48 = vsub.f32 %v4721_v50, %v1584_v43  ;;  %v1207_v52 = vsub.f32 %v4723_v51, %v1177_v44 }
 0x2b0   : > { %v1631_v54 = vmul.f32 1.442695, %v1615_v48  ;;  %v1224_v55 = vmul.f32 1.442695, %v1207_v52 }
 0x2b1   : > { %v1586_v56 = vpop.xlane.xlu1 %1585 }
 0x2b2   : > { %3929 = vpow2.f32 %v1631_v54  ;;  %v1616_v32 = vsub.f32 %v4729_v62, %v1586_v56  ;;  %v1179_v58 = vpop.xlane.xlu0 %1178 }
 0x2b3   : > { %3931 = vpow2.f32 %v1224_v55  ;;  %v1208_v6 = vsub.f32 %v4732_v4, %v1179_v58 }
 0x2b4   : > { %v1633_v7 = vmul.f32 1.442695, %v1616_v32 }
 0x2b5   : > { %v1226_v63 = vmul.f32 1.442695, %v1208_v6  ;;  %v1181_v9 = vpop.xlane.xlu1 %1180 }
 0x2b6   : > { %3933 = vpow2.f32 %v1633_v7  ;;  %v1209_v31 = vsub.f32 %v4737_v12, %v1181_v9  ;;  %v1588_v11 = vpop.xlane.xlu0 %1587 }
 0x2b7   : > { %3935 = vpow2.f32 %v1226_v63  ;;  %v1617_v50 = vsub.f32 %v4740_v15, %v1588_v11 }
 0x2b8   : > { %v3928_v51 = vpop.eup %3927  ;;  %v1228_v13 = vmul.f32 1.442695, %v1209_v31 }
 0x2b9   : > { %v1635_v17 = vmul.f32 1.442695, %v1617_v50  ;;  %1254 = vadd.xlane.f32.xlu0 %v3928_v51  ;;  %v1590_v21 = vpop.xlane.xlu1 %1589 }
 0x2ba   : > { %3937 = vpow2.f32 %v1228_v13  ;;  %v1618_v62 = vsub.f32 %v4745_v25, %v1590_v21  ;;  %v1183_v23 = vpop.xlane.xlu0 %1182 }
 0x2bb   : > { %3939 = vpow2.f32 %v1635_v17  ;;  %v1210_v4 = vsub.f32 %v4748_v28, %v1183_v23 }
 0x2bc   : > { %v3930_v24 = vpop.eup %3929  ;;  %v1637_v26 = vmul.f32 1.442695, %v1618_v62 }
 0x2bd   : > { %v3932_v27 = vpop.eup %3931  ;;  %v1230_v12 = vmul.f32 1.442695, %v1210_v4  ;;  %1663 = vadd.xlane.f32.xlu0 %v3930_v24  ;;  %v1185_v29 = vpop.xlane.xlu1 %1184 }
 0x2be   : > { %3941 = vpow2.f32 %v1637_v26  ;;  %1256 = vadd.xlane.f32.xlu1 %v3932_v27  ;;  %v1211_v15 = vsub.f32 %v4753_v37, %v1185_v29  ;;  %v1592_v33 = vpop.xlane.xlu0 %1591  ;;  %v1302_v35 = vpack.c.bf16 %v3932_v27, %v3928_v51 }
 0x2bf   : > { %3943 = vpow2.f32 %v1230_v12  ;;  %v1619_v0 = vsub.f32 %v4756_v39, %v1592_v33 }
 0x2c0   : > { %v3934_v25 = vpop.eup %3933  ;;  %v1232_v38 = vmul.f32 1.442695, %v1211_v15  ;;  %3642 = vmatprep.mubr.bf16.mxu0 %v1302_v35 }
 0x2c1   : > { %v3936_v40 = vpop.eup %3935  ;;  %v1639_v28 = vmul.f32 1.442695, %v1619_v0  ;;  %v1594_v41 = vpop.xlane.xlu1 %1593  ;;  %v1711_v60 = vpack.c.bf16 %v3934_v25, %v3930_v24 }
 0x2c2   : > { %3945 = vpow2.f32 %v1232_v38  ;;  %1665 = vadd.xlane.f32.xlu1 %v3934_v25  ;;  %v1620_v43 = vsub.f32 %v4761_v46, %v1594_v41  ;;  %1258 = vadd.xlane.f32.xlu0 %v3936_v40  ;;  %v1187_v44 = vpop.xlane.xlu0 %1186 }
 0x2c3   : > { %3947 = vpow2.f32 %v1639_v28  ;;  %v1212_v37 = vsub.f32 %v4764_v49, %v1187_v44  ;;  %3674 = vmatprep.mubr.bf16.mxu1 %v1711_v60 }
 0x2c4   : > { %v3938_v48 = vpop.eup %3937  ;;  %v1641_v52 = vmul.f32 1.442695, %v1620_v43 }
 0x2c5   : > { %v3940_v39 = vpop.eup %3939  ;;  %v1234_v54 = vmul.f32 1.442695, %v1212_v37  ;;  %v1189_v55 = vpop.xlane.xlu1 %1188  ;;  %v1303_v56 = vpack.c.bf16 %v3938_v48, %v3936_v40 }
 0x2c6   : > { %3949 = vpow2.f32 %v1641_v52  ;;  %1260 = vadd.xlane.f32.xlu1 %v3938_v48  ;;  %v1213_v32 = vsub.f32 %v4769_v59, %v1189_v55  ;;  %1667 = vadd.xlane.f32.xlu0 %v3940_v39  ;;  %v1596_v58 = vpop.xlane.xlu0 %1595 }
 0x2c7   : > { %3951 = vpow2.f32 %v1234_v54  ;;  %v1621_v46 = vsub.f32 %v4772_v5, %v1596_v58  ;;  %3643 = vmatmul.mubr.bf16.vlgmr.msra.gmra.mrb[32].mxu0 %v1303_v56 }
 0x2c8   : > { %v3942_v6 = vpop.eup %3941  ;;  %v1236_v7 = vmul.f32 1.442695, %v1213_v32 }
 0x2c9   : > { %v3944_v49 = vpop.eup %3943  ;;  %v1643_v63 = vmul.f32 1.442695, %v1621_v46  ;;  %v1598_v9 = vpop.xlane.xlu1 %1597  ;;  %v1712_v31 = vpack.c.bf16 %v3942_v6, %v3940_v39 }
 0x2ca   : > { %3953 = vpow2.f32 %v1236_v7  ;;  %1669 = vadd.xlane.f32.xlu1 %v3942_v6  ;;  %v1622_v11 = vsub.f32 %v4777_v14, %v1598_v9  ;;  %1262 = vadd.xlane.f32.xlu0 %v3944_v49  ;;  %v1191_v50 = vpop.xlane.xlu0 %1190 }
 0x2cb   : > { %3955 = vpow2.f32 %v1643_v63  ;;  %v1214_v59 = vsub.f32 %v4780_v20, %v1191_v50  ;;  %3675 = vmatmul.mubr.bf16.vlgmr.msra.gmra.mrb[4].mxu1 %v1712_v31 }
 0x2cc   : > { %v3946_v51 = vpop.eup %3945  ;;  %v1645_v13 = vmul.f32 1.442695, %v1622_v11 }
 0x2cd   : > { %v3948_v5 = vpop.eup %3947  ;;  %v1238_v17 = vmul.f32 1.442695, %v1214_v59  ;;  %v1193_v21 = vpop.xlane.xlu1 %1192  ;;  %v1304_v62 = vpack.c.bf16 %v3946_v51, %v3944_v49 }
 0x2ce   : > { %3957 = vpow2.f32 %v1645_v13  ;;  %1264 = vadd.xlane.f32.xlu1 %v3946_v51  ;;  %v1215_v23 = vsub.f32 %v4785_v30, %v1193_v21  ;;  %1671 = vadd.xlane.f32.xlu0 %v3948_v5  ;;  %v1600_v4 = vpop.xlane.xlu0 %1599 }
 0x2cf   : > { %3959 = vpow2.f32 %v1238_v17  ;;  %v1623_v14 = vsub.f32 %v4788_v1, %v1600_v4  ;;  %3646 = vmatprep.mubr.bf16.mxu0 %v1304_v62 }
 0x2d0   : > { %v3950_v24 = vpop.eup %3949  ;;  %v1240_v26 = vmul.f32 1.442695, %v1215_v23 }
 0x2d1   : > { %v3952_v20 = vpop.eup %3951  ;;  %v1647_v27 = vmul.f32 1.442695, %v1623_v14  ;;  %v1602_v12 = vpop.xlane.xlu1 %1601  ;;  %v1713_v29 = vpack.c.bf16 %v3950_v24, %v3948_v5 }
 0x2d2   : > { %3961 = vpow2.f32 %v1240_v26  ;;  %1673 = vadd.xlane.f32.xlu1 %v3950_v24  ;;  %v1624_v15 = vsub.f32 %v4793_v42, %v1602_v12  ;;  %1266 = vadd.xlane.f32.xlu0 %v3952_v20  ;;  %v1195_v33 = vpop.xlane.xlu0 %1194 }
 0x2d3   : > { %3963 = vpow2.f32 %v1647_v27  ;;  %v1216_v30 = vsub.f32 %v4796_v45, %v1195_v33  ;;  %3678 = vmatprep.mubr.bf16.mxu1 %v1713_v29 }
 0x2d4   : > { %v3954_v35 = vpop.eup %3953  ;;  %v1649_v0 = vmul.f32 1.442695, %v1624_v15 }
 0x2d5   : > { %v3956_v1 = vpop.eup %3955  ;;  %v1242_v25 = vmul.f32 1.442695, %v1216_v30  ;;  %v1197_v38 = vpop.xlane.xlu1 %1196  ;;  %v1305_v40 = vpack.c.bf16 %v3954_v35, %v3952_v20 }
 0x2d6   : > { %3965 = vpow2.f32 %v1649_v0  ;;  %1268 = vadd.xlane.f32.xlu1 %v3954_v35  ;;  %v1217_v28 = vsub.f32 %v4801_v57, %v1197_v38  ;;  %1675 = vadd.xlane.f32.xlu0 %v3956_v1  ;;  %v1604_v41 = vpop.xlane.xlu0 %1603  ;;  %v755_v38 = vld [vmem:[%s5562_s4 + $0x8] sm:$0xff] }
 0x2d7   : > { %3967 = vpow2.f32 %v1242_v25  ;;  %v1625_v42 = vsub.f32 %v4804_v3, %v1604_v41  ;;  %3647 = vmatmul.mubr.bf16.gmra.mrb[36].mxu0 %v1305_v40  ;;  %v753_v25 = vld [vmem:[%s5561_s3 + $0x78] sm:$0xff]  ;;  %v752_v40 = vld [vmem:[%s5561_s3 + $0x70] sm:$0xff]  ;;  %v754_v41 = vld [vmem:[%s5562_s4] sm:$0xff] }
 0x2d8   : > { %v3958_v60 = vpop.eup %3957  ;;  %v1244_v43 = vmul.f32 1.442695, %v1217_v28  ;;  %v757_v28 = vld [vmem:[%s5562_s4 + $0x18] sm:$0xff] }
 0x2d9   : > { %v3960_v45 = vpop.eup %3959  ;;  %v1651_v44 = vmul.f32 1.442695, %v1625_v42  ;;  %v1606_v37 = vpop.xlane.xlu1 %1605  ;;  %v1714_v48 = vpack.c.bf16 %v3958_v60, %v3956_v1  ;;  %v759_v42 = vld [vmem:[%s5562_s4 + $0x28] sm:$0xff] }
 0x2da   : > { %3969 = vpow2.f32 %v1244_v43  ;;  %1677 = vadd.xlane.f32.xlu1 %v3958_v60  ;;  %v1626_v52 = vsub.f32 %v4809_v16, %v1606_v37  ;;  %1270 = vadd.xlane.f32.xlu0 %v3960_v45  ;;  %v1199_v39 = vpop.xlane.xlu0 %1198  ;;  %v756_v60 = vld [vmem:[%s5562_s4 + $0x10] sm:$0xff]  ;;  %v761_v43 = vld [vmem:[%s5562_s4 + $0x38] sm:$0xff] }
 0x2db   : > { %3971 = vpow2.f32 %v1651_v44  ;;  %v1218_v57 = vsub.f32 %v4812_v22, %v1199_v39  ;;  %3679 = vmatmul.mubr.bf16.gmra.mrb[8].mxu1 %v1714_v48  ;;  %v763_v44 = vld [vmem:[%s5562_s4 + $0x48] sm:$0xff]  ;;  %v760_v37 = vld [vmem:[%s5562_s4 + $0x30] sm:$0xff]  ;;  %v765_v48 = vld [vmem:[%s5562_s4 + $0x58] sm:$0xff] }
 0x2dc   : > { %v3962_v54 = vpop.eup %3961  ;;  %v1653_v55 = vmul.f32 1.442695, %v1626_v52  ;;  %v762_v52 = vld [vmem:[%s5562_s4 + $0x40] sm:$0xff]  ;;  %v767_v39 = vld [vmem:[%s5562_s4 + $0x68] sm:$0xff] }
 0x2dd   : > { %v3964_v3 = vpop.eup %3963  ;;  %v1246_v56 = vmul.f32 1.442695, %v1218_v57  ;;  %v1201_v32 = vpop.xlane.xlu1 %1200  ;;  %v1306_v58 = vpack.c.bf16 %v3962_v54, %v3960_v45  ;;  %v758_v45 = vld [vmem:[%s5562_s4 + $0x20] sm:$0xff]  ;;  %v764_v57 = vld [vmem:[%s5562_s4 + $0x50] sm:$0xff] }
 0x2de   : > { %3973 = vpow2.f32 %v1653_v55  ;;  %1272 = vadd.xlane.f32.xlu1 %v3962_v54  ;;  %v1219_v46 = vsub.f32 %v4817_v34, %v1201_v32  ;;  %1679 = vadd.xlane.f32.xlu0 %v3964_v3  ;;  %v1608_v6 = vpop.xlane.xlu0 %1607  ;;  %v769_v54 = vld [vmem:[%s5562_s4 + $0x78] sm:$0xff]  ;;  %v766_v55 = vld [vmem:[%s5562_s4 + $0x60] sm:$0xff]  ;;  %v768_v32 = vld [vmem:[%s5562_s4 + $0x70] sm:$0xff] }
 0x2df   : > { %v1627_v16 = vsub.f32 %v4819_v36, %v1608_v6  ;;  %3650 = vmatprep.mubr.bf16.mxu0 %v1306_v58  ;;  %3975 = vpow2.f32 %v1246_v56  ;;  %v773_v58 = vld [vmem:[%s5612_s10 + $0x18] sm:$0xff]  ;;  %v770_v6 = vld [vmem:[%s5612_s10] sm:$0xff] }
 0x2e0   : > { %v3966_v7 = vpop.eup %3965  ;;  %v1248_v49 = vmul.f32 1.442695, %v1219_v46 }
 0x2e1   : > { %v3968_v63 = vpop.eup %3967  ;;  %v1655_v22 = vmul.f32 1.442695, %v1627_v16  ;;  %v1610_v9 = vpop.xlane.xlu1 %1609  ;;  %v1715_v31 = vpack.c.bf16 %v3966_v7, %v3964_v3  ;;  %v771_v3 = vld [vmem:[%s5612_s10 + $0x8] sm:$0xff] }
 0x2e2   : > { %3977 = vpow2.f32 %v1248_v49  ;;  %1681 = vadd.xlane.f32.xlu1 %v3966_v7  ;;  %v1628_v11 = vsub.f32 %v4825_v47, %v1610_v9  ;;  %1274 = vadd.xlane.f32.xlu0 %v3968_v63  ;;  %v1612_v50 = vpop.xlane.xlu0 %1611  ;;  %v775_v16 = vld [vmem:[%s5612_s10 + $0x28] sm:$0xff]  ;;  %v772_v7 = vld [vmem:[%s5612_s10 + $0x10] sm:$0xff]  ;;  %v777_v49 = vld [vmem:[%s5612_s10 + $0x38] sm:$0xff] }
 0x2e3   : > { %v1629_v34 = vsub.f32 %v4827_v53, %v1612_v50  ;;  %3682 = vmatprep.mubr.bf16.mxu1 %v1715_v31  ;;  %3979 = vpow2.f32 %v1655_v22  ;;  %v774_v22 = vld [vmem:[%s5612_s10 + $0x20] sm:$0xff]  ;;  %v779_v9 = vld [vmem:[%s5612_s10 + $0x48] sm:$0xff]  ;;  %v781_v50 = vld [vmem:[%s5612_s10 + $0x58] sm:$0xff] }
 0x2e4   : > { %v3970_v59 = vpop.eup %3969  ;;  %v1657_v51 = vmul.f32 1.442695, %v1628_v11  ;;  %v776_v11 = vld [vmem:[%s5612_s10 + $0x30] sm:$0xff] }
 0x2e5   : > { %v3972_v36 = vpop.eup %3971  ;;  %v1659_v13 = vmul.f32 1.442695, %v1629_v34  ;;  %v1614_v5 = vpop.xlane.xlu1 %1613  ;;  %v1307_v17 = vpack.c.bf16 %v3970_v59, %v3968_v63  ;;  %v778_v34 = vld [vmem:[%s5612_s10 + $0x40] sm:$0xff] }
 0x2e6   : > { %3981 = vpow2.f32 %v1657_v51  ;;  %1276 = vadd.xlane.f32.xlu1 %v3970_v59  ;;  %v1630_v21 = vsub.f32 %v4832_v2, %v1614_v5  ;;  %1683 = vadd.xlane.f32.xlu0 %v3972_v36  ;;  %v1203_v62 = vpop.xlane.xlu0 %1202  ;;  %v783_v59 = vld [vmem:[%s5612_s10 + $0x68] sm:$0xff] }
 0x2e7   : > { %v1220_v47 = vsub.f32 %v4834_v8, %v1203_v62  ;;  %3651 = vmatmul.mubr.bf16.gmra.mrb[40].mxu0 %v1307_v17  ;;  %3983 = vpow2.f32 %v1659_v13  ;;  %v785_v13 = vld [vmem:[%s5612_s10 + $0x78] sm:$0xff]  ;;  %v784_v62 = vld [vmem:[%s5612_s10 + $0x70] sm:$0xff] }
 0x2e8   : > { %v3974_v23 = vpop.eup %3973  ;;  %v1661_v4 = vmul.f32 1.442695, %v1630_v21  ;;  %v782_v21 = vld [vmem:[%s5612_s10 + $0x60] sm:$0xff] }
 0x2e9   : > { %v1250_v53 = vmul.f32 1.442695, %v1220_v47  ;;  %v1205_v14 = vpop.xlane.xlu1 %1204  ;;  %v1716_v24 = vpack.c.bf16 %v3974_v23, %v3972_v36  ;;  %v3976_v20 = vpop.eup %3975  ;;  %v780_v36 = vld [vmem:[%s5612_s10 + $0x50] sm:$0xff] }
 0x2ea   : > { %3985 = vpow2.f32 %v1661_v4  ;;  %1685 = vadd.xlane.f32.xlu1 %v3974_v23  ;;  %v1221_v26 = vsub.f32 %v4838_v10, %v1205_v14 }
 0x2eb   : > { %3683 = vmatmul.mubr.bf16.gmra.mrb[12].mxu1 %v1716_v24  ;;  %3987 = vpow2.f32 %v1250_v53 }
 0x2ec   : > { %v3978_v27 = vpop.eup %3977  ;;  %v1252_v12 = vmul.f32 1.442695, %v1221_v26 }
 0x2ed   : > { %v1308_v2 = vpack.c.bf16 %v3978_v27, %v3976_v20  ;;  %v3980_v8 = vpop.eup %3979  ;;  %v4970_v56 = vpop.permute.xlu1 %1863 }
 0x2ee   : > { %3989 = vpow2.f32 %v1252_v12  ;;  %1278 = vadd.xlane.f32.xlu1 %v3976_v20  ;;  %v5022_v5 = vpop.permute.xlu0 %1858 }
 0x2ef   : > { %3654 = vmatprep.mubr.bf16.mxu0 %v1308_v2 }
 0x2f0   : > { %v3982_v29 = vpop.eup %3981 }
 0x2f1   : > { %1689 = vadd.xlane.f32.xlu0 %v3982_v29  ;;  %v1717_v15 = vpack.c.bf16 %v3982_v29, %v3980_v8  ;;  %v3984_v33 = vpop.eup %3983  ;;  %v4978_v46 = vpop.permute.xlu1 %1868 }
 0x2f2   : > { %1687 = vadd.xlane.f32.xlu1 %v3980_v8  ;;  %v5032_v47 = vpop.permute.xlu0 %1873 }
 0x2f3   : > { %3686 = vmatprep.mubr.bf16.mxu1 %v1717_v15 }
 0x2f4   : > { %v3986_v30 = vpop.eup %3985 }
 0x2f5   : > { %1693 = vadd.xlane.f32.xlu0 %v3986_v30  ;;  %v1718_v35 = vpack.c.bf16 %v3986_v30, %v3984_v33  ;;  %v3988_v10 = vpop.eup %3987  ;;  %v4992_v63 = vpop.permute.xlu1 %1878 }
 0x2f6   : > { %1280 = vadd.xlane.f32.xlu1 %v3978_v27  ;;  %v5036_v4 = vpop.permute.xlu0 %1883 }
 0x2f7   : > { %3687 = vmatmul.mubr.bf16.gmra.mrb[16].mxu1 %v1718_v35 }
 0x2f8   : > { %v3990_v0 = vpop.eup %3989 }
 0x2f9   : > { %v1309_v1 = vpack.c.bf16 %v3990_v0, %v3988_v10  ;;  %v5000_v31 = vpop.permute.xlu1 %1888 }
 0x2fa   : > { %1282 = vadd.xlane.f32.xlu1 %v3988_v10  ;;  %v5040_v24 = vpop.permute.xlu0 %1903 }
 0x2fb   : > { %3655 = vmatmul.mubr.bf16.gmra.mrb[44].mxu0 %v1309_v1 }
 0x2fc   : > { %2016 = vmatprep.mubr.bf16.mxu0 %v4257_v18 }
 0x2fd   : > { %v5014_v51 = vpop.permute.xlu1 %1893 }
 0x2fe   : > { %1691 = vadd.xlane.f32.xlu1 %v3984_v33  ;;  %v5042_v20 = vpop.permute.xlu0 %1913 }
 0x301   : > { %v5024_v17 = vpop.permute.xlu1 %1898 }
 0x302   : > { %1284 = vadd.xlane.f32.xlu1 %v3990_v0  ;;  %v5044_v12 = vpop.permute.xlu0 %1923 }
 0x305   : > { %v5034_v23 = vpop.permute.xlu1 %1908 }
 0x309   : > { %v5038_v53 = vpop.permute.xlu1 %1918 }
 0x30b   : > { %1933 = vperm.xlu0 %3869, %v753_v25  }
 0x30f   : > { %2393 = vperm.xlu0 %3869, %v755_v38  }
 0x313   : > { %1928 = vperm.xlu1 %3870, %v752_v40   ;;  %2403 = vperm.xlu0 %3869, %v757_v28  }
 0x317   : > { %2388 = vperm.xlu1 %3870, %v754_v41   ;;  %2413 = vperm.xlu0 %3869, %v759_v42  }
 0x31b   : > { %2398 = vperm.xlu1 %3870, %v756_v60   ;;  %2423 = vperm.xlu0 %3869, %v761_v43  }
 0x31f   : > { %2408 = vperm.xlu1 %3870, %v758_v45   ;;  %2433 = vperm.xlu0 %3869, %v763_v44  }
 0x323   : > { %2418 = vperm.xlu1 %3870, %v760_v37   ;;  %2443 = vperm.xlu0 %3869, %v765_v48  }
 0x327   : > { %2428 = vperm.xlu1 %3870, %v762_v52   ;;  %2453 = vperm.xlu0 %3869, %v767_v39  }
 0x32b   : > { %2438 = vperm.xlu1 %3870, %v764_v57   ;;  %2463 = vperm.xlu0 %3869, %v769_v54  }
 0x32f   : > { %2448 = vperm.xlu1 %3870, %v766_v55   ;;  %3057 = vperm.xlu0 %3869, %v771_v3  }
 0x333   : > { %2458 = vperm.xlu1 %3870, %v768_v32   ;;  %3067 = vperm.xlu0 %3869, %v773_v58  }
 0x337   : > { %3052 = vperm.xlu1 %3870, %v770_v6   ;;  %3077 = vperm.xlu0 %3869, %v775_v16  }
 0x33b   : > { %3062 = vperm.xlu1 %3870, %v772_v7   ;;  %3087 = vperm.xlu0 %3869, %v777_v49  }
 0x33f   : > { %3072 = vperm.xlu1 %3870, %v774_v22   ;;  %3097 = vperm.xlu0 %3869, %v779_v9  }
 0x343   : > { %3082 = vperm.xlu1 %3870, %v776_v11   ;;  %3107 = vperm.xlu0 %3869, %v781_v50  }
 0x346   : > { %v1255_v8 = vpop.xlane.xlu0 %1254 }
 0x347   : > { %3092 = vperm.xlu1 %3870, %v778_v34   ;;  %3117 = vperm.xlu0 %3869, %v783_v59  }
 0x34a   : > { %v1664_v15 = vpop.xlane.xlu0 %1663 }
 0x34b   : > { %3102 = vperm.xlu1 %3870, %v780_v36   ;;  %3127 = vperm.xlu0 %3869, %v785_v13   ;;  %v1257_v14 = vpop.xlane.xlu1 %1256 }
 0x34f   : > { %3112 = vperm.xlu1 %3870, %v782_v21   ;;  %v1666_v26 = vpop.xlane.xlu1 %1665  ;;  %v1259_v30 = vpop.xlane.xlu0 %1258 }
 0x350   : > { %3991 = vrcp.f32 %v1259_v30 }
 0x351   : > { %3993 = vrcp.f32 %v1255_v8 }
 0x353   : > { %3122 = vperm.xlu1 %3870, %v784_v62   ;;  %v1261_v27 = vpop.xlane.xlu1 %1260  ;;  %v1668_v10 = vpop.xlane.xlu0 %1667 }
 0x354   : > { %3995 = vrcp.f32 %v1261_v27 }
 0x355   : > { %3997 = vrcp.f32 %v1257_v14 }
 0x356   : > { %3999 = vrcp.f32 %v1668_v10 }
 0x357   : > { %v1670_v2 = vpop.xlane.xlu1 %1669  ;;  %v1263_v1 = vpop.xlane.xlu0 %1262  ;;  %4001 = vrcp.f32 %v1664_v15 }
 0x358   : > { %4003 = vrcp.f32 %v1670_v2 }
 0x359   : > { %4005 = vrcp.f32 %v1666_v26 }
 0x35a   : > { %v3992_v60 = vpop.eup %3991  ;;  %4007 = vrcp.f32 %v1263_v1 }
 0x35b   : > { %v5046_v29 = vpop.xlane.xlu1 %1264  ;;  %v1672_v38 = vpop.xlane.xlu0 %1671 }
 0x35c   : > { %v3994_v45 = vpop.eup %3993 }
 0x35e   : > { %v3996_v48 = vpop.eup %3995 }
 0x35f   : > { %v5048_v33 = vpop.xlane.xlu1 %1673  ;;  %v1267_v28 = vpop.xlane.xlu0 %1266 }
 0x360   : > { %v3998_v57 = vpop.eup %3997  ;;  %4009 = vrcp.f32 %v1267_v28 }
 0x361   : > { %v4000_v32 = vpop.eup %3999 }
 0x362   : > { %v4002_v49 = vpop.eup %4001 }
 0x363   : > { %v1269_v35 = vpop.xlane.xlu1 %1268  ;;  %v1676_v42 = vpop.xlane.xlu0 %1675 }
 0x364   : > { %v4004_v59 = vpop.eup %4003  ;;  %4011 = vrcp.f32 %v1269_v35 }
 0x365   : > { %v4006_v14 = vpop.eup %4005  ;;  %4013 = vrcp.f32 %v5046_v29 }
 0x366   : > { %4015 = vrcp.f32 %v1676_v42 }
 0x367   : > { %v5050_v0 = vpop.xlane.xlu1 %1677  ;;  %v1271_v22 = vpop.xlane.xlu0 %1270  ;;  %4017 = vrcp.f32 %v1672_v38 }
 0x368   : > { %4019 = vrcp.f32 %v5050_v0  ;;  %v4008_v38 = vpop.eup %4007 }
 0x369   : > { %4021 = vrcp.f32 %v5048_v33 }
 0x36a   : > { %4023 = vrcp.f32 %v1271_v22 }
 0x36b   : > { %v5052_v25 = vpop.xlane.xlu1 %1272 }
 0x36f   : > { %v5054_v40 = vpop.xlane.xlu1 %1681 }
 0x373   : > { %v5056_v41 = vpop.xlane.xlu1 %1276 }
 0x377   : > { %v5058_v58 = vpop.xlane.xlu1 %1685 }
 0x39a   : > { %v3644_v43 = vpop.f32.mrb[32].mxu0 }
 0x39b   : > { %v1417_v44 = vmul.f32 %v3992_v60, %v3644_v43  ;;  %v1352_v37 = vpop.f32.mrb[33].mxu0  ;;  %v5072_v43 = vpop.xlane.xlu1 %1278 }
 0x39c   : > { %v1415_v52 = vmul.f32 %v3994_v45, %v1352_v37  ;;  %v3645_v39 = vpop.f32.mrb[34].mxu0  ;;  %v5074_v37 = vpop.xlane.xlu0 %1679 }
 0x39d   : > { %v1433_v54 = vmax.f32 %v1417_v44, 0.0  ;;  %v1418_v55 = vmul.f32 %v3996_v48, %v3645_v39  ;;  %v1355_v3 = vpop.f32.mrb[35].mxu0 }
 0x39e   : > { %v1431_v6 = vmax.f32 %v1415_v52, 0.0  ;;  %v1416_v16 = vmul.f32 %v3998_v57, %v1355_v3  ;;  %v3676_v7 = vpop.f32.mrb[4].mxu1  ;;  %v4010_v3 = vpop.eup %4009 }
 0x39f   : > { %v5061_v9 = vmul.f32 %v4978_v46, %v1433_v54  ;;  %v1434_v11 = vmax.f32 %v1418_v55, 0.0  ;;  %v1826_v50 = vmul.f32 %v4000_v32, %v3676_v7  ;;  %v1761_v34 = vpop.f32.mrb[5].mxu1  ;;  %v4012_v32 = vpop.eup %4011 }
 0x3a0   : > { %v1936_v36 = vmul.f32 %v5022_v5, %v1431_v6  ;;  %v1432_v13 = vmax.f32 %v1416_v16, 0.0  ;;  %v1824_v21 = vmul.f32 %v4002_v49, %v1761_v34  ;;  %v3677_v62 = vpop.f32.mrb[6].mxu1 }
 0x3a1   : > { %v1942_v26 = vmul.f32 %v5032_v47, %v1434_v11  ;;  %v5065_v27 = vpack.c.bf16 %v1434_v11, %v1433_v54  ;;  %v1842_v2 = vmax.f32 %v1826_v50, 0.0  ;;  %v1827_v8 = vmul.f32 %v4004_v59, %v3677_v62  ;;  %v1764_v15 = vpop.f32.mrb[7].mxu1 }
 0x3a2   : > { %v1938_v30 = vmul.f32 %v4970_v56, %v1432_v13  ;;  %v5068_v10 = vpack.c.bf16 %v1432_v13, %v1431_v6  ;;  %v1840_v1 = vmax.f32 %v1824_v21, 0.0  ;;  %v1825_v28 = vmul.f32 %v4006_v14, %v1764_v15  ;;  %v1275_v6 = vpop.xlane.xlu0 %1274 }
 0x3a3   : > { %v1970_v35 = vpack.c.bf16 %v1942_v26, %v5061_v9  ;;  %v1843_v60 = vmax.f32 %v1827_v8, 0.0  ;;  %v1941_v48 = vmul.f32 %v4978_v46, %v1842_v2  ;;  %v5086_v46 = vpop.xlane.xlu1 %1687  ;;  %4025 = vrcp.f32 %v1275_v6 }
 0x3a4   : > { %v1968_v45 = vpack.c.bf16 %v1938_v30, %v1936_v36  ;;  %v1841_v44 = vmax.f32 %v1825_v28, 0.0  ;;  %v1937_v29 = vmul.f32 %v5022_v5, %v1840_v1  ;;  %4027 = vrcp.f32 %v5056_v41 }
 0x3a5   : > { %v1943_v52 = vmul.f32 %v5032_v47, %v1843_v60  ;;  %v5078_v39 = vpack.c.bf16 %v1843_v60, %v1842_v2  ;;  %4029 = vrcp.f32 %v5052_v25 }
 0x3a6   : > { %v1939_v57 = vmul.f32 %v4970_v56, %v1841_v44  ;;  %v5083_v42 = vpack.c.bf16 %v1841_v44, %v1840_v1  ;;  %v4014_v56 = vpop.eup %4013  ;;  %v1684_v28 = vpop.xlane.xlu0 %1683 }
 0x3a7   : > { %v1971_v54 = vpack.c.bf16 %v1943_v52, %v1941_v48  ;;  %v4016_v11 = vpop.eup %4015  ;;  %v5089_v26 = vpop.xlane.xlu1 %1280  ;;  %4031 = vrcp.f32 %v1684_v28 }
 0x3a8   : > { %v1969_v55 = vpack.c.bf16 %v1939_v57, %v1937_v29  ;;  %v4018_v36 = vpop.eup %4017  ;;  %4033 = vrcp.f32 %v5074_v37 }
 0x3a9   : > { %v4020_v14 = vpop.eup %4019  ;;  %4035 = vrcp.f32 %v5058_v58 }
 0x3aa   : > { %v3648_v47 = vpop.f32.mrb[36].mxu0  ;;  %1984 = vmatprep.subr.bf16.mxu0 %v1969_v55  ;;  %v4022_v1 = vpop.eup %4021  ;;  %4037 = vrcp.f32 %v5054_v40 }
 0x3ab   : > { %v1421_v16 = vmul.f32 %v4010_v3, %v3648_v47  ;;  %v1368_v0 = vpop.f32.mrb[37].mxu0  ;;  %1985 = vmatpush1.bf16.msra.mxu0 %v1968_v45  ;;  %4039 = vrcp.f32 %v5086_v46 }
 0x3ac   : > { %v1419_v5 = vmul.f32 %v4008_v38, %v1368_v0  ;;  %v3649_v7 = vpop.f32.mrb[38].mxu0  ;;  %1986 = vmatprep.subr.bf16.mxu0 %v1971_v54  ;;  %v1283_v0 = vpop.xlane.xlu1 %1282 }
 0x3ad   : > { %v1437_v49 = vmax.f32 %v1421_v16, 0.0  ;;  %v1422_v33 = vmul.f32 %v4012_v32, %v3649_v7  ;;  %v1371_v9 = vpop.f32.mrb[39].mxu0  ;;  %v1690_v32 = vpop.xlane.xlu0 %1689 }
 0x3ae   : > { %v1435_v50 = vmax.f32 %v1419_v5, 0.0  ;;  %v1420_v34 = vmul.f32 %v4014_v56, %v1371_v9  ;;  %v3680_v59 = vpop.f32.mrb[8].mxu1  ;;  %v4024_v56 = vpop.eup %4023 }
 0x3af   : > { %v1438_v13 = vmax.f32 %v1422_v33, 0.0  ;;  %v1830_v21 = vmul.f32 %v4016_v11, %v3680_v59  ;;  %v1777_v62 = vpop.f32.mrb[9].mxu1  ;;  %1987 = vmatpush1.bf16.msra.mxu0 %v1970_v35  ;;  %v5092_v22 = vmul.f32 %v5000_v31, %v1437_v49 }
 0x3b0   : > { %v1944_v2 = vmul.f32 %v4992_v63, %v1435_v50  ;;  %v1436_v8 = vmax.f32 %v1420_v34, 0.0  ;;  %v1828_v15 = vmul.f32 %v4018_v36, %v1777_v62  ;;  %v3681_v30 = vpop.f32.mrb[10].mxu1  ;;  %v1692_v58 = vpop.xlane.xlu1 %1691 }
 0x3b1   : > { %v1950_v60 = vmul.f32 %v5014_v51, %v1438_v13  ;;  %v5096_v41 = vpack.c.bf16 %v1438_v13, %v1437_v49  ;;  %v1846_v45 = vmax.f32 %v1830_v21, 0.0  ;;  %v1831_v44 = vmul.f32 %v4020_v14, %v3681_v30  ;;  %v1780_v35 = vpop.f32.mrb[11].mxu1  ;;  %v4026_v49 = vpop.eup %4025 }
 0x3b2   : > { %v1946_v48 = vmul.f32 %v5036_v4, %v1436_v8  ;;  %v5099_v52 = vpack.c.bf16 %v1436_v8, %v1435_v50  ;;  %v1844_v29 = vmax.f32 %v1828_v15, 0.0  ;;  %v1829_v57 = vmul.f32 %v4022_v1, %v1780_v35 }
 0x3b3   : > { %v1974_v54 = vpack.c.bf16 %v1950_v60, %v5092_v22  ;;  %v1847_v38 = vmax.f32 %v1831_v44, 0.0  ;;  %v1949_v47 = vmul.f32 %v5000_v31, %v1846_v45  ;;  %v4028_v31 = vpop.eup %4027 }
 0x3b4   : > { %v1972_v55 = vpack.c.bf16 %v1946_v48, %v1944_v2  ;;  %v1845_v3 = vmax.f32 %v1829_v57, 0.0  ;;  %v1945_v25 = vmul.f32 %v4992_v63, %v1844_v29 }
 0x3b5   : > { %v1951_v6 = vmul.f32 %v5014_v51, %v1847_v38  ;;  %v5106_v16 = vpack.c.bf16 %v1847_v38, %v1846_v45  ;;  %v1694_v51 = vpop.xlane.xlu0 %1693 }
 0x3b6   : > { %v1947_v5 = vmul.f32 %v5036_v4, %v1845_v3  ;;  %v5111_v7 = vpack.c.bf16 %v1845_v3, %v1844_v29  ;;  %v4030_v4 = vpop.eup %4029  ;;  %4041 = vrcp.f32 %v1694_v51 }
 0x3b7   : > { %v1975_v37 = vpack.c.bf16 %v1951_v6, %v1949_v47  ;;  %v4032_v13 = vpop.eup %4031  ;;  %4043 = vrcp.f32 %v1692_v58  ;;  %v1285_v6 = vpop.xlane.xlu1 %1284 }
 0x3b8   : > { %v1973_v33 = vpack.c.bf16 %v1947_v5, %v1945_v25  ;;  %v4034_v22 = vpop.eup %4033  ;;  %4045 = vrcp.f32 %v1690_v32 }
 0x3b9   : > { %v4036_v30 = vpop.eup %4035  ;;  %4047 = vrcp.f32 %v1283_v0 }
 0x3ba   : > { %v3652_v9 = vpop.f32.mrb[40].mxu0  ;;  %1988 = vmatprep.subr.bf16.mxu0 %v1973_v33  ;;  %v4038_v44 = vpop.eup %4037  ;;  %4049 = vrcp.f32 %v5072_v43 }
 0x3bb   : > { %v1425_v11 = vmul.f32 %v4026_v49, %v3652_v9  ;;  %v1384_v50 = vpop.f32.mrb[41].mxu0  ;;  %1989 = vmatpush1.bf16.msra.mxu0 %v1972_v55  ;;  %4051 = vrcp.f32 %v1285_v6 }
 0x3bc   : > { %v1423_v34 = vmul.f32 %v4024_v56, %v1384_v50  ;;  %v3653_v63 = vpop.f32.mrb[42].mxu0  ;;  %1990 = vmatprep.subr.bf16.mxu0 %v1975_v37  ;;  %4053 = vrcp.f32 %v5089_v26 }
 0x3bd   : > { %v1441_v59 = vmax.f32 %v1425_v11, 0.0  ;;  %v1426_v36 = vmul.f32 %v4028_v31, %v3653_v63  ;;  %v1387_v40 = vpop.f32.mrb[43].mxu0  ;;  %v4040_v11 = vpop.eup %4039 }
 0x3be   : > { %v1439_v21 = vmax.f32 %v1423_v34, 0.0  ;;  %v1424_v62 = vmul.f32 %v4030_v4, %v1387_v40  ;;  %v3684_v14 = vpop.f32.mrb[12].mxu1 }
 0x3bf   : > { %v1442_v2 = vmax.f32 %v1426_v36, 0.0  ;;  %v1834_v8 = vmul.f32 %v4032_v13, %v3684_v14  ;;  %v1793_v15 = vpop.f32.mrb[13].mxu1  ;;  %1991 = vmatpush1.bf16.msra.mxu0 %v1974_v54  ;;  %v1956_v1 = vmul.f32 %v5034_v23, %v1441_v59  ;;  %v1929_v14 = vpop.permute.xlu1 %1928 }
 0x3c0   : > { %v1952_v28 = vmul.f32 %v5024_v17, %v1439_v21  ;;  %v1440_v46 = vmax.f32 %v1424_v62, 0.0  ;;  %v1832_v60 = vmul.f32 %v4034_v22, %v1793_v15  ;;  %v3685_v45 = vpop.f32.mrb[14].mxu1  ;;  %v4042_v50 = vpop.eup %4041 }
 0x3c1   : > { %v1958_v35 = vmul.f32 %v5042_v20, %v1442_v2  ;;  %v5118_v48 = vpack.c.bf16 %v1442_v2, %v1441_v59  ;;  %v1850_v29 = vmax.f32 %v1834_v8, 0.0  ;;  %v1835_v57 = vmul.f32 %v4036_v30, %v3685_v45  ;;  %v1796_v38 = vpop.f32.mrb[15].mxu1  ;;  %v4044_v43 = vpop.eup %4043 }
 0x3c2   : > { %v1954_v55 = vmul.f32 %v5040_v24, %v1440_v46  ;;  %v5121_v3 = vpack.c.bf16 %v1440_v46, %v1439_v21  ;;  %v1848_v54 = vmax.f32 %v1832_v60, 0.0  ;;  %v1833_v47 = vmul.f32 %v4038_v44, %v1796_v38  ;;  %v1934_v30 = vpop.permute.xlu0 %1933 }
 0x3c3   : > { %v1978_v25 = vpack.c.bf16 %v1958_v35, %v1956_v1  ;;  %v1851_v5 = vmax.f32 %v1835_v57, 0.0  ;;  %v1957_v49 = vmul.f32 %v5034_v23, %v1850_v29 }
 0x3c4   : > { %v1976_v56 = vpack.c.bf16 %v1954_v55, %v1952_v28  ;;  %v1849_v37 = vmax.f32 %v1833_v47, 0.0  ;;  %v1953_v9 = vmul.f32 %v5024_v17, %v1848_v54  ;;  %v4046_v17 = vpop.eup %4045 }
 0x3c5   : > { %v1959_v33 = vmul.f32 %v5042_v20, %v1851_v5  ;;  %v5126_v31 = vpack.c.bf16 %v1851_v5, %v1850_v29  ;;  %v4048_v40 = vpop.eup %4047 }
 0x3c6   : > { %v1955_v51 = vmul.f32 %v5040_v24, %v1849_v37  ;;  %v5130_v32 = vpack.c.bf16 %v1849_v37, %v1848_v54  ;;  %v4050_v62 = vpop.eup %4049 }
 0x3c7   : > { %v1979_v0 = vpack.c.bf16 %v1959_v33, %v1957_v49  ;;  %v4052_v15 = vpop.eup %4051 }
 0x3c8   : > { %v1977_v58 = vpack.c.bf16 %v1955_v51, %v1953_v9  ;;  %v4054_v44 = vpop.eup %4053 }
 0x3ca   : > { %v3688_v34 = vpop.f32.mrb[16].mxu1  ;;  %1992 = vmatprep.subr.bf16.mxu0 %v1977_v58 }
 0x3cb   : > { %v1838_v23 = vmul.f32 %v4044_v43, %v3688_v34  ;;  %v1809_v20 = vpop.f32.mrb[17].mxu1  ;;  %1993 = vmatpush1.bf16.msra.mxu0 %v1976_v56  ;;  %v3911_v34 = vld [vmem:[%s4491_s27 + $0x40] sm:$0xff]  }
 0x3cc   : > { %v1836_v63 = vmul.f32 %v4040_v11, %v1809_v20  ;;  %v3689_v4 = vpop.f32.mrb[18].mxu1  ;;  %1994 = vmatprep.subr.bf16.mxu0 %v1979_v0  ;;  %v3913_v20 = vld [vmem:[%s4491_s27 + $0x48] sm:$0xff]   ;;  %3444 = vmatprep.subr.bf16.mxu1 %v3911_v34 }
 0x3cd   : > { %v1854_v59 = vmax.f32 %v1838_v23, 0.0  ;;  %v1839_v24 = vmul.f32 %v4042_v50, %v3689_v4  ;;  %v1812_v36 = vpop.f32.mrb[19].mxu1  ;;  %v3912_v23 = vld [vmem:[%s4491_s27] sm:$0xff]  }
 0x3ce   : > { %v1852_v13 = vmax.f32 %v1836_v63, 0.0  ;;  %v1837_v21 = vmul.f32 %v4046_v17, %v1812_v36  ;;  %v3656_v26 = vpop.f32.mrb[44].mxu0  ;;  %v3895_v63 = vld [vmem:[%s4497_s0 + $0x40] sm:$0xff]   ;;  %3445 = vmatpush3.bf16.msra.mxu1 %v3912_v23  ;;  %v3917_v36 = vld [vmem:[%s4491_s27 + $0x58] sm:$0xff]  }
 0x3cf   : > { %v1855_v22 = vmax.f32 %v1839_v24, 0.0  ;;  %v1429_v2 = vmul.f32 %v4048_v40, %v3656_v26  ;;  %v1400_v8 = vpop.f32.mrb[45].mxu0  ;;  %1995 = vmatpush1.bf16.msra.mxu0 %v1978_v25  ;;  %v1965_v1 = vmul.f32 %v1929_v14, %v1854_v59  ;;  %3446 = vmatprep.subr.bf16.mxu1 %v3913_v20  ;;  %v714_v4 = vld [vmem:[#allocation2] sm:$0xff]  ;;  %v3916_v24 = vld [vmem:[%s4491_s27 + $0x10] sm:$0xff]   ;;  %v3898_v40 = vld [vmem:[%s4497_s0 + $0x8] sm:$0xff]  }
 0x3d0   : > { %v1961_v28 = vmul.f32 %v5038_v53, %v1852_v13  ;;  %v1853_v46 = vmax.f32 %v1837_v21, 0.0  ;;  %v1427_v60 = vmul.f32 %v4050_v62, %v1400_v8  ;;  %v3657_v45 = vpop.f32.mrb[46].mxu0  ;;  %v3896_v17 = vld [vmem:[%s4497_s0] sm:$0xff]   ;;  %v3918_v21 = vld [vmem:[%s4491_s27 + $0x18] sm:$0xff]   ;;  %v715_v62 = vld [vmem:[#allocation2 + $0x8] sm:$0xff] }
 0x3d1   : > { %v1967_v35 = vmul.f32 %v1934_v30, %v1855_v22  ;;  %v5134_v29 = vpack.c.bf16 %v1855_v22, %v1854_v59  ;;  %v1445_v57 = vmax.f32 %v1429_v2, 0.0  ;;  %v1430_v38 = vmul.f32 %v4052_v15, %v3657_v45  ;;  %v1403_v55 = vpop.f32.mrb[47].mxu0  ;;  %v3897_v59 = vld [vmem:[%s4497_s0 + $0x48] sm:$0xff]   ;;  %v3919_v26 = vld [vmem:[%s4491_s27 + $0x60] sm:$0xff]   ;;  %v3901_v22 = vld [vmem:[%s4497_s0 + $0x58] sm:$0xff]  }
 0x3d2   : > { %v1963_v54 = vmul.f32 %v5044_v12, %v1853_v46  ;;  %v5137_v47 = vpack.c.bf16 %v1853_v46, %v1852_v13  ;;  %v1443_v6 = vmax.f32 %v1427_v60, 0.0  ;;  %v1428_v25 = vmul.f32 %v4054_v44, %v1403_v55  ;;  %v3899_v13 = vld [vmem:[%s4497_s0 + $0x50] sm:$0xff]   ;;  %v3920_v2 = vld [vmem:[%s4491_s27 + $0x20] sm:$0xff]   ;;  %v3921_v8 = vld [vmem:[%s4491_s27 + $0x68] sm:$0xff]  }
 0x3d3   : > { %v1446_v5 = vmax.f32 %v1430_v38, 0.0  ;;  %v1983_v56 = vpack.c.bf16 %v1967_v35, %v1965_v1  ;;  %v1964_v33 = vmul.f32 %v1929_v14, %v1445_v57  ;;  %v3900_v14 = vld [vmem:[%s4497_s0 + $0x10] sm:$0xff]   ;;  %v3902_v15 = vld [vmem:[%s4497_s0 + $0x18] sm:$0xff]   ;;  %v3922_v1 = vld [vmem:[%s4491_s27 + $0x28] sm:$0xff]  }
 0x3d4   : > { %v1444_v37 = vmax.f32 %v1428_v25, 0.0  ;;  %v1981_v49 = vpack.c.bf16 %v1963_v54, %v1961_v28  ;;  %v1960_v11 = vmul.f32 %v5038_v53, %v1443_v6  ;;  %v3914_v53 = vld [vmem:[%s4491_s27 + $0x8] sm:$0xff]   ;;  %v3923_v28 = vld [vmem:[%s4491_s27 + $0x70] sm:$0xff]   ;;  %v3904_v60 = vld [vmem:[%s4497_s0 + $0x20] sm:$0xff]  }
 0x3d5   : > { %v1966_v9 = vmul.f32 %v1934_v30, %v1446_v5  ;;  %v5139_v51 = vpack.c.bf16 %v1446_v5, %v1445_v57  ;;  %3447 = vmatpush3.bf16.msra.mxu1 %v3914_v53  ;;  %v3903_v30 = vld [vmem:[%s4497_s0 + $0x60] sm:$0xff]   ;;  %v716_v46 = vld [vmem:[#allocation2 + $0x10] sm:$0xff]  ;;  %v3905_v45 = vld [vmem:[%s4497_s0 + $0x68] sm:$0xff]  }
 0x3d6   : > { %v1962_v0 = vmul.f32 %v5044_v12, %v1444_v37  ;;  %v5143_v50 = vpack.c.bf16 %v1444_v37, %v1443_v6  ;;  %1996 = vmatprep.subr.bf16.mxu0 %v1981_v49  ;;  %v3915_v12 = vld [vmem:[%s4491_s27 + $0x50] sm:$0xff]   ;;  %v3906_v44 = vld [vmem:[%s4497_s0 + $0x28] sm:$0xff]   ;;  %v717_v57 = vld [vmem:[#allocation2 + $0x18] sm:$0xff] }
 0x3d7   : > { %v1982_v58 = vpack.c.bf16 %v1966_v9, %v1964_v33  ;;  %3448 = vmatprep.subr.bf16.mxu1 %v3915_v12  ;;  %v3907_v35 = vld [vmem:[%s4497_s0 + $0x70] sm:$0xff]   ;;  %v3909_v55 = vld [vmem:[%s4497_s0 + $0x78] sm:$0xff]   ;;  %v718_v6 = vld [vmem:[#allocation2 + $0x20] sm:$0xff] }
 0x3d8   : > { %v1980_v43 = vpack.c.bf16 %v1962_v0, %v1960_v11  ;;  %v3908_v38 = vld [vmem:[%s4497_s0 + $0x30] sm:$0xff]   ;;  %v3910_v54 = vld [vmem:[%s4497_s0 + $0x38] sm:$0xff]   ;;  %v719_v25 = vld [vmem:[#allocation2 + $0x28] sm:$0xff] }
 0x3d9   : > { %3449 = vmatpush3.bf16.msra.mxu1 %v3916_v24  ;;  %v720_v5 = vld [vmem:[#allocation2 + $0x30] sm:$0xff]  ;;  %v3925_v49 = vld [vmem:[%s4491_s27 + $0x78] sm:$0xff]  }
 0x3da   : > { %1997 = vmatpush1.bf16.msra.mxu0 %v1980_v43  ;;  %3450 = vmatprep.subr.bf16.mxu1 %v3917_v36  ;;  %v3924_v37 = vld [vmem:[%s4491_s27 + $0x30] sm:$0xff]  }
 0x3db   : > { %1998 = vmatprep.subr.bf16.mxu0 %v1983_v56  ;;  %v721_v56 = vld [vmem:[#allocation2 + $0x38] sm:$0xff] }
 0x3dd   : > { %3451 = vmatpush3.bf16.msra.mxu1 %v3918_v21 }
 0x3de   : > { %1999 = vmatpush1.bf16.msra.mxu0 %v1982_v58  ;;  %3452 = vmatprep.subr.bf16.mxu1 %v3919_v26 }
 0x3df   : > { %3508 = vmatprep.subr.bf16.mxu0 %v3895_v63 }
 0x3e1   : > { %2017 = vmatmul.mubr.bf16.vlgmr.msra.gmra.mrb[48].mxu0 %v714_v4  ;;  %3453 = vmatpush3.bf16.msra.mxu1 %v3920_v2 }
 0x3e2   : > { %2026 = vmatprep.mubr.bf16.mxu0 %v4257_v18  ;;  %3509 = vmatpush3.bf16.msra.mxu0 %v3896_v17 }
 0x3e3   : > { %3510 = vmatprep.subr.bf16.mxu0 %v3897_v59  ;;  %3454 = vmatprep.subr.bf16.mxu1 %v3921_v8 }
 0x3e5   : > { %3455 = vmatpush3.bf16.msra.mxu1 %v3922_v1 }
 0x3e6   : > { %3511 = vmatpush3.bf16.msra.mxu0 %v3898_v40  ;;  %3456 = vmatprep.subr.bf16.mxu1 %v3923_v28 }
 0x3e7   : > { %3512 = vmatprep.subr.bf16.mxu0 %v3899_v13 }
 0x3e9   : > { %2027 = vmatmul.mubr.bf16.gmra.mrb[52].mxu0 %v715_v62  ;;  %3457 = vmatpush3.bf16.msra.mxu1 %v3924_v37 }
 0x3ea   : > { %2036 = vmatprep.mubr.bf16.mxu0 %v4257_v18  ;;  %3513 = vmatpush3.bf16.msra.mxu0 %v3900_v14 }
 0x3eb   : > { %3514 = vmatprep.subr.bf16.mxu0 %v3901_v22  ;;  %3458 = vmatprep.subr.bf16.mxu1 %v3925_v49 }
 0x3ee   : > { %3515 = vmatpush3.bf16.msra.mxu0 %v3902_v15 }
 0x3ef   : > { %3516 = vmatprep.subr.bf16.mxu0 %v3903_v30 }
 0x3f1   : > { %2037 = vmatmul.mubr.bf16.gmra.mrb[56].mxu0 %v716_v46 }
 0x3f2   : > { %2046 = vmatprep.mubr.bf16.mxu0 %v4257_v18  ;;  %3517 = vmatpush3.bf16.msra.mxu0 %v3904_v60 }
 0x3f3   : > { %3518 = vmatprep.subr.bf16.mxu0 %v3905_v45 }
 0x3f6   : > { %3519 = vmatpush3.bf16.msra.mxu0 %v3906_v44 }
 0x3f7   : > { %3520 = vmatprep.subr.bf16.mxu0 %v3907_v35 }
 0x3f9   : > { %2047 = vmatmul.mubr.bf16.gmra.mrb[60].mxu0 %v717_v57 }
 0x3fa   : > { %2056 = vmatprep.mubr.bf16.mxu0 %v4257_v18  ;;  %3521 = vmatpush3.bf16.msra.mxu0 %v3908_v38 }
 0x3fb   : > { %3522 = vmatprep.subr.bf16.mxu0 %v3909_v55 }
 0x3fe   : > { %3523 = vmatpush3.bf16.msra.mxu0 %v3910_v54 }
 0x401   : > { %2057 = vmatmul.mubr.bf16.gmra.mrb[64].mxu0 %v718_v6 }
 0x402   : > { %2066 = vmatprep.mubr.bf16.mxu0 %v4257_v18 }
 0x409   : > { %2067 = vmatmul.mubr.bf16.gmra.mrb[68].mxu0 %v719_v25 }
 0x40a   : > { %2076 = vmatprep.mubr.bf16.mxu0 %v4257_v18 }
 0x411   : > { %2077 = vmatmul.mubr.bf16.gmra.mrb[72].mxu0 %v720_v5 }
 0x412   : > { %2086 = vmatprep.mubr.bf16.mxu0 %v4257_v18  ;;  %v3926_v18 = vld [vmem:[%s4491_s27 + $0x38] sm:$0xff]  }
 0x413   : > { %3459 = vmatpush3.bf16.msra.mxu1 %v3926_v18 }
 0x419   : > { %2087 = vmatmul.mubr.bf16.gmra.mrb[76].mxu0 %v721_v56 }
 0x41a   : > { %2656 = vmatprep.mubr.bf16.mxu0 %v5083_v42 }
 0x421   : > { %2657 = vmatmul.mubr.bf16.vlgmr.msra.gmra.mrb[80].mxu0 %v5068_v10 }
 0x422   : > { %2664 = vmatprep.mubr.bf16.mxu0 %v5078_v39 }
 0x429   : > { %2665 = vmatmul.mubr.bf16.gmra.mrb[84].mxu0 %v5065_v27 }
 0x42a   : > { %2672 = vmatprep.mubr.bf16.mxu0 %v5111_v7 }
 0x431   : > { %2673 = vmatmul.mubr.bf16.gmra.mrb[88].mxu0 %v5099_v52 }
 0x432   : > { %2680 = vmatprep.mubr.bf16.mxu0 %v5106_v16 }
 0x439   : > { %2681 = vmatmul.mubr.bf16.gmra.mrb[92].mxu0 %v5096_v41 }
 0x43a   : > { %2688 = vmatprep.mubr.bf16.mxu0 %v5130_v32 }
 0x441   : > { %2689 = vmatmul.mubr.bf16.gmra.mrb[96].mxu0 %v5121_v3 }
 0x442   : > { %2696 = vmatprep.mubr.bf16.mxu0 %v5126_v31 }
 0x449   : > { %2697 = vmatmul.mubr.bf16.gmra.mrb[100].mxu0 %v5118_v48 }
 0x44a   : > { %2704 = vmatprep.mubr.bf16.mxu0 %v5137_v47 }
 0x451   : > { %2705 = vmatmul.mubr.bf16.gmra.mrb[104].mxu0 %v5143_v50 }
 0x452   : > { %2712 = vmatprep.mubr.bf16.mxu0 %v5134_v29 }
 0x459   : > { %2713 = vmatmul.mubr.bf16.gmra.mrb[108].mxu0 %v5139_v51 }
 0x4b4   : > { %v2018_v27 = vpop.f32.mrb[48].mxu0 }
 0x4b5   : > { %v2020_v10 = vpop.f32.mrb[49].mxu0 }
 0x4b6   : > { %v2022_v39 = vpop.f32.mrb[50].mxu0 }
 0x4b7   : > { %v2097_v42 = vpack.c.bf16 %v2022_v39, %v2018_v27  ;;  %v2024_v41 = vpop.f32.mrb[51].mxu0 }
 0x4b8   : > { %v2098_v52 = vpack.c.bf16 %v2024_v41, %v2020_v10 }
 0x4ba   : > { %2273 = vmatprep.mubr.bf16.mxu1 %v2098_v52 }
 0x4bb   : > { %2274 = vmatmul.mubr.bf16.vlgmr.msra.gmra.mrb[20].mxu1 %v2097_v42 }
 0x4bc   : > { %v2028_v16 = vpop.f32.mrb[52].mxu0 }
 0x4bd   : > { %v2030_v7 = vpop.f32.mrb[53].mxu0 }
 0x4be   : > { %v2032_v3 = vpop.f32.mrb[54].mxu0 }
 0x4bf   : > { %v2099_v48 = vpack.c.bf16 %v2032_v3, %v2028_v16  ;;  %v2034_v31 = vpop.f32.mrb[55].mxu0 }
 0x4c0   : > { %v2100_v32 = vpack.c.bf16 %v2034_v31, %v2030_v7 }
 0x4c2   : > { %2281 = vmatprep.mubr.bf16.mxu1 %v2100_v32 }
 0x4c3   : > { %2282 = vmatmul.mubr.bf16.gmra.mrb[24].mxu1 %v2099_v48 }
 0x4c4   : > { %v2038_v47 = vpop.f32.mrb[56].mxu0 }
 0x4c5   : > { %v2040_v29 = vpop.f32.mrb[57].mxu0 }
 0x4c6   : > { %v2042_v33 = vpop.f32.mrb[58].mxu0 }
 0x4c7   : > { %v2101_v9 = vpack.c.bf16 %v2042_v33, %v2038_v47  ;;  %v2044_v51 = vpop.f32.mrb[59].mxu0 }
 0x4c8   : > { %v2102_v11 = vpack.c.bf16 %v2044_v51, %v2040_v29 }
 0x4ca   : > { %2289 = vmatprep.mubr.bf16.mxu1 %v2102_v11 }
 0x4cb   : > { %2290 = vmatmul.mubr.bf16.gmra.mrb[28].mxu1 %v2101_v9 }
 0x4cc   : > { %v2048_v0 = vpop.f32.mrb[60].mxu0 }
 0x4cd   : > { %v2050_v50 = vpop.f32.mrb[61].mxu0 }
 0x4ce   : > { %v2052_v58 = vpop.f32.mrb[62].mxu0 }
 0x4cf   : > { %v2103_v43 = vpack.c.bf16 %v2052_v58, %v2048_v0  ;;  %v2054_v34 = vpop.f32.mrb[63].mxu0  ;;  %v4260_v58 = vmov 0.0|0.0  }
 0x4d0   : > { %v2104_v23 = vpack.c.bf16 %v2054_v34, %v2050_v50  ;;  %3760 = vmatprep.subr.bf16.mxu1 %v4260_v58 }
 0x4d2   : > { %2297 = vmatprep.mubr.bf16.mxu1 %v2104_v23 }
 0x4d3   : > { %2298 = vmatmul.mubr.bf16.gmra.mrb[32].mxu1 %v2103_v43 }
 0x4d4   : > { %v2058_v20 = vpop.f32.mrb[64].mxu0 }
 0x4d5   : > { %v2060_v63 = vpop.f32.mrb[65].mxu0 }
 0x4d6   : > { %v2062_v53 = vpop.f32.mrb[66].mxu0 }
 0x4d7   : > { %v2105_v12 = vpack.c.bf16 %v2062_v53, %v2058_v20  ;;  %v2064_v4 = vpop.f32.mrb[67].mxu0 }
 0x4d8   : > { %v2106_v17 = vpack.c.bf16 %v2064_v4, %v2060_v63 }
 0x4da   : > { %2305 = vmatprep.mubr.bf16.mxu1 %v2106_v17 }
 0x4db   : > { %2306 = vmatmul.mubr.bf16.gmra.mrb[36].mxu1 %v2105_v12 }
 0x4dc   : > { %v2068_v59 = vpop.f32.mrb[68].mxu0 }
 0x4dd   : > { %v2070_v24 = vpop.f32.mrb[69].mxu0 }
 0x4de   : > { %v2072_v36 = vpop.f32.mrb[70].mxu0 }
 0x4df   : > { %v2107_v40 = vpack.c.bf16 %v2072_v36, %v2068_v59  ;;  %v2074_v13 = vpop.f32.mrb[71].mxu0 }
 0x4e0   : > { %v2108_v21 = vpack.c.bf16 %v2074_v13, %v2070_v24 }
 0x4e2   : > { %2313 = vmatprep.mubr.bf16.mxu1 %v2108_v21 }
 0x4e3   : > { %2314 = vmatmul.mubr.bf16.gmra.mrb[40].mxu1 %v2107_v40 }
 0x4e4   : > { %v2078_v26 = vpop.f32.mrb[72].mxu0 }
 0x4e5   : > { %v2080_v62 = vpop.f32.mrb[73].mxu0 }
 0x4e6   : > { %v2082_v14 = vpop.f32.mrb[74].mxu0 }
 0x4e7   : > { %v2109_v22 = vpack.c.bf16 %v2082_v14, %v2078_v26  ;;  %v2084_v2 = vpop.f32.mrb[75].mxu0  ;;  %v5236_v26 = vld [vmem:[%s5613_s6] ss:$0 sm:$0xff] }
 0x4e8   : > { %v2110_v8 = vpack.c.bf16 %v2084_v2, %v2080_v62  ;;  %v2389_v2 = vpop.permute.xlu1 %2388 }
 0x4ea   : > { %2321 = vmatprep.mubr.bf16.mxu1 %v2110_v8  ;;  %v5243_v8 = vld [vmem:[%s5614_s28] ss:$0 sm:$0xff] }
 0x4eb   : > { %2322 = vmatmul.mubr.bf16.gmra.mrb[44].mxu1 %v2109_v22 }
 0x4ec   : > { %v2088_v15 = vpop.f32.mrb[76].mxu0 }
 0x4ed   : > { %v2090_v30 = vpop.f32.mrb[77].mxu0 }
 0x4ee   : > { %v2092_v1 = vpop.f32.mrb[78].mxu0 }
 0x4ef   : > { %v2111_v28 = vpack.c.bf16 %v2092_v1, %v2088_v15  ;;  %v2094_v46 = vpop.f32.mrb[79].mxu0 }
 0x4f0   : > { %v2112_v60 = vpack.c.bf16 %v2094_v46, %v2090_v30  ;;  %v2394_v46 = vpop.permute.xlu0 %2393 }
 0x4f2   : > { %2329 = vmatprep.mubr.bf16.mxu1 %v2112_v60 }
 0x4f3   : > { %2330 = vmatmul.mubr.bf16.gmra.mrb[48].mxu1 %v2111_v28 }
 0x4f4   : > { %v3524_v45 = vpop.f32.mrb[80].mxu0  ;;  %3722 = vmatprep.mubr.msk.f32.mxu1 %vm4259_vm0, %v4258_v19 }
 0x4f5   : > { %v3525_v44 = vpop.f32.mrb[81].mxu0 }
 0x4f6   : > { %v3526_v35 = vadd.f32 %v3525_v44, %v3524_v45  ;;  %v3527_v57 = vpop.f32.mrb[82].mxu0 }
 0x4f7   : > { %v3528_v38 = vpop.f32.mrb[83].mxu0 }
 0x4f8   : > { %v3529_v55 = vadd.f32 %v3528_v38, %v3527_v57  ;;  %v2659_v30 = vadd.f32 %v3526_v35, %v5236_v26 }
 0x4fa   : > { %v2662_v60 = vadd.f32 %v3529_v55, %v5236_v26  ;;  %v2721_v57 = vmax.f32 %v2659_v30, 0.0 }
 0x4fc   : > { %v3530_v54 = vpop.f32.mrb[84].mxu0 }
 0x4fd   : > { %v3531_v6 = vpop.f32.mrb[85].mxu0 }
 0x4fe   : > { %v5202_v25 = vadd.f32 %v3531_v6, %v3530_v54  ;;  %v3533_v5 = vpop.f32.mrb[86].mxu0 }
 0x4ff   : > { %v3534_v56 = vpop.f32.mrb[87].mxu0 }
 0x500   : > { %v5204_v37 = vadd.f32 %v3534_v56, %v3533_v5  ;;  %v2722_v56 = vmax.f32 %v2662_v60, 0.0  ;;  %v2667_v55 = vadd.f32 %v5202_v25, %v5236_v26 }
 0x504   : > { %v3536_v49 = vpop.f32.mrb[88].mxu0 }
 0x505   : > { %v3537_v18 = vpop.f32.mrb[89].mxu0 }
 0x506   : > { %v5206_v27 = vadd.f32 %v3537_v18, %v3536_v49  ;;  %v3539_v10 = vpop.f32.mrb[90].mxu0 }
 0x507   : > { %v3540_v39 = vpop.f32.mrb[91].mxu0 }
 0x508   : > { %v5208_v42 = vadd.f32 %v3540_v39, %v3539_v10  ;;  %v2399_v39 = vpop.permute.xlu1 %2398 }
 0x50c   : > { %v3542_v41 = vpop.f32.mrb[92].mxu0 }
 0x50d   : > { %v3543_v52 = vpop.f32.mrb[93].mxu0 }
 0x50e   : > { %v5210_v16 = vadd.f32 %v3543_v52, %v3542_v41  ;;  %v3545_v7 = vpop.f32.mrb[94].mxu0 }
 0x50f   : > { %v3546_v3 = vpop.f32.mrb[95].mxu0 }
 0x510   : > { %v5212_v48 = vadd.f32 %v3546_v3, %v3545_v7 }
 0x514   : > { %v3548_v31 = vpop.f32.mrb[96].mxu0 }
 0x515   : > { %v3549_v32 = vpop.f32.mrb[97].mxu0 }
 0x516   : > { %v5214_v47 = vadd.f32 %v3549_v32, %v3548_v31  ;;  %v3551_v29 = vpop.f32.mrb[98].mxu0  ;;  %v2404_v31 = vpop.permute.xlu0 %2403  ;;  %v2670_v32 = vadd.f32 %v5204_v37, %v5236_v26 }
 0x517   : > { %v3552_v33 = vpop.f32.mrb[99].mxu0 }
 0x518   : > { %v5216_v9 = vadd.f32 %v3552_v33, %v3551_v29 }
 0x51c   : > { %v3554_v51 = vpop.f32.mrb[100].mxu0 }
 0x51d   : > { %v3555_v11 = vpop.f32.mrb[101].mxu0 }
 0x51e   : > { %v5218_v0 = vadd.f32 %v3555_v11, %v3554_v51  ;;  %v3557_v50 = vpop.f32.mrb[102].mxu0  ;;  %v2723_v11 = vmax.f32 %v2667_v55, 0.0 }
 0x51f   : > { %v3558_v43 = vpop.f32.mrb[103].mxu0 }
 0x520   : > { %v5221_v34 = vadd.f32 %v3558_v43, %v3557_v50 }
 0x524   : > { %v3560_v23 = vpop.f32.mrb[104].mxu0 }
 0x525   : > { %v3561_v20 = vpop.f32.mrb[105].mxu0 }
 0x526   : > { %v5223_v63 = vadd.f32 %v3561_v20, %v3560_v23  ;;  %v3563_v53 = vpop.f32.mrb[106].mxu0  ;;  %v2724_v20 = vmax.f32 %v2670_v32, 0.0 }
 0x527   : > { %v3564_v12 = vpop.f32.mrb[107].mxu0 }
 0x528   : > { %v5225_v4 = vadd.f32 %v3564_v12, %v3563_v53 }
 0x52c   : > { %v3566_v17 = vpop.f32.mrb[108].mxu0 }
 0x52d   : > { %v3567_v59 = vpop.f32.mrb[109].mxu0 }
 0x52e   : > { %v5227_v24 = vadd.f32 %v3567_v59, %v3566_v17  ;;  %v3569_v36 = vpop.f32.mrb[110].mxu0  ;;  %v2409_v59 = vpop.permute.xlu1 %2408 }
 0x52f   : > { %v3570_v40 = vpop.f32.mrb[111].mxu0 }
 0x530   : > { %v5229_v13 = vadd.f32 %v3570_v40, %v3569_v36  ;;  %v2675_v40 = vadd.f32 %v5206_v27, %v5236_v26 }
 0x58e   : > { %v3460_v21 = vpop.f32.mrb[20].mxu1 }
 0x58f   : > { %v3461_v62 = vpop.f32.mrb[21].mxu1 }
 0x590   : > { %v3462_v14 = vadd.f32 %v3461_v62, %v3460_v21  ;;  %v3463_v22 = vpop.f32.mrb[22].mxu1 }
 0x591   : > { %v3464_v15 = vpop.f32.mrb[23].mxu1 }
 0x592   : > { %v2466_v1 = vmul.f32 %v3462_v14, %v2389_v2  ;;  %v3465_v28 = vadd.f32 %v3464_v15, %v3463_v22  ;;  %v2414_v22 = vpop.permute.xlu0 %2413  ;;  %v2678_v2 = vadd.f32 %v5208_v42, %v5236_v26 }
 0x594   : > { %v2489_v45 = vadd.f32 %v5243_v8, %v2466_v1  ;;  %v2467_v44 = vmul.f32 %v3465_v28, %v2394_v46  ;;  %v2725_v28 = vmax.f32 %v2675_v40, 0.0 }
 0x596   : > { %v2505_v38 = vmax.f32 %v2489_v45, 0.0  ;;  %v2490_v54 = vadd.f32 %v5243_v8, %v2467_v44  ;;  %v3466_v6 = vpop.f32.mrb[24].mxu1  ;;  %v2726_v44 = vmax.f32 %v2678_v2, 0.0 }
 0x597   : > { %v3467_v5 = vpop.f32.mrb[25].mxu1 }
 0x598   : > { %v5249_v49 = vadd.f32 %v2721_v57, %v2505_v38  ;;  %v2506_v18 = vmax.f32 %v2490_v54, 0.0  ;;  %v3468_v10 = vadd.f32 %v3467_v5, %v3466_v6  ;;  %v3469_v35 = vpop.f32.mrb[26].mxu1  ;;  %v2419_v6 = vpop.permute.xlu1 %2418 }
 0x599   : > { %v3470_v41 = vpop.f32.mrb[27].mxu1 }
 0x59a   : > { %v5253_v52 = vadd.f32 %v2722_v56, %v2506_v18  ;;  %v2468_v7 = vmul.f32 %v3468_v10, %v2399_v39  ;;  %v3471_v3 = vadd.f32 %v3470_v41, %v3469_v35  ;;  %v2683_v56 = vadd.f32 %v5210_v16, %v5236_v26  ;;  %v2424_v39 = vpop.permute.xlu0 %2423 }
 0x59b   : > { %v2686_v41 = vadd.f32 %v5212_v48, %v5236_v26 }
 0x59c   : > { %v2491_v29 = vadd.f32 %v5243_v8, %v2468_v7  ;;  %v2469_v33 = vmul.f32 %v3471_v3, %v2404_v31  ;;  %v3761_v51 = vpack.c.bf16 %v5253_v52, %v5249_v49  ;;  %v2727_v31 = vmax.f32 %v2683_v56, 0.0 }
 0x59e   : > { %v2507_v50 = vmax.f32 %v2491_v29, 0.0  ;;  %v2492_v43 = vadd.f32 %v5243_v8, %v2469_v33  ;;  %v3472_v23 = vpop.f32.mrb[28].mxu1  ;;  %3762 = vmatpush3.bf16.msra.mxu1 %v3761_v51  ;;  %v2728_v51 = vmax.f32 %v2686_v41, 0.0 }
 0x59f   : > { %v3473_v25 = vpop.f32.mrb[29].mxu1  ;;  %3763 = vmatprep.subr.bf16.mxu1 %v4260_v58 }
 0x5a0   : > { %v5262_v53 = vadd.f32 %v2723_v11, %v2507_v50  ;;  %v2508_v12 = vmax.f32 %v2492_v43, 0.0  ;;  %v3474_v37 = vadd.f32 %v3473_v25, %v3472_v23  ;;  %v3475_v17 = vpop.f32.mrb[30].mxu1  ;;  %v2429_v23 = vpop.permute.xlu1 %2428 }
 0x5a1   : > { %v3476_v36 = vpop.f32.mrb[31].mxu1 }
 0x5a2   : > { %v5266_v21 = vadd.f32 %v2724_v20, %v2508_v12  ;;  %v2470_v62 = vmul.f32 %v3474_v37, %v2409_v59  ;;  %v3477_v14 = vadd.f32 %v3476_v36, %v3475_v17  ;;  %v2691_v20 = vadd.f32 %v5214_v47, %v5236_v26  ;;  %v2434_v59 = vpop.permute.xlu0 %2433 }
 0x5a3   : > { %v2694_v36 = vadd.f32 %v5216_v9, %v5236_v26 }
 0x5a4   : > { %v2493_v15 = vadd.f32 %v5243_v8, %v2470_v62  ;;  %v2471_v30 = vmul.f32 %v3477_v14, %v2414_v22  ;;  %v3764_v1 = vpack.c.bf16 %v5266_v21, %v5262_v53  ;;  %v2729_v22 = vmax.f32 %v2691_v20, 0.0 }
 0x5a6   : > { %v2509_v46 = vmax.f32 %v2493_v15, 0.0  ;;  %v2494_v60 = vadd.f32 %v5243_v8, %v2471_v30  ;;  %v3478_v45 = vpop.f32.mrb[32].mxu1  ;;  %3765 = vmatpush3.bf16.msra.mxu1 %v3764_v1  ;;  %v2730_v1 = vmax.f32 %v2694_v36, 0.0 }
 0x5a7   : > { %v3479_v27 = vpop.f32.mrb[33].mxu1  ;;  %3766 = vmatprep.subr.bf16.mxu1 %v4260_v58 }
 0x5a8   : > { %v5275_v57 = vadd.f32 %v2725_v28, %v2509_v46  ;;  %v2510_v38 = vmax.f32 %v2494_v60, 0.0  ;;  %v3480_v42 = vadd.f32 %v3479_v27, %v3478_v45  ;;  %v3481_v54 = vpop.f32.mrb[34].mxu1  ;;  %v2439_v45 = vpop.permute.xlu1 %2438 }
 0x5a9   : > { %v3482_v5 = vpop.f32.mrb[35].mxu1 }
 0x5aa   : > { %v5279_v18 = vadd.f32 %v2726_v44, %v2510_v38  ;;  %v2472_v10 = vmul.f32 %v3480_v42, %v2419_v6  ;;  %v3483_v35 = vadd.f32 %v3482_v5, %v3481_v54  ;;  %v2699_v44 = vadd.f32 %v5218_v0, %v5236_v26  ;;  %v2444_v6 = vpop.permute.xlu0 %2443 }
 0x5ab   : > { %v2702_v5 = vadd.f32 %v5221_v34, %v5236_v26 }
 0x5ac   : > { %v2495_v55 = vadd.f32 %v5243_v8, %v2472_v10  ;;  %v2473_v7 = vmul.f32 %v3483_v35, %v2424_v39  ;;  %v3767_v3 = vpack.c.bf16 %v5279_v18, %v5275_v57  ;;  %v2731_v39 = vmax.f32 %v2699_v44, 0.0 }
 0x5ae   : > { %v2511_v32 = vmax.f32 %v2495_v55, 0.0  ;;  %v2496_v29 = vadd.f32 %v5243_v8, %v2473_v7  ;;  %v3484_v33 = vpop.f32.mrb[36].mxu1  ;;  %3768 = vmatpush3.bf16.msra.mxu1 %v3767_v3  ;;  %v2732_v3 = vmax.f32 %v2702_v5, 0.0 }
 0x5af   : > { %v3485_v16 = vpop.f32.mrb[37].mxu1  ;;  %3769 = vmatprep.subr.bf16.mxu1 %v4260_v58 }
 0x5b0   : > { %v5288_v11 = vadd.f32 %v2727_v31, %v2511_v32  ;;  %v2512_v50 = vmax.f32 %v2496_v29, 0.0  ;;  %v3486_v48 = vadd.f32 %v3485_v16, %v3484_v33  ;;  %v3487_v43 = vpop.f32.mrb[38].mxu1  ;;  %v2449_v33 = vpop.permute.xlu1 %2448 }
 0x5b1   : > { %v3488_v25 = vpop.f32.mrb[39].mxu1 }
 0x5b2   : > { %v5292_v12 = vadd.f32 %v2728_v51, %v2512_v50  ;;  %v2474_v37 = vmul.f32 %v3486_v48, %v2429_v23  ;;  %v3489_v17 = vadd.f32 %v3488_v25, %v3487_v43  ;;  %v2707_v51 = vadd.f32 %v5223_v63, %v5236_v26  ;;  %v2454_v23 = vpop.permute.xlu0 %2453 }
 0x5b3   : > { %v2710_v25 = vadd.f32 %v5225_v4, %v5236_v26 }
 0x5b4   : > { %v2497_v40 = vadd.f32 %v5243_v8, %v2474_v37  ;;  %v2475_v62 = vmul.f32 %v3489_v17, %v2434_v59  ;;  %v3770_v14 = vpack.c.bf16 %v5292_v12, %v5288_v11  ;;  %v2733_v59 = vmax.f32 %v2707_v51, 0.0 }
 0x5b6   : > { %v2513_v2 = vmax.f32 %v2497_v40, 0.0  ;;  %v2498_v15 = vadd.f32 %v5243_v8, %v2475_v62  ;;  %v3490_v30 = vpop.f32.mrb[40].mxu1  ;;  %3771 = vmatpush3.bf16.msra.mxu1 %v3770_v14  ;;  %v2734_v14 = vmax.f32 %v2710_v25, 0.0 }
 0x5b7   : > { %v3491_v47 = vpop.f32.mrb[41].mxu1  ;;  %3772 = vmatprep.subr.bf16.mxu1 %v4260_v58 }
 0x5b8   : > { %v5301_v28 = vadd.f32 %v2729_v22, %v2513_v2  ;;  %v2514_v46 = vmax.f32 %v2498_v15, 0.0  ;;  %v3492_v9 = vadd.f32 %v3491_v47, %v3490_v30  ;;  %v3493_v60 = vpop.f32.mrb[42].mxu1  ;;  %v2459_v30 = vpop.permute.xlu1 %2458 }
 0x5b9   : > { %v3494_v27 = vpop.f32.mrb[43].mxu1 }
 0x5ba   : > { %v5305_v38 = vadd.f32 %v2730_v1, %v2514_v46  ;;  %v2476_v42 = vmul.f32 %v3492_v9, %v2439_v45  ;;  %v3495_v54 = vadd.f32 %v3494_v27, %v3493_v60  ;;  %v2715_v1 = vadd.f32 %v5227_v24, %v5236_v26  ;;  %v2464_v45 = vpop.permute.xlu0 %2463 }
 0x5bb   : > { %v2718_v27 = vadd.f32 %v5229_v13, %v5236_v26  ;;  %v2824_v26 = vmul.f32 %v5253_v52, %v5253_v52 }
 0x5bc   : > { %v2499_v56 = vadd.f32 %v5243_v8, %v2476_v42  ;;  %v2477_v10 = vmul.f32 %v3495_v54, %v2444_v6  ;;  %v3773_v35 = vpack.c.bf16 %v5305_v38, %v5301_v28  ;;  %v2735_v6 = vmax.f32 %v2715_v1, 0.0 }
 0x5bd   : > { %v2736_v24 = vmax.f32 %v2718_v27, 0.0  ;;  %v2832_v51 = vmul.f32 %v5305_v38, %v5305_v38 }
 0x5be   : > { %v2515_v41 = vmax.f32 %v2499_v56, 0.0  ;;  %v2500_v55 = vadd.f32 %v5243_v8, %v2477_v10  ;;  %v3496_v7 = vpop.f32.mrb[44].mxu1  ;;  %3774 = vmatpush3.bf16.msra.mxu1 %v3773_v35  ;;  %v5391_v1 = vpop.permute.xlu0 %3057 }
 0x5bf   : > { %v3497_v0 = vpop.f32.mrb[45].mxu1  ;;  %3775 = vmatprep.subr.bf16.mxu1 %v4260_v58 }
 0x5c0   : > { %v5314_v31 = vadd.f32 %v2731_v39, %v2515_v41  ;;  %v2516_v32 = vmax.f32 %v2500_v55, 0.0  ;;  %v3498_v34 = vadd.f32 %v3497_v0, %v3496_v7  ;;  %v3499_v29 = vpop.f32.mrb[46].mxu1  ;;  %v2823_v41 = vmul.f32 %v5249_v49, %v5249_v49 }
 0x5c1   : > { %v3500_v16 = vpop.f32.mrb[47].mxu1  ;;  %v2826_v7 = vmul.f32 %v5266_v21, %v5266_v21  ;;  %v2825_v0 = vmul.f32 %v5262_v53, %v5262_v53 }
 0x5c2   : > { %v5318_v50 = vadd.f32 %v2732_v3, %v2516_v32  ;;  %v2478_v48 = vmul.f32 %v3498_v34, %v2449_v33  ;;  %v3501_v43 = vadd.f32 %v3500_v16, %v3499_v29  ;;  %v3785_v55 = vpack.c.bf16 %v2824_v26, %v2823_v41 }
 0x5c3   : > { %v3788_v3 = vpack.c.bf16 %v2826_v7, %v2825_v0  ;;  %v2828_v32 = vmul.f32 %v5279_v18, %v5279_v18  ;;  %v2827_v34 = vmul.f32 %v5275_v57, %v5275_v57  ;;  %v2830_v33 = vmul.f32 %v5292_v12, %v5292_v12  ;;  %v4062_v0 = vld [vmem:[#allocation10 + $0x28] sm:$0xff] }
 0x5c4   : > { %v2501_v20 = vadd.f32 %v5243_v8, %v2478_v48  ;;  %v2479_v37 = vmul.f32 %v3501_v43, %v2454_v23  ;;  %v3776_v17 = vpack.c.bf16 %v5318_v50, %v5314_v31  ;;  %v2831_v48 = vmul.f32 %v5301_v28, %v5301_v28 }
 0x5c5   : > { %v3791_v29 = vpack.c.bf16 %v2828_v32, %v2827_v34  ;;  %v2834_v23 = vmul.f32 %v5318_v50, %v5318_v50  ;;  %v2833_v25 = vmul.f32 %v5314_v31, %v5314_v31  ;;  %v4063_v32 = vld [vmem:[#allocation10 + $0x30] sm:$0xff] }
 0x5c6   : > { %v2517_v36 = vmax.f32 %v2501_v20, 0.0  ;;  %v2502_v40 = vadd.f32 %v5243_v8, %v2479_v37  ;;  %v3502_v62 = vpop.f32.mrb[48].mxu1  ;;  %3777 = vmatpush3.bf16.msra.mxu1 %v3776_v17  ;;  %v3797_v43 = vpack.c.bf16 %v2832_v51, %v2831_v48  ;;  %v5418_v34 = vmul.f32 0.5, %v4063_v32  ;;  %v4066_v51 = vld [vmem:[#allocation10 + $0x48] sm:$0xff] }
 0x5c7   : > { %v3503_v63 = vpop.f32.mrb[49].mxu1  ;;  %3778 = vmatprep.subr.bf16.mxu1 %v4260_v58  ;;  %v3800_v20 = vpack.c.bf16 %v2834_v23, %v2833_v25  ;;  %v5424_v48 = vmul.f32 0.5, %v4066_v51  ;;  %v4068_v25 = vld [vmem:[#allocation10 + $0x58] sm:$0xff] }
 0x5c8   : > { %v5327_v22 = vadd.f32 %v2733_v59, %v2517_v36  ;;  %v2518_v2 = vmax.f32 %v2502_v40, 0.0  ;;  %v3504_v4 = vadd.f32 %v3503_v63, %v3502_v62  ;;  %v3505_v15 = vpop.f32.mrb[50].mxu1 }
 0x5c9   : > { %v3506_v47 = vpop.f32.mrb[51].mxu1 }
 0x5ca   : > { %v5331_v46 = vadd.f32 %v2734_v14, %v2518_v2  ;;  %v2480_v9 = vmul.f32 %v3504_v4, %v2459_v30  ;;  %v3507_v60 = vadd.f32 %v3506_v47, %v3505_v15  ;;  %v2835_v17 = vmul.f32 %v5327_v22, %v5327_v22 }
 0x5cc   : > { %v2503_v44 = vadd.f32 %v5243_v8, %v2480_v9  ;;  %v2481_v42 = vmul.f32 %v3507_v60, %v2464_v45  ;;  %v3779_v54 = vpack.c.bf16 %v5331_v46, %v5327_v22  ;;  %v2836_v37 = vmul.f32 %v5331_v46, %v5331_v46  ;;  %v5393_v9 = vpop.permute.xlu1 %3052 }
 0x5ce   : > { %v2519_v5 = vmax.f32 %v2503_v44, 0.0  ;;  %v2504_v56 = vadd.f32 %v5243_v8, %v2481_v42  ;;  %3780 = vmatpush3.bf16.msra.mxu1 %v3779_v54  ;;  %v786_v8 = vld [vmem:[%s5615_s7] sm:$0x1]  ;;  %v3803_v59 = vpack.c.bf16 %v2836_v37, %v2835_v17  ;;  %v5395_v44 = vpop.permute.xlu0 %3067 }
 0x5cf   : > { %3781 = vmatprep.subr.bf16.mxu1 %v4260_v58  ;;  %v4057_v42 = vld [vmem:[#allocation10] sm:$0xff] }
 0x5d0   : > { %v5340_v10 = vadd.f32 %v2735_v6, %v2519_v5  ;;  %v2520_v35 = vmax.f32 %v2504_v56, 0.0  ;;  %v5399_v54 = vmul.f32 0.5, %v4057_v42  ;;  %v4058_v5 = vld [vmem:[#allocation10 + $0x8] sm:$0xff]  ;;  %v4069_v37 = vld [vmem:[#allocation10 + $0x60] sm:$0xff] }
 0x5d1   : > { %v5404_v56 = vmul.f32 0.5, %v4058_v5  ;;  %v5430_v17 = vmul.f32 0.5, %v4069_v37 }
 0x5d2   : > { %v5342_v39 = vadd.f32 %v2736_v24, %v2520_v35  ;;  %v2837_v40 = vmul.f32 %v5340_v10, %v5340_v10  ;;  %v4059_v24 = vld [vmem:[#allocation10 + $0x10] sm:$0xff] }
 0x5d3   : > { %v5406_v35 = vmul.f32 0.5, %v4059_v24 }
 0x5d4   : > { %v3782_v13 = vpack.c.bf16 %v5342_v39, %v5340_v10  ;;  %v2838_v36 = vmul.f32 %v5342_v39, %v5342_v39 }
 0x5d6   : > { %3783 = vmatpush3.bf16.msra.mxu1 %v3782_v13  ;;  %v3806_v62 = vpack.c.bf16 %v2838_v36, %v2837_v40  ;;  %v4060_v13 = vld [vmem:[#allocation10 + $0x18] sm:$0xff]  ;;  %v4071_v40 = vld [vmem:[#allocation10 + $0x70] sm:$0xff] }
 0x5d7   : > { %3784 = vmatprep.subr.bf16.mxu1 %v4260_v58  ;;  %v5408_v26 = vmul.f32 0.5, %v4060_v13 }
 0x5d9   : > { %3723 = vmatmul.mubr.f32.vlgmr.msra.gmra.mrb[52].mxu1 %v786_v8 }
 0x5da   : > { %3786 = vmatpush3.bf16.msra.mxu1 %v3785_v55  ;;  %3757 = vmatprep.mubr.msk.f32.mxu1 %vm4259_vm0, %v4258_v19  ;;  %v2829_v19 = vmul.f32 %v5288_v11, %v5288_v11  ;;  %v5412_v55 = vpop.permute.xlu0 %3077 }
 0x5db   : > { %3787 = vmatprep.subr.bf16.mxu1 %v4260_v58 }
 0x5dc   : > { %v3794_v16 = vpack.c.bf16 %v2830_v33, %v2829_v19  ;;  %v4065_v19 = vld [vmem:[#allocation10 + $0x40] sm:$0xff] }
 0x5de   : > { %3789 = vmatpush3.bf16.msra.mxu1 %v3788_v3  ;;  %v5416_v3 = vmul.f32 0.5, %v4062_v0 }
 0x5df   : > { %3790 = vmatprep.subr.bf16.mxu1 %v4260_v58 }
 0x5e2   : > { %3792 = vmatpush3.bf16.msra.mxu1 %v3791_v29  ;;  %v4064_v29 = vld [vmem:[#allocation10 + $0x38] sm:$0xff] }
 0x5e3   : > { %3793 = vmatprep.subr.bf16.mxu1 %v4260_v58  ;;  %v5420_v33 = vmul.f32 0.5, %v4064_v29 }
 0x5e6   : > { %3795 = vmatpush3.bf16.msra.mxu1 %v3794_v16  ;;  %v5422_v16 = vmul.f32 0.5, %v4065_v19 }
 0x5e7   : > { %3796 = vmatprep.subr.bf16.mxu1 %v4260_v58 }
 0x5ea   : > { %3798 = vmatpush3.bf16.msra.mxu1 %v3797_v43  ;;  %v4067_v43 = vld [vmem:[#allocation10 + $0x50] sm:$0xff] }
 0x5eb   : > { %3799 = vmatprep.subr.bf16.mxu1 %v4260_v58  ;;  %v5426_v23 = vmul.f32 0.5, %v4067_v43 }
 0x5ee   : > { %3801 = vmatpush3.bf16.msra.mxu1 %v3800_v20  ;;  %v5428_v20 = vmul.f32 0.5, %v4068_v25 }
 0x5ef   : > { %3802 = vmatprep.subr.bf16.mxu1 %v4260_v58 }
 0x5f2   : > { %3804 = vmatpush3.bf16.msra.mxu1 %v3803_v59  ;;  %v4070_v59 = vld [vmem:[#allocation10 + $0x68] sm:$0xff] }
 0x5f3   : > { %3805 = vmatprep.subr.bf16.mxu1 %v4260_v58  ;;  %v5397_v58 = vpop.permute.xlu1 %3062  ;;  %v5432_v36 = vmul.f32 0.5, %v4070_v59 }
 0x5f6   : > { %3807 = vmatpush3.bf16.msra.mxu1 %v3806_v62  ;;  %v5434_v62 = vmul.f32 0.5, %v4071_v40 }
 0x5f7   : > { %v5414_v7 = vpop.permute.xlu1 %3072 }
 0x5f9   : > { %3758 = vmatmul.mubr.f32.vlgmr.msra.gmra.mrb[54].mxu1 %v786_v8  ;;  %v4061_v8 = vld [vmem:[#allocation10 + $0x20] sm:$0xff] }
 0x5fa   : > { %v5410_v41 = vmul.f32 0.5, %v4061_v8 }
 0x5fb   : > { %v5458_v42 = vpop.permute.xlu1 %3082 }
 0x5ff   : > { %v5482_v37 = vpop.permute.xlu1 %3092 }
 0x6ac   : > { %v2819_v63 = vpop.f32.mrb[52].mxu1 }
 0x6ad   : > { %v3724_v14 = vpop.f32.mrb[53].mxu1  ;;  %v2909_v2 = vmul.f32 0.0625, %v2819_v63  ;;  %v4072_v63 = vld [vmem:[#allocation10 + $0x78] sm:$0xff] }
 0x6ae   : > { %v5436_v14 = vmul.f32 0.5, %v4072_v63 }
 0x6af   : > { %v2911_v15 = vmul.f32 %v2909_v2, %v2909_v2  ;;  %v5402_v6 = vrot.slane %v2909_v2, %v4663_v61 }
 0x6b1   : > { %v2918_v2 = vsub.f32 %v5249_v49, %v5402_v6  ;;  %v2925_v49 = vsub.f32 %v5292_v12, %v5402_v6  ;;  %v2930_v12 = vsub.f32 %v5327_v22, %v5402_v6  ;;  %v2932_v5 = vsub.f32 %v5340_v10, %v5402_v6  ;;  %v3392_v22 = vld [vmem:[%s5616_s29] ss:$0 sm:$0xff] }
 0x6cc   : > { %v2905_v4 = vpop.f32.mrb[54].mxu1 }
 0x6cd   : > { %v2910_v30 = vmul.f32 0.0625, %v2905_v4  ;;  %v3759_v47 = vpop.f32.mrb[55].mxu1  ;;  %v2919_v4 = vsub.f32 %v5253_v52, %v5402_v6  ;;  %v2926_v52 = vsub.f32 %v5301_v28, %v5402_v6  ;;  %v2931_v28 = vsub.f32 %v5331_v46, %v5402_v6 }
 0x6ce   : > { %v2922_v47 = vsub.f32 %v5275_v57, %v5402_v6  ;;  %v2927_v57 = vsub.f32 %v5305_v38, %v5402_v6 }
 0x6cf   : > { %v2912_v60 = vsub.f32 %v2910_v30, %v2911_v15  ;;  %v2920_v15 = vsub.f32 %v5262_v53, %v5402_v6  ;;  %v2921_v30 = vsub.f32 %v5266_v21, %v5402_v6  ;;  %v5456_v53 = vpop.permute.xlu0 %3087 }
 0x6d1   : > { %v2913_v45 = vmax.f32 %v2912_v60, 0.0 }
 0x6d3   : > { %v2934_v27 = vadd.f32 1e-05, %v2913_v45  ;;  %v2923_v45 = vsub.f32 %v5279_v18, %v5402_v6  ;;  %v2928_v18 = vsub.f32 %v5314_v31, %v5402_v6  ;;  %v5480_v25 = vpop.permute.xlu0 %3097 }
 0x6d4   : > { %5617 = vst [vmem:[#allocation26_spill] sm:$0xff] %v5480_v25 }
 0x6d5   : > { %4055 = vrsqrt.f32 %v2934_v27  ;;  %v2924_v27 = vsub.f32 %v5288_v11, %v5402_v6  ;;  %v2929_v11 = vsub.f32 %v5318_v50, %v5402_v6 }
 0x6df   : > { %v4056_v60 = vpop.eup %4055 }
 0x6e0   : > { %v2939_v21 = vrot.slane %v4056_v60, %v4663_v61  ;;  %v2933_v61 = vsub.f32 %v5342_v39, %v5402_v6  ;;  %v3393_v60 = vld [vmem:[%s5618_s30] ss:$0 sm:$0xff] }
 0x6e2   : > { %v2940_v24 = vmul.f32 %v2939_v21, %v2918_v2  ;;  %v2941_v38 = vmul.f32 %v2939_v21, %v2919_v4  ;;  %v2942_v13 = vmul.f32 %v2939_v21, %v2920_v15  ;;  %v2943_v8 = vmul.f32 %v2939_v21, %v2921_v30 }
 0x6e3   : > { %v2944_v31 = vmul.f32 %v2939_v21, %v2922_v47  ;;  %v2945_v0 = vmul.f32 %v2939_v21, %v2923_v45  ;;  %v2946_v32 = vmul.f32 %v2939_v21, %v2924_v27  ;;  %v2947_v50 = vmul.f32 %v2939_v21, %v2925_v49 }
 0x6e4   : > { %v2948_v46 = vmul.f32 %v2939_v21, %v2926_v52  ;;  %v2949_v29 = vmul.f32 %v2939_v21, %v2927_v57  ;;  %v2950_v19 = vmul.f32 %v2939_v21, %v2928_v18  ;;  %v2951_v10 = vmul.f32 %v2939_v21, %v2929_v11 }
 0x6e5   : > { %v2952_v51 = vmul.f32 %v2939_v21, %v2930_v12  ;;  %v2953_v39 = vmul.f32 %v2939_v21, %v2931_v28  ;;  %v2954_v6 = vmul.f32 %v2939_v21, %v2932_v5  ;;  %v2955_v43 = vmul.f32 %v2939_v21, %v2933_v61 }
 0x6e6   : > { %v2963_v59 = vmul.f32 %v3392_v22, %v2940_v24  ;;  %v2964_v40 = vmul.f32 %v3392_v22, %v2941_v38  ;;  %v2965_v63 = vmul.f32 %v3392_v22, %v2942_v13  ;;  %v2966_v2 = vmul.f32 %v3392_v22, %v2943_v8 }
 0x6e7   : > { %v2967_v4 = vmul.f32 %v3392_v22, %v2944_v31  ;;  %v2968_v15 = vmul.f32 %v3392_v22, %v2945_v0  ;;  %v2969_v30 = vmul.f32 %v3392_v22, %v2946_v32  ;;  %v2970_v47 = vmul.f32 %v3392_v22, %v2947_v50  ;;  %v3108_v31 = vpop.permute.xlu0 %3107  ;;  %v3103_v0 = vpop.permute.xlu1 %3102 }
 0x6e8   : > { %v2971_v45 = vmul.f32 %v3392_v22, %v2948_v46  ;;  %v2972_v27 = vmul.f32 %v3392_v22, %v2949_v29  ;;  %v2973_v49 = vmul.f32 %v3392_v22, %v2950_v19  ;;  %v2974_v52 = vmul.f32 %v3392_v22, %v2951_v10 }
 0x6e9   : > { %v2975_v21 = vmul.f32 %v3392_v22, %v2952_v51  ;;  %v2976_v57 = vmul.f32 %v3392_v22, %v2953_v39  ;;  %v2977_v18 = vmul.f32 %v3392_v22, %v2954_v6  ;;  %v2978_v11 = vmul.f32 %v3392_v22, %v2955_v43 }
 0x6ea   : > { %v2986_v12 = vadd.f32 %v3393_v60, %v2963_v59  ;;  %v2987_v28 = vadd.f32 %v3393_v60, %v2964_v40  ;;  %v2988_v5 = vadd.f32 %v3393_v60, %v2965_v63  ;;  %v2989_v61 = vadd.f32 %v3393_v60, %v2966_v2 }
 0x6eb   : > { %v2990_v24 = vadd.f32 %v3393_v60, %v2967_v4  ;;  %v2991_v38 = vadd.f32 %v3393_v60, %v2968_v15  ;;  %v2992_v13 = vadd.f32 %v3393_v60, %v2969_v30  ;;  %v2993_v8 = vadd.f32 %v3393_v60, %v2970_v47 }
 0x6ec   : > { %v2994_v32 = vadd.f32 %v3393_v60, %v2971_v45  ;;  %v2995_v50 = vadd.f32 %v3393_v60, %v2972_v27  ;;  %v2996_v46 = vadd.f32 %v3393_v60, %v2973_v49  ;;  %v2997_v29 = vadd.f32 %v3393_v60, %v2974_v52 }
 0x6ed   : > { %v2998_v19 = vadd.f32 %v3393_v60, %v2975_v21  ;;  %v2999_v10 = vadd.f32 %v3393_v60, %v2976_v57  ;;  %v3000_v51 = vadd.f32 %v3393_v60, %v2977_v18  ;;  %v3001_v39 = vadd.f32 %v3393_v60, %v2978_v11  ;;  %v3118_v21 = vpop.permute.xlu0 %3117  ;;  %v3113_v57 = vpop.permute.xlu1 %3112 }
 0x6ee   : > { %v3002_v6 = vmul.f32 0.5, %v2986_v12  ;;  %v3003_v22 = vmul.f32 0.5, %v2987_v28  ;;  %v3004_v43 = vmul.f32 0.5, %v2988_v5  ;;  %v3005_v59 = vmul.f32 0.5, %v2989_v61 }
 0x6ef   : > { %v3006_v40 = vmul.f32 0.5, %v2990_v24  ;;  %v3007_v63 = vmul.f32 0.5, %v2991_v38  ;;  %v3008_v2 = vmul.f32 0.5, %v2992_v13  ;;  %v3009_v4 = vmul.f32 0.5, %v2993_v8 }
 0x6f0   : > { %v3010_v15 = vmul.f32 0.5, %v2994_v32  ;;  %v3011_v30 = vmul.f32 0.5, %v2995_v50  ;;  %v3012_v47 = vmul.f32 0.5, %v2996_v46  ;;  %v3013_v25 = vmul.f32 0.5, %v2997_v29 }
 0x6f1   : > { %v3014_v45 = vmul.f32 0.5, %v2998_v19  ;;  %v3015_v27 = vmul.f32 0.5, %v2999_v10  ;;  %v3016_v49 = vmul.f32 0.5, %v3000_v51  ;;  %v3017_v52 = vmul.f32 0.5, %v3001_v39 }
 0x6f2   : > { %v3034_v60 = vadd.f32 %v5399_v54, %v3002_v6  ;;  %v3035_v18 = vadd.f32 %v5404_v56, %v3003_v22  ;;  %v3036_v11 = vadd.f32 %v5406_v35, %v3004_v43  ;;  %v3037_v12 = vadd.f32 %v5408_v26, %v3005_v59 }
 0x6f3   : > { %v3038_v28 = vadd.f32 %v5410_v41, %v3006_v40  ;;  %v3039_v5 = vadd.f32 %v5416_v3, %v3007_v63  ;;  %v3040_v61 = vadd.f32 %v5418_v34, %v3008_v2  ;;  %v3041_v24 = vadd.f32 %v5420_v33, %v3009_v4 }
 0x6f4   : > { %v3042_v38 = vadd.f32 %v5422_v16, %v3010_v15  ;;  %v3043_v13 = vadd.f32 %v5424_v48, %v3011_v30  ;;  %v3044_v54 = vadd.f32 %v5426_v23, %v3012_v47  ;;  %v3045_v56 = vadd.f32 %v5428_v20, %v3013_v25 }
 0x6f5   : > { %v3046_v35 = vadd.f32 %v5430_v17, %v3014_v45  ;;  %v3047_v26 = vadd.f32 %v5432_v36, %v3015_v27  ;;  %v3048_v41 = vadd.f32 %v5434_v62, %v3016_v49  ;;  %v3049_v3 = vadd.f32 %v5436_v14, %v3017_v52  ;;  %v3128_v62 = vpop.permute.xlu0 %3127  ;;  %v3123_v14 = vpop.permute.xlu1 %3122 }
 0x6f6   : > { %v3130_v34 = vmul.f32 %v5393_v9, %v3034_v60  ;;  %v3131_v33 = vmul.f32 %v5391_v1, %v3035_v18  ;;  %v3132_v16 = vmul.f32 %v5397_v58, %v3036_v11  ;;  %v3133_v48 = vmul.f32 %v5395_v44, %v3037_v12  ;;  %v5619_v9 = vld [vmem:[#allocation26_spill] sm:$0xff] }
 0x6f7   : > { %v3134_v23 = vmul.f32 %v5414_v7, %v3038_v28  ;;  %v3135_v20 = vmul.f32 %v5412_v55, %v3039_v5  ;;  %v3136_v17 = vmul.f32 %v5458_v42, %v3040_v61  ;;  %v3137_v36 = vmul.f32 %v5456_v53, %v3041_v24 }
 0x6f8   : > { %v3138_v25 = vmul.f32 %v5482_v37, %v3042_v38  ;;  %v3139_v8 = vmul.f32 %v5619_v9, %v3043_v13  ;;  %v3140_v1 = vmul.f32 %v3103_v0, %v3044_v54  ;;  %v3141_v32 = vmul.f32 %v3108_v31, %v3045_v56  ;;  %3146 = vst [vmem:[#allocation10] sm:$0xff] %v3130_v34 }
 0x6f9   : > { %3147 = vst [vmem:[#allocation10 + $0x8] sm:$0xff] %v3131_v33  ;;  %3148 = vst [vmem:[#allocation10 + $0x10] sm:$0xff] %v3132_v16  ;;  %v3142_v44 = vmul.f32 %v3113_v57, %v3046_v35  ;;  %v3143_v58 = vmul.f32 %v3118_v21, %v3047_v26  ;;  %v3144_v55 = vmul.f32 %v3123_v14, %v3048_v41 }
 0x6fa   : > { %3149 = vst [vmem:[#allocation10 + $0x18] sm:$0xff] %v3133_v48  ;;  %v3145_v7 = vmul.f32 %v3128_v62, %v3049_v3  ;;  %3150 = vst [vmem:[#allocation10 + $0x20] sm:$0xff] %v3134_v23 }
 0x6fb   : > { %3151 = vst [vmem:[#allocation10 + $0x28] sm:$0xff] %v3135_v20  ;;  %3152 = vst [vmem:[#allocation10 + $0x30] sm:$0xff] %v3136_v17 }
 0x6fc   : > { %3153 = vst [vmem:[#allocation10 + $0x38] sm:$0xff] %v3137_v36  ;;  %3154 = vst [vmem:[#allocation10 + $0x40] sm:$0xff] %v3138_v25 }
 0x6fd   : > { %3155 = vst [vmem:[#allocation10 + $0x48] sm:$0xff] %v3139_v8  ;;  %3156 = vst [vmem:[#allocation10 + $0x50] sm:$0xff] %v3140_v1 }
 0x6fe   : > { %3157 = vst [vmem:[#allocation10 + $0x58] sm:$0xff] %v3141_v32  ;;  %3158 = vst [vmem:[#allocation10 + $0x60] sm:$0xff] %v3142_v44 }
 0x6ff   : > { %3159 = vst [vmem:[#allocation10 + $0x68] sm:$0xff] %v3143_v58  ;;  %3160 = vst [vmem:[#allocation10 + $0x70] sm:$0xff] %v3144_v55 }
 0x700   : > { %3161 = vst [vmem:[#allocation10 + $0x78] sm:$0xff] %v3145_v7 }
 0x701   : > { %4190 = shalt.err (!%p4187_p12)
}
 0x702   : > { %s5620_s0 = sld [smem:[#allocation34_spill]] }
 0x708   : > { %s4191_s6 = scalar_lea.hbm %s5620_s0, 2048 }
 0x709   : > { %p4192_p0 = scmp.ne.s32.totalorder %s5620_s0, %s4191_s6  ;;  %p4197_p11 = scmp.lt.u32.totalorder %s4191_s6, %s5620_s0 }
 0x70b   : > { %p4193_p7 = pnand %p4192_p0, %p3824_p1 }
 0x70d   : > { %p4194_p8 = pneg %p4193_p7 }
 0x70f   : > { %p4199_p3 = pnand %p4197_p11, %p4194_p8 }
 0x711   : > { %4202 = shalt.err (!%p4199_p3)
}
 0x712   : > { %s4262_s20 = smov 128   ;;  %s4263_s7 = smov 8  }
 0x713   : > { %3813 = dma.vmem_to_hbm [thread:$0]  (%p3824_p1), %s5516_s16, 2048, %s5620_s0, [#allocation7], %s4262_s20, %s4262_s20, %s4263_s7  }
 0x714   : > { %4232 = dma.done.wait (%p3824_p1), [#allocation7], 2048  }
 0x715   : > { %4234 = vsyncadd (%p3824_p1), [#allocation7], 4294965248 }
 0x716 PF: > { %s5621_s24 = sld [smem:[#allocation24_spill]]  ;;  %s5622_s21 = sld [smem:[#allocation22_spill]] }
 0x717   : > { %s5623_s22 = sld [smem:[#allocation23_spill]]  ;;  %s5624_s23 = sld [smem:[#allocation25_spill]] }
 0x71c   : > { %p30_p6 = scmp.ge.s32.totalorder %s5621_s24, 4  }
 0x71e   :  { %32 = sbr.rel (!%p30_p6) target bundleno = 15 (0xf), region = 161 }
 0x725   :  { %3184 = vsyncpa [#allocation6], 1 }
 0x726   :  { %3186 = vsyncpa [#allocation6 + $0x1], 1 }
 0x727   :  { %3187 = vsyncpa [#allocation9], 1 }
 0x728   :  { %3189 = vsyncpa [#allocation9 + $0x1], 1 }
 0x729   :  { %3190 = vsyncpa [#allocation7], 1 }
 0x72a   :  { %3192 = vsyncpa [#allocation7 + $0x1], 1 }
 0x72b   :  { %3193 = vsyncmov [#allocation4] }
 0x72e   :  { %s3194_s25 = vpop.sfrf %3193 }
 0x72f   :  { %p3398_p1 = scmp.ne.s32.totalorder %s3194_s25, 0 }
 0x731   :  { %3198 = shalt.err (%p3398_p1)  }
 0x732   :  { %3200 = vsyncmov [#allocation4 + $0x1] }
 0x735   :  { %s3201_s29 = vpop.sfrf %3200 }
 0x736   :  { %p3399_p2 = scmp.ne.s32.totalorder %s3201_s29, 0 }
 0x738   :  { %3205 = shalt.err (%p3399_p2)  }

</bundles_post_ra>
